<compile_context>
chip_gen: v5e
topology: v5e:2x2
jax: 0.10.0
libtpu: 0.0.40
codegen_flags: <defaults>
</compile_context>

<pallas_src>
import functools

import jax
import jax.numpy as jnp
import numpy as np
from jax.experimental import pallas as pl
from jax.experimental.pallas import tpu as pltpu

LANE = 128


def _round_up(x, n):
    return ((x + n - 1) // n) * n


def _pick_tile_h(h):
    """Row-tile height: a divisor of H, preferring 16/8 rows per tile."""
    for th in (16, 8):
        if th < h and h % th == 0:
            return th
    return h


def _vmem_limit(n_bytes):
    """Itemized VMEM request, clamped to device capacity (no blind 2x fudge)."""
    try:
        cap = int(pltpu.get_tpu_info().vmem_capacity_bytes)
    except Exception:
        cap = 64 * 1024 * 1024          # conservative (v7x per-TC capacity)
    return int(min(cap, max(int(n_bytes), 32 * 1024 * 1024)))


# --------------------------------------------------------------------------------
# Pass 1: dilated 3x3 branch convolutions (fused im2col matmul) + GAP partial sums
# --------------------------------------------------------------------------------
def _branch_conv_kernel(x_ref, wconv_ref, bconv_ref, paths_ref, gap_ref, patch_ref,
                        *, m, pad, tile_h):
    # x_ref     : (Hp, Wp, Cp)      bf16  spatially+channel padded image (whole image;
    #                                     re-DMA'd only when the batch index changes)
    # wconv_ref : (m, 9*Cp, Kp)     bf16  fused im2col weights   (single-buffered)
    # bconv_ref : (m, Kp)           f32   conv bias              (single-buffered)
    # paths_ref : (m, TH, W, Kp)    bf16  per-branch conv outputs for this tile
    # gap_ref   : (1, 1, 8, Kp)     f32   per-tile partial sum of u = sum_m paths_m
    # patch_ref : (TH, W, 9*Cp)     bf16  persistent im2col patch scratch
    TH = tile_h
    W = paths_ref.shape[2]
    Kp = paths_ref.shape[3]
    Cp = x_ref.shape[2]
    THW = TH * W

    r0 = pl.multiple_of(pl.program_id(1) * TH, TH)   # first image row of this tile

    # Centre tap (ky = kx = 1) is dilation-independent: write it once per tile,
    # directly from the (already halo-padded) input block.
    patch_ref[:, :, 4 * Cp:5 * Cp] = x_ref[pl.ds(r0 + pad, TH), pl.ds(pad, W), :]

    usum = None
    for mi in range(m):                              # m is 2-3 -> unrolled
        d = mi + 1                                   # dilation of this branch
        # Refresh the 8 dilation-dependent taps in place (lane-aligned column blocks).
        for ky in range(3):
            for kx in range(3):
                if ky == 1 and kx == 1:
                    continue
                tap = ky * 3 + kx
                patch_ref[:, :, tap * Cp:(tap + 1) * Cp] = x_ref[
                    pl.ds(r0 + pad + (ky - 1) * d, TH),
                    pl.ds(pad + (kx - 1) * d, W), :]

        # One fused MXU matmul per branch: contraction depth 9*Cp, f32 accumulation.
        patch2d = patch_ref[...].reshape(THW, 9 * Cp)
        acc = jnp.dot(patch2d, wconv_ref[mi],
                      preferred_element_type=jnp.float32)          # (THW, Kp) f32
        acc = acc + bconv_ref[mi:mi + 1, :]

        # Store this branch's tile in bf16 (halves VMEM/HBM traffic).
        paths_ref[mi] = acc.reshape(TH, W, Kp).astype(paths_ref.dtype)

        # Per-tile GAP partial sum (over pixels and branches), kept in f32.
        s = jnp.sum(acc, axis=0, keepdims=True)                    # (1, Kp)
        usum = s if usum is None else usum + s

    # Replicate across 8 sublanes so the (8, Kp) output block is written unmasked.
    gap_ref[0, 0] = jnp.broadcast_to(usum, (8, Kp))


# --------------------------------------------------------------------------------
# Pass 2: attention-weighted sum of branches (in-place accumulation into out block)
# --------------------------------------------------------------------------------
def _apply_attention_kernel(att_ref, paths_ref, out_ref, *, m):
    # att_ref   : (1, m, Kp)        f32
    # paths_ref : (m, TH, W, Kp)    bf16
    # out_ref   : (1, TH, W, Kp)    f32
    Kp = out_ref.shape[3]
    w0 = att_ref[0, 0:1, :].reshape(1, 1, Kp)
    out_ref[0] = w0 * paths_ref[0].astype(jnp.float32)
    for mi in range(1, m):
        wi = att_ref[0, mi:mi + 1, :].reshape(1, 1, Kp)
        out_ref[0] = out_ref[0] + wi * paths_ref[mi].astype(jnp.float32)


# --------------------------------------------------------------------------------
# Wrapper
# --------------------------------------------------------------------------------
@functools.partial(jax.jit, static_argnames=("m",))
def skconv2d_pallas(x_nchw, wconv, bconv, w1, b1, w2, b2, *, m):
    """SKConv2d forward.

    x_nchw : (B, Cin, H, W) f32
    wconv  : (m, 3, 3, Cin, Cout)  HWIO conv weights, one dilated 3x3 branch each
    bconv  : (m, Cout)
    w1     : (Cout, Chid), b1: (Chid,)      -- first 1x1 of the soft-attention MLP
    w2     : (Chid, m*Cout), b2: (m*Cout,)  -- second 1x1 (m-major output ordering)
    """
    B, Cin, H, W = x_nchw.shape
    Cout = wconv.shape[-1]
    pad = m                                   # max dilation across branches
    Hp, Wp = H + 2 * pad, W + 2 * pad
    Cp = _round_up(Cin, LANE)                 # lane-aligned im2col chunks
    Kp = _round_up(Cout, LANE)                # lane-dense output / MXU N dim
    TH = _pick_tile_h(H)
    assert H % TH == 0
    n_tiles = H // TH

    # Host layout glue: NCHW f32 -> NHWC bf16.  Spatial halo + channel pad are fused
    # into ONE pad op (no extra HBM pass vs the channel pad we already needed, and no
    # in-kernel halo scratch / zero fill).
    x = jnp.transpose(x_nchw, (0, 2, 3, 1)).astype(jnp.bfloat16)
    x = jnp.pad(x, ((0, 0), (pad, pad), (pad, pad), (0, Cp - Cin)))

    # Conv weights -> (m, 9*Cp, Kp); row order = (tap ky*3+kx, input channel), matching
    # the lane-block layout of the in-kernel patch scratch.  Padded rows/cols are zero,
    # so padded output channels are exactly zero (bias padded with zeros too).
    wconv_k = jnp.pad(wconv, ((0, 0), (0, 0), (0, 0), (0, Cp - Cin), (0, Kp - Cout)))
    wconv_k = wconv_k.reshape(m, 9 * Cp, Kp).astype(jnp.bfloat16)
    bconv_k = jnp.pad(bconv, ((0, 0), (0, Kp - Cout))).astype(jnp.float32)

    # ---------------- pass 1: branch convs + per-tile GAP partial sums ----------
    p1_vmem = (2 * Hp * Wp * Cp * 2           # image block (bf16, double-buffered)
               + m * 9 * Cp * Kp * 2          # conv weights (bf16, single-buffered)
               + m * Kp * 4                   # conv bias (single-buffered)
               + 2 * m * TH * W * Kp * 2      # paths out block (bf16, double-buffered)
               + 2 * 8 * Kp * 4               # gap out block
               + 2 * TH * W * 9 * Cp * 2      # patch scratch + matmul operand temp
               + 3 * TH * W * Kp * 4)         # f32 accumulator / cast temporaries

    kernel1 = functools.partial(_branch_conv_kernel, m=m, pad=pad, tile_h=TH)
    paths, gap_part = pl.pallas_call(
        kernel1,
        out_shape=(
            jax.ShapeDtypeStruct((B * m, H, W, Kp), jnp.bfloat16),   # paths (folded B,m)
            jax.ShapeDtypeStruct((B, n_tiles, 8, Kp), jnp.float32),  # GAP partial sums
        ),
        grid_spec=pltpu.PrefetchScalarGridSpec(
            num_scalar_prefetch=0,
            grid=(B, n_tiles),
            in_specs=[
                # Whole padded image per batch element; index map is constant over the
                # tile axis so it is only re-DMA'd when the batch index changes.
                pl.BlockSpec((None, Hp, Wp, Cp), lambda b, t: (b, 0, 0, 0)),
                # Grid-invariant operands: single-buffered (dead second buffer saved).
                pl.BlockSpec((m, 9 * Cp, Kp), lambda b, t: (0, 0, 0),
                             pipeline_mode=pl.Buffered(1)),
                pl.BlockSpec((m, Kp), lambda b, t: (0, 0),
                             pipeline_mode=pl.Buffered(1)),
            ],
            out_specs=(
                pl.BlockSpec((m, TH, W, Kp), lambda b, t: (b, t, 0, 0)),
                pl.BlockSpec((1, 1, 8, Kp), lambda b, t: (b, t, 0, 0)),
            ),
            scratch_shapes=[pltpu.VMEM((TH, W, 9 * Cp), jnp.bfloat16)],
        ),
        compiler_params=pltpu.CompilerParams(
            dimension_semantics=("parallel", "parallel"),
            vmem_limit_bytes=_vmem_limit(p1_vmem),
        ),
    )(x, wconv_k, bconv_k)

    # ---------------- soft-attention MLP: O(B*C) work, exact f32 (plain XLA) ----
    gap = gap_part[:, :, 0, :Cout].sum(axis=1) * (1.0 / float(H * W))   # (B, Cout)
    hid = gap @ w1 + b1[None, :]                                        # (B, Chid)
    z = jax.nn.sigmoid(hid @ w2 + b2[None, :])                          # (B, m*Cout)
    att = jax.nn.softmax(z.reshape(B, m, Cout), axis=1)                 # (B, m, Cout)
    att = jnp.pad(att, ((0, 0), (0, 0), (0, Kp - Cout))).astype(jnp.float32)

    # ---------------- pass 2: apply per-image attention to per-tile paths -------
    p2_vmem = (2 * m * TH * W * Kp * 2        # paths in block (bf16)
               + 2 * m * Kp * 4               # attention in block
               + 2 * TH * W * Kp * 4          # out block (f32)
               + 2 * TH * W * Kp * 4)         # elementwise temporaries

    kernel2 = functools.partial(_apply_attention_kernel, m=m)
    out_nhwc = pl.pallas_call(
        kernel2,
        out_shape=jax.ShapeDtypeStruct((B, H, W, Kp), jnp.float32),
        grid_spec=pltpu.PrefetchScalarGridSpec(
            num_scalar_prefetch=0,
            grid=(B, n_tiles),
            in_specs=[
                pl.BlockSpec((1, m, Kp), lambda b, t: (b, 0, 0)),
                pl.BlockSpec((m, TH, W, Kp), lambda b, t: (b, t, 0, 0)),
            ],
            out_specs=pl.BlockSpec((1, TH, W, Kp), lambda b, t: (b, t, 0, 0)),
        ),
        compiler_params=pltpu.CompilerParams(
            dimension_semantics=("parallel", "parallel"),
            vmem_limit_bytes=_vmem_limit(p2_vmem),
        ),
    )(att, paths)

    # Drop channel padding, back to NCHW.
    return jnp.transpose(out_nhwc[..., :Cout], (0, 3, 1, 2))


# --------------------------------------------------------------------------------
# Pure-JAX f32 reference mirroring the PyTorch forward
# --------------------------------------------------------------------------------
def skconv2d_reference(x_nchw, wconv, bconv, w1, b1, w2, b2, *, m):
    x = jnp.transpose(x_nchw, (0, 2, 3, 1))  # NHWC
    paths = []
    for mi in range(m):
        d = mi + 1
        p = jax.lax.conv_general_dilated(
            x, wconv[mi], window_strides=(1, 1),
            padding=((d, d), (d, d)), rhs_dilation=(d, d),
            dimension_numbers=("NHWC", "HWIO", "NHWC"))
        paths.append(p + bconv[mi][None, None, None, :])
    paths = jnp.stack(paths, axis=1)               # (B, m, H, W, Cout)
    u = paths.sum(axis=1)                          # (B, H, W, Cout)
    gap = u.mean(axis=(1, 2))                      # (B, Cout)
    hid = gap @ w1 + b1[None, :]                   # (B, Chid)
    z = jax.nn.sigmoid(hid @ w2 + b2[None, :])     # (B, m*Cout)
    B = x.shape[0]
    Cout = wconv.shape[-1]
    att = jax.nn.softmax(z.reshape(B, m, Cout), axis=1)     # (B, m, Cout)
    out = (att[:, :, None, None, :] * paths).sum(axis=1)    # (B, H, W, Cout)
    return jnp.transpose(out, (0, 3, 1, 2))        # NCHW


if __name__ == "__main__":
    B, Cin, H, W = 2, 4, 16, 16
    Cout = 4
    M = 2
    SA_RATIO = 16
    Chid = max(Cout // SA_RATIO, 32)   # = 32, as in SoftAttentionLayer

    key = jax.random.PRNGKey(0)
    ks = jax.random.split(key, 7)
    x = jax.random.normal(ks[0], (B, Cin, H, W), jnp.float32)
    # Per-branch 3x3 conv weights in HWIO.
    wconv = 0.1 * jax.random.normal(ks[1], (M, 3, 3, Cin, Cout), jnp.float32)
    bconv = 0.1 * jax.random.normal(ks[2], (M, Cout), jnp.float32)
    # Soft-attention 1x1 convs as dense matrices.
    w1 = 0.1 * jax.random.normal(ks[3], (Cout, Chid), jnp.float32)
    b1 = 0.1 * jax.random.normal(ks[4], (Chid,), jnp.float32)
    w2 = 0.1 * jax.random.normal(ks[5], (Chid, M * Cout), jnp.float32)
    b2 = 0.1 * jax.random.normal(ks[6], (M * Cout,), jnp.float32)

    out = jax.block_until_ready(
        skconv2d_pallas(x, wconv, bconv, w1, b1, w2, b2, m=M))
    ref = jax.block_until_ready(
        skconv2d_reference(x, wconv, bconv, w1, b1, w2, b2, m=M))

    # bf16 MXU inputs and bf16 path storage -> loosen tolerance vs pure-f32 ref.
    np.testing.assert_allclose(np.asarray(out), np.asarray(ref),
                               rtol=2e-2, atol=2e-2)
    print("KERNEL_OK")
</pallas_src>

<mosaic_0001>
module attributes {stable_mosaic.version = 11 : i64} {
  func.func @_branch_conv_kernel(%arg0: i32, %arg1: i32, %arg2: memref<1x20x20x128xbf16, #tpu.memory_space<vmem>>, %arg3: memref<2x1152x128xbf16, #tpu.memory_space<vmem>>, %arg4: memref<2x128xf32, #tpu.memory_space<vmem>>, %arg5: memref<2x8x16x128xbf16, #tpu.memory_space<vmem>>, %arg6: memref<1x1x8x128xf32, #tpu.memory_space<vmem>>, %arg7: memref<8x16x1152xbf16, #tpu.memory_space<vmem>>) attributes {dimension_semantics = [#tpu.dimension_semantics<parallel>, #tpu.dimension_semantics<parallel>], iteration_bounds = array<i64: 2, 2>, scalar_prefetch = 0 : i64, scratch_operands = 1 : i64, tpu.core_type = #tpu.core_type<tc>, window_params = [{transform_indices = @transform_0, window_bounds = array<i64: 1, 20, 20, 128>}, {pipeline_mode = #tpu.pipeline_mode<synchronous>, transform_indices = @transform_1, window_bounds = array<i64: 2, 1152, 128>}, {pipeline_mode = #tpu.pipeline_mode<synchronous>, transform_indices = @transform_2, window_bounds = array<i64: 2, 128>}, {transform_indices = @transform_3, window_bounds = array<i64: 2, 8, 16, 128>}, {transform_indices = @transform_4, window_bounds = array<i64: 1, 1, 8, 128>}]} {
    %c8_i32 = arith.constant 8 : i32
    %0 = arith.muli %arg1, %c8_i32 : i32
    %1 = tpu.assume_multiple %0, 8 : i32
    %c2_i32 = arith.constant 2 : i32
    %2 = arith.addi %1, %c2_i32 : i32
    %c0 = arith.constant 0 : index
    %3 = arith.index_cast %2 : i32 to index
    %c2 = arith.constant 2 : index
    %c0_0 = arith.constant 0 : index
    %4 = vector.load %arg2[%c0, %3, %c2, %c0_0] : memref<1x20x20x128xbf16, #tpu.memory_space<vmem>>, vector<1x8x16x128xbf16>
    %5 = vector.shape_cast %4 : vector<1x8x16x128xbf16> to vector<8x16x128xbf16>
    %c0_1 = arith.constant 0 : index
    %c0_2 = arith.constant 0 : index
    %c512 = arith.constant 512 : index
    %6 = vector.load %arg7[%c0_1, %c0_2, %c512] : memref<8x16x1152xbf16, #tpu.memory_space<vmem>>, vector<8x16x128xbf16>
    tpu.vector_store %arg7[%c0_1, %c0_2, %c512], %5 {strides = array<i32>} : memref<8x16x1152xbf16, #tpu.memory_space<vmem>>, vector<8x16x128xbf16>,
    %c2_i32_3 = arith.constant 2 : i32
    %7 = arith.addi %1, %c2_i32_3 : i32
    %c-1_i32 = arith.constant -1 : i32
    %8 = arith.addi %7, %c-1_i32 : i32
    %c0_4 = arith.constant 0 : index
    %9 = arith.index_cast %8 : i32 to index
    %c1 = arith.constant 1 : index
    %c0_5 = arith.constant 0 : index
    %10 = vector.load %arg2[%c0_4, %9, %c1, %c0_5] : memref<1x20x20x128xbf16, #tpu.memory_space<vmem>>, vector<1x8x16x128xbf16>
    %11 = vector.shape_cast %10 : vector<1x8x16x128xbf16> to vector<8x16x128xbf16>
    %c0_6 = arith.constant 0 : index
    %c0_7 = arith.constant 0 : index
    %c0_8 = arith.constant 0 : index
    %12 = vector.load %arg7[%c0_6, %c0_7, %c0_8] : memref<8x16x1152xbf16, #tpu.memory_space<vmem>>, vector<8x16x128xbf16>
    tpu.vector_store %arg7[%c0_6, %c0_7, %c0_8], %11 {strides = array<i32>} : memref<8x16x1152xbf16, #tpu.memory_space<vmem>>, vector<8x16x128xbf16>,
    %c2_i32_9 = arith.constant 2 : i32
    %13 = arith.addi %1, %c2_i32_9 : i32
    %c-1_i32_10 = arith.constant -1 : i32
    %14 = arith.addi %13, %c-1_i32_10 : i32
    %c0_11 = arith.constant 0 : index
    %15 = arith.index_cast %14 : i32 to index
    %c2_12 = arith.constant 2 : index
    %c0_13 = arith.constant 0 : index
    %16 = vector.load %arg2[%c0_11, %15, %c2_12, %c0_13] : memref<1x20x20x128xbf16, #tpu.memory_space<vmem>>, vector<1x8x16x128xbf16>
    %17 = vector.shape_cast %16 : vector<1x8x16x128xbf16> to vector<8x16x128xbf16>
    %c0_14 = arith.constant 0 : index
    %c0_15 = arith.constant 0 : index
    %c128 = arith.constant 128 : index
    %18 = vector.load %arg7[%c0_14, %c0_15, %c128] : memref<8x16x1152xbf16, #tpu.memory_space<vmem>>, vector<8x16x128xbf16>
    tpu.vector_store %arg7[%c0_14, %c0_15, %c128], %17 {strides = array<i32>} : memref<8x16x1152xbf16, #tpu.memory_space<vmem>>, vector<8x16x128xbf16>,
    %c2_i32_16 = arith.constant 2 : i32
    %19 = arith.addi %1, %c2_i32_16 : i32
    %c-1_i32_17 = arith.constant -1 : i32
    %20 = arith.addi %19, %c-1_i32_17 : i32
    %c0_18 = arith.constant 0 : index
    %21 = arith.index_cast %20 : i32 to index
    %c3 = arith.constant 3 : index
    %c0_19 = arith.constant 0 : index
    %22 = vector.load %arg2[%c0_18, %21, %c3, %c0_19] : memref<1x20x20x128xbf16, #tpu.memory_space<vmem>>, vector<1x8x16x128xbf16>
    %23 = vector.shape_cast %22 : vector<1x8x16x128xbf16> to vector<8x16x128xbf16>
    %c0_20 = arith.constant 0 : index
    %c0_21 = arith.constant 0 : index
    %c256 = arith.constant 256 : index
    %24 = vector.load %arg7[%c0_20, %c0_21, %c256] : memref<8x16x1152xbf16, #tpu.memory_space<vmem>>, vector<8x16x128xbf16>
    tpu.vector_store %arg7[%c0_20, %c0_21, %c256], %23 {strides = array<i32>} : memref<8x16x1152xbf16, #tpu.memory_space<vmem>>, vector<8x16x128xbf16>,
    %c2_i32_22 = arith.constant 2 : i32
    %25 = arith.addi %1, %c2_i32_22 : i32
    %c0_i32 = arith.constant 0 : i32
    %26 = arith.addi %25, %c0_i32 : i32
    %c0_23 = arith.constant 0 : index
    %27 = arith.index_cast %26 : i32 to index
    %c1_24 = arith.constant 1 : index
    %c0_25 = arith.constant 0 : index
    %28 = vector.load %arg2[%c0_23, %27, %c1_24, %c0_25] : memref<1x20x20x128xbf16, #tpu.memory_space<vmem>>, vector<1x8x16x128xbf16>
    %29 = vector.shape_cast %28 : vector<1x8x16x128xbf16> to vector<8x16x128xbf16>
    %c0_26 = arith.constant 0 : index
    %c0_27 = arith.constant 0 : index
    %c384 = arith.constant 384 : index
    %30 = vector.load %arg7[%c0_26, %c0_27, %c384] : memref<8x16x1152xbf16, #tpu.memory_space<vmem>>, vector<8x16x128xbf16>
    tpu.vector_store %arg7[%c0_26, %c0_27, %c384], %29 {strides = array<i32>} : memref<8x16x1152xbf16, #tpu.memory_space<vmem>>, vector<8x16x128xbf16>,
    %c2_i32_28 = arith.constant 2 : i32
    %31 = arith.addi %1, %c2_i32_28 : i32
    %c0_i32_29 = arith.constant 0 : i32
    %32 = arith.addi %31, %c0_i32_29 : i32
    %c0_30 = arith.constant 0 : index
    %33 = arith.index_cast %32 : i32 to index
    %c3_31 = arith.constant 3 : index
    %c0_32 = arith.constant 0 : index
    %34 = vector.load %arg2[%c0_30, %33, %c3_31, %c0_32] : memref<1x20x20x128xbf16, #tpu.memory_space<vmem>>, vector<1x8x16x128xbf16>
    %35 = vector.shape_cast %34 : vector<1x8x16x128xbf16> to vector<8x16x128xbf16>
    %c0_33 = arith.constant 0 : index
    %c0_34 = arith.constant 0 : index
    %c640 = arith.constant 640 : index
    %36 = vector.load %arg7[%c0_33, %c0_34, %c640] : memref<8x16x1152xbf16, #tpu.memory_space<vmem>>, vector<8x16x128xbf16>
    tpu.vector_store %arg7[%c0_33, %c0_34, %c640], %35 {strides = array<i32>} : memref<8x16x1152xbf16, #tpu.memory_space<vmem>>, vector<8x16x128xbf16>,
    %c2_i32_35 = arith.constant 2 : i32
    %37 = arith.addi %1, %c2_i32_35 : i32
    %c1_i32 = arith.constant 1 : i32
    %38 = arith.addi %37, %c1_i32 : i32
    %c0_36 = arith.constant 0 : index
    %39 = arith.index_cast %38 : i32 to index
    %c1_37 = arith.constant 1 : index
    %c0_38 = arith.constant 0 : index
    %40 = vector.load %arg2[%c0_36, %39, %c1_37, %c0_38] : memref<1x20x20x128xbf16, #tpu.memory_space<vmem>>, vector<1x8x16x128xbf16>
    %41 = vector.shape_cast %40 : vector<1x8x16x128xbf16> to vector<8x16x128xbf16>
    %c0_39 = arith.constant 0 : index
    %c0_40 = arith.constant 0 : index
    %c768 = arith.constant 768 : index
    %42 = vector.load %arg7[%c0_39, %c0_40, %c768] : memref<8x16x1152xbf16, #tpu.memory_space<vmem>>, vector<8x16x128xbf16>
    tpu.vector_store %arg7[%c0_39, %c0_40, %c768], %41 {strides = array<i32>} : memref<8x16x1152xbf16, #tpu.memory_space<vmem>>, vector<8x16x128xbf16>,
    %c2_i32_41 = arith.constant 2 : i32
    %43 = arith.addi %1, %c2_i32_41 : i32
    %c1_i32_42 = arith.constant 1 : i32
    %44 = arith.addi %43, %c1_i32_42 : i32
    %c0_43 = arith.constant 0 : index
    %45 = arith.index_cast %44 : i32 to index
    %c2_44 = arith.constant 2 : index
    %c0_45 = arith.constant 0 : index
    %46 = vector.load %arg2[%c0_43, %45, %c2_44, %c0_45] : memref<1x20x20x128xbf16, #tpu.memory_space<vmem>>, vector<1x8x16x128xbf16>
    %47 = vector.shape_cast %46 : vector<1x8x16x128xbf16> to vector<8x16x128xbf16>
    %c0_46 = arith.constant 0 : index
    %c0_47 = arith.constant 0 : index
    %c896 = arith.constant 896 : index
    %48 = vector.load %arg7[%c0_46, %c0_47, %c896] : memref<8x16x1152xbf16, #tpu.memory_space<vmem>>, vector<8x16x128xbf16>
    tpu.vector_store %arg7[%c0_46, %c0_47, %c896], %47 {strides = array<i32>} : memref<8x16x1152xbf16, #tpu.memory_space<vmem>>, vector<8x16x128xbf16>,
    %c2_i32_48 = arith.constant 2 : i32
    %49 = arith.addi %1, %c2_i32_48 : i32
    %c1_i32_49 = arith.constant 1 : i32
    %50 = arith.addi %49, %c1_i32_49 : i32
    %c0_50 = arith.constant 0 : index
    %51 = arith.index_cast %50 : i32 to index
    %c3_51 = arith.constant 3 : index
    %c0_52 = arith.constant 0 : index
    %52 = vector.load %arg2[%c0_50, %51, %c3_51, %c0_52] : memref<1x20x20x128xbf16, #tpu.memory_space<vmem>>, vector<1x8x16x128xbf16>
    %53 = vector.shape_cast %52 : vector<1x8x16x128xbf16> to vector<8x16x128xbf16>
    %c0_53 = arith.constant 0 : index
    %c0_54 = arith.constant 0 : index
    %c1024 = arith.constant 1024 : index
    %54 = vector.load %arg7[%c0_53, %c0_54, %c1024] : memref<8x16x1152xbf16, #tpu.memory_space<vmem>>, vector<8x16x128xbf16>
    tpu.vector_store %arg7[%c0_53, %c0_54, %c1024], %53 {strides = array<i32>} : memref<8x16x1152xbf16, #tpu.memory_space<vmem>>, vector<8x16x128xbf16>,
    %c0_55 = arith.constant 0 : index
    %c0_56 = arith.constant 0 : index
    %c0_57 = arith.constant 0 : index
    %55 = vector.load %arg7[%c0_55, %c0_56, %c0_57] : memref<8x16x1152xbf16, #tpu.memory_space<vmem>>, vector<8x16x1152xbf16>
    %56 = vector.shape_cast %55 : vector<8x16x1152xbf16> to vector<128x1152xbf16>
    %c0_58 = arith.constant 0 : index
    %c0_59 = arith.constant 0 : index
    %c0_60 = arith.constant 0 : index
    %57 = vector.load %arg3[%c0_58, %c0_59, %c0_60] : memref<2x1152x128xbf16, #tpu.memory_space<vmem>>, vector<1x1152x128xbf16>
    %58 = vector.shape_cast %57 : vector<1x1152x128xbf16> to vector<1152x128xbf16>
    %cst = arith.constant dense<0.000000e+00> : vector<128x128xf32>
    %59 = tpu.matmul %56, %58, %cst {dimension_numbers = #tpu.dot_dimension_numbers<[1], [0], [0], [1], [0, 0, 1, 1], [], []>} : vector<128x1152xbf16>, vector<1152x128xbf16>, vector<128x128xf32> -> vector<128x128xf32>
    %c0_61 = arith.constant 0 : index
    %c0_62 = arith.constant 0 : index
    %60 = vector.load %arg4[%c0_61, %c0_62] : memref<2x128xf32, #tpu.memory_space<vmem>>, vector<1x128xf32>
    %61 = vector.broadcast %60 : vector<1x128xf32> to vector<128x128xf32>
    %62 = arith.addf %59, %61 : vector<128x128xf32>
    %63 = vector.shape_cast %62 : vector<128x128xf32> to vector<8x16x128xf32>
    %64 = arith.truncf %63 : vector<8x16x128xf32> to vector<8x16x128xbf16>
    %c0_63 = arith.constant 0 : index
    %c0_64 = arith.constant 0 : index
    %c0_65 = arith.constant 0 : index
    %c0_66 = arith.constant 0 : index
    %65 = vector.load %arg5[%c0_63, %c0_64, %c0_65, %c0_66] : memref<2x8x16x128xbf16, #tpu.memory_space<vmem>>, vector<1x8x16x128xbf16>
    %66 = vector.shape_cast %65 : vector<1x8x16x128xbf16> to vector<8x16x128xbf16>
    %67 = vector.shape_cast %64 : vector<8x16x128xbf16> to vector<1x8x16x128xbf16>
    tpu.vector_store %arg5[%c0_63, %c0_64, %c0_65, %c0_66], %67 {strides = array<i32>} : memref<2x8x16x128xbf16, #tpu.memory_space<vmem>>, vector<1x8x16x128xbf16>,
    %cst_67 = arith.constant dense<0.000000e+00> : vector<128xf32>
    %68 = vector.multi_reduction <add>, %62, %cst_67 [0] : vector<128x128xf32> to vector<128xf32>
    %69 = vector.shape_cast %68 : vector<128xf32> to vector<1x128xf32>
    %c2_i32_68 = arith.constant 2 : i32
    %70 = arith.addi %1, %c2_i32_68 : i32
    %c-2_i32 = arith.constant -2 : i32
    %71 = arith.addi %70, %c-2_i32 : i32
    %c0_69 = arith.constant 0 : index
    %72 = arith.index_cast %71 : i32 to index
    %c0_70 = arith.constant 0 : index
    %c0_71 = arith.constant 0 : index
    %73 = vector.load %arg2[%c0_69, %72, %c0_70, %c0_71] : memref<1x20x20x128xbf16, #tpu.memory_space<vmem>>, vector<1x8x16x128xbf16>
    %74 = vector.shape_cast %73 : vector<1x8x16x128xbf16> to vector<8x16x128xbf16>
    %c0_72 = arith.constant 0 : index
    %c0_73 = arith.constant 0 : index
    %c0_74 = arith.constant 0 : index
    %75 = vector.load %arg7[%c0_72, %c0_73, %c0_74] : memref<8x16x1152xbf16, #tpu.memory_space<vmem>>, vector<8x16x128xbf16>
    tpu.vector_store %arg7[%c0_72, %c0_73, %c0_74], %74 {strides = array<i32>} : memref<8x16x1152xbf16, #tpu.memory_space<vmem>>, vector<8x16x128xbf16>,
    %c2_i32_75 = arith.constant 2 : i32
    %76 = arith.addi %1, %c2_i32_75 : i32
    %c-2_i32_76 = arith.constant -2 : i32
    %77 = arith.addi %76, %c-2_i32_76 : i32
    %c0_77 = arith.constant 0 : index
    %78 = arith.index_cast %77 : i32 to index
    %c2_78 = arith.constant 2 : index
    %c0_79 = arith.constant 0 : index
    %79 = vector.load %arg2[%c0_77, %78, %c2_78, %c0_79] : memref<1x20x20x128xbf16, #tpu.memory_space<vmem>>, vector<1x8x16x128xbf16>
    %80 = vector.shape_cast %79 : vector<1x8x16x128xbf16> to vector<8x16x128xbf16>
    %c0_80 = arith.constant 0 : index
    %c0_81 = arith.constant 0 : index
    %c128_82 = arith.constant 128 : index
    %81 = vector.load %arg7[%c0_80, %c0_81, %c128_82] : memref<8x16x1152xbf16, #tpu.memory_space<vmem>>, vector<8x16x128xbf16>
    tpu.vector_store %arg7[%c0_80, %c0_81, %c128_82], %80 {strides = array<i32>} : memref<8x16x1152xbf16, #tpu.memory_space<vmem>>, vector<8x16x128xbf16>,
    %c2_i32_83 = arith.constant 2 : i32
    %82 = arith.addi %1, %c2_i32_83 : i32
    %c-2_i32_84 = arith.constant -2 : i32
    %83 = arith.addi %82, %c-2_i32_84 : i32
    %c0_85 = arith.constant 0 : index
    %84 = arith.index_cast %83 : i32 to index
    %c4 = arith.constant 4 : index
    %c0_86 = arith.constant 0 : index
    %85 = vector.load %arg2[%c0_85, %84, %c4, %c0_86] : memref<1x20x20x128xbf16, #tpu.memory_space<vmem>>, vector<1x8x16x128xbf16>
    %86 = vector.shape_cast %85 : vector<1x8x16x128xbf16> to vector<8x16x128xbf16>
    %c0_87 = arith.constant 0 : index
    %c0_88 = arith.constant 0 : index
    %c256_89 = arith.constant 256 : index
    %87 = vector.load %arg7[%c0_87, %c0_88, %c256_89] : memref<8x16x1152xbf16, #tpu.memory_space<vmem>>, vector<8x16x128xbf16>
    tpu.vector_store %arg7[%c0_87, %c0_88, %c256_89], %86 {strides = array<i32>} : memref<8x16x1152xbf16, #tpu.memory_space<vmem>>, vector<8x16x128xbf16>,
    %c2_i32_90 = arith.constant 2 : i32
    %88 = arith.addi %1, %c2_i32_90 : i32
    %c0_i32_91 = arith.constant 0 : i32
    %89 = arith.addi %88, %c0_i32_91 : i32
    %c0_92 = arith.constant 0 : index
    %90 = arith.index_cast %89 : i32 to index
    %c0_93 = arith.constant 0 : index
    %c0_94 = arith.constant 0 : index
    %91 = vector.load %arg2[%c0_92, %90, %c0_93, %c0_94] : memref<1x20x20x128xbf16, #tpu.memory_space<vmem>>, vector<1x8x16x128xbf16>
    %92 = vector.shape_cast %91 : vector<1x8x16x128xbf16> to vector<8x16x128xbf16>
    %c0_95 = arith.constant 0 : index
    %c0_96 = arith.constant 0 : index
    %c384_97 = arith.constant 384 : index
    %93 = vector.load %arg7[%c0_95, %c0_96, %c384_97] : memref<8x16x1152xbf16, #tpu.memory_space<vmem>>, vector<8x16x128xbf16>
    tpu.vector_store %arg7[%c0_95, %c0_96, %c384_97], %92 {strides = array<i32>} : memref<8x16x1152xbf16, #tpu.memory_space<vmem>>, vector<8x16x128xbf16>,
    %c2_i32_98 = arith.constant 2 : i32
    %94 = arith.addi %1, %c2_i32_98 : i32
    %c0_i32_99 = arith.constant 0 : i32
    %95 = arith.addi %94, %c0_i32_99 : i32
    %c0_100 = arith.constant 0 : index
    %96 = arith.index_cast %95 : i32 to index
    %c4_101 = arith.constant 4 : index
    %c0_102 = arith.constant 0 : index
    %97 = vector.load %arg2[%c0_100, %96, %c4_101, %c0_102] : memref<1x20x20x128xbf16, #tpu.memory_space<vmem>>, vector<1x8x16x128xbf16>
    %98 = vector.shape_cast %97 : vector<1x8x16x128xbf16> to vector<8x16x128xbf16>
    %c0_103 = arith.constant 0 : index
    %c0_104 = arith.constant 0 : index
    %c640_105 = arith.constant 640 : index
    %99 = vector.load %arg7[%c0_103, %c0_104, %c640_105] : memref<8x16x1152xbf16, #tpu.memory_space<vmem>>, vector<8x16x128xbf16>
    tpu.vector_store %arg7[%c0_103, %c0_104, %c640_105], %98 {strides = array<i32>} : memref<8x16x1152xbf16, #tpu.memory_space<vmem>>, vector<8x16x128xbf16>,
    %c2_i32_106 = arith.constant 2 : i32
    %100 = arith.addi %1, %c2_i32_106 : i32
    %c2_i32_107 = arith.constant 2 : i32
    %101 = arith.addi %100, %c2_i32_107 : i32
    %c0_108 = arith.constant 0 : index
    %102 = arith.index_cast %101 : i32 to index
    %c0_109 = arith.constant 0 : index
    %c0_110 = arith.constant 0 : index
    %103 = vector.load %arg2[%c0_108, %102, %c0_109, %c0_110] : memref<1x20x20x128xbf16, #tpu.memory_space<vmem>>, vector<1x8x16x128xbf16>
    %104 = vector.shape_cast %103 : vector<1x8x16x128xbf16> to vector<8x16x128xbf16>
    %c0_111 = arith.constant 0 : index
    %c0_112 = arith.constant 0 : index
    %c768_113 = arith.constant 768 : index
    %105 = vector.load %arg7[%c0_111, %c0_112, %c768_113] : memref<8x16x1152xbf16, #tpu.memory_space<vmem>>, vector<8x16x128xbf16>
    tpu.vector_store %arg7[%c0_111, %c0_112, %c768_113], %104 {strides = array<i32>} : memref<8x16x1152xbf16, #tpu.memory_space<vmem>>, vector<8x16x128xbf16>,
    %c2_i32_114 = arith.constant 2 : i32
    %106 = arith.addi %1, %c2_i32_114 : i32
    %c2_i32_115 = arith.constant 2 : i32
    %107 = arith.addi %106, %c2_i32_115 : i32
    %c0_116 = arith.constant 0 : index
    %108 = arith.index_cast %107 : i32 to index
    %c2_117 = arith.constant 2 : index
    %c0_118 = arith.constant 0 : index
    %109 = vector.load %arg2[%c0_116, %108, %c2_117, %c0_118] : memref<1x20x20x128xbf16, #tpu.memory_space<vmem>>, vector<1x8x16x128xbf16>
    %110 = vector.shape_cast %109 : vector<1x8x16x128xbf16> to vector<8x16x128xbf16>
    %c0_119 = arith.constant 0 : index
    %c0_120 = arith.constant 0 : index
    %c896_121 = arith.constant 896 : index
    %111 = vector.load %arg7[%c0_119, %c0_120, %c896_121] : memref<8x16x1152xbf16, #tpu.memory_space<vmem>>, vector<8x16x128xbf16>
    tpu.vector_store %arg7[%c0_119, %c0_120, %c896_121], %110 {strides = array<i32>} : memref<8x16x1152xbf16, #tpu.memory_space<vmem>>, vector<8x16x128xbf16>,
    %c2_i32_122 = arith.constant 2 : i32
    %112 = arith.addi %1, %c2_i32_122 : i32
    %c2_i32_123 = arith.constant 2 : i32
    %113 = arith.addi %112, %c2_i32_123 : i32
    %c0_124 = arith.constant 0 : index
    %114 = arith.index_cast %113 : i32 to index
    %c4_125 = arith.constant 4 : index
    %c0_126 = arith.constant 0 : index
    %115 = vector.load %arg2[%c0_124, %114, %c4_125, %c0_126] : memref<1x20x20x128xbf16, #tpu.memory_space<vmem>>, vector<1x8x16x128xbf16>
    %116 = vector.shape_cast %115 : vector<1x8x16x128xbf16> to vector<8x16x128xbf16>
    %c0_127 = arith.constant 0 : index
    %c0_128 = arith.constant 0 : index
    %c1024_129 = arith.constant 1024 : index
    %117 = vector.load %arg7[%c0_127, %c0_128, %c1024_129] : memref<8x16x1152xbf16, #tpu.memory_space<vmem>>, vector<8x16x128xbf16>
    tpu.vector_store %arg7[%c0_127, %c0_128, %c1024_129], %116 {strides = array<i32>} : memref<8x16x1152xbf16, #tpu.memory_space<vmem>>, vector<8x16x128xbf16>,
    %c0_130 = arith.constant 0 : index
    %c0_131 = arith.constant 0 : index
    %c0_132 = arith.constant 0 : index
    %118 = vector.load %arg7[%c0_130, %c0_131, %c0_132] : memref<8x16x1152xbf16, #tpu.memory_space<vmem>>, vector<8x16x1152xbf16>
    %119 = vector.shape_cast %118 : vector<8x16x1152xbf16> to vector<128x1152xbf16>
    %c1_133 = arith.constant 1 : index
    %c0_134 = arith.constant 0 : index
    %c0_135 = arith.constant 0 : index
    %120 = vector.load %arg3[%c1_133, %c0_134, %c0_135] : memref<2x1152x128xbf16, #tpu.memory_space<vmem>>, vector<1x1152x128xbf16>
    %121 = vector.shape_cast %120 : vector<1x1152x128xbf16> to vector<1152x128xbf16>
    %cst_136 = arith.constant dense<0.000000e+00> : vector<128x128xf32>
    %122 = tpu.matmul %119, %121, %cst_136 {dimension_numbers = #tpu.dot_dimension_numbers<[1], [0], [0], [1], [0, 0, 1, 1], [], []>} : vector<128x1152xbf16>, vector<1152x128xbf16>, vector<128x128xf32> -> vector<128x128xf32>
    %c1_137 = arith.constant 1 : index
    %c0_138 = arith.constant 0 : index
    %123 = vector.load %arg4[%c1_137, %c0_138] : memref<2x128xf32, #tpu.memory_space<vmem>>, vector<1x128xf32>
    %124 = vector.broadcast %123 : vector<1x128xf32> to vector<128x128xf32>
    %125 = arith.addf %122, %124 : vector<128x128xf32>
    %126 = vector.shape_cast %125 : vector<128x128xf32> to vector<8x16x128xf32>
    %127 = arith.truncf %126 : vector<8x16x128xf32> to vector<8x16x128xbf16>
    %c1_139 = arith.constant 1 : index
    %c0_140 = arith.constant 0 : index
    %c0_141 = arith.constant 0 : index
    %c0_142 = arith.constant 0 : index
    %128 = vector.load %arg5[%c1_139, %c0_140, %c0_141, %c0_142] : memref<2x8x16x128xbf16, #tpu.memory_space<vmem>>, vector<1x8x16x128xbf16>
    %129 = vector.shape_cast %128 : vector<1x8x16x128xbf16> to vector<8x16x128xbf16>
    %130 = vector.shape_cast %127 : vector<8x16x128xbf16> to vector<1x8x16x128xbf16>
    tpu.vector_store %arg5[%c1_139, %c0_140, %c0_141, %c0_142], %130 {strides = array<i32>} : memref<2x8x16x128xbf16, #tpu.memory_space<vmem>>, vector<1x8x16x128xbf16>,
    %cst_143 = arith.constant dense<0.000000e+00> : vector<128xf32>
    %131 = vector.multi_reduction <add>, %125, %cst_143 [0] : vector<128x128xf32> to vector<128xf32>
    %132 = vector.shape_cast %131 : vector<128xf32> to vector<1x128xf32>
    %133 = arith.addf %69, %132 : vector<1x128xf32>
    %134 = vector.shape_cast %133 : vector<1x128xf32> to vector<1x128xf32>
    %135 = vector.broadcast %134 : vector<1x128xf32> to vector<8x128xf32>
    %c0_144 = arith.constant 0 : index
    %c0_145 = arith.constant 0 : index
    %c0_146 = arith.constant 0 : index
    %c0_147 = arith.constant 0 : index
    %136 = vector.load %arg6[%c0_144, %c0_145, %c0_146, %c0_147] : memref<1x1x8x128xf32, #tpu.memory_space<vmem>>, vector<1x1x8x128xf32>
    %137 = vector.shape_cast %136 : vector<1x1x8x128xf32> to vector<8x128xf32>
    %138 = vector.shape_cast %135 : vector<8x128xf32> to vector<1x1x8x128xf32>
    tpu.vector_store %arg6[%c0_144, %c0_145, %c0_146, %c0_147], %138 {strides = array<i32>} : memref<1x1x8x128xf32, #tpu.memory_space<vmem>>, vector<1x1x8x128xf32>,
    return
  }
  func.func @transform_0(%arg0: i32, %arg1: i32) -> (i32, i32, i32, i32) {
    %c0_i32 = arith.constant 0 : i32
    %c0_i32_0 = arith.constant 0 : i32
    %c0_i32_1 = arith.constant 0 : i32
    %c0_i32_2 = arith.constant 0 : i32
    return %arg0, %c0_i32, %c0_i32_0, %c0_i32_1 : i32, i32, i32, i32
  }
  func.func @transform_1(%arg0: i32, %arg1: i32) -> (i32, i32, i32) {
    %c0_i32 = arith.constant 0 : i32
    %c0_i32_0 = arith.constant 0 : i32
    %c0_i32_1 = arith.constant 0 : i32
    %c0_i32_2 = arith.constant 0 : i32
    return %c0_i32, %c0_i32_0, %c0_i32_1 : i32, i32, i32
  }
  func.func @transform_2(%arg0: i32, %arg1: i32) -> (i32, i32) {
    %c0_i32 = arith.constant 0 : i32
    %c0_i32_0 = arith.constant 0 : i32
    %c0_i32_1 = arith.constant 0 : i32
    return %c0_i32, %c0_i32_0 : i32, i32
  }
  func.func @transform_3(%arg0: i32, %arg1: i32) -> (i32, i32, i32, i32) {
    %c0_i32 = arith.constant 0 : i32
    %c0_i32_0 = arith.constant 0 : i32
    %c0_i32_1 = arith.constant 0 : i32
    return %arg0, %arg1, %c0_i32, %c0_i32_0 : i32, i32, i32, i32
  }
  func.func @transform_4(%arg0: i32, %arg1: i32) -> (i32, i32, i32, i32) {
    %c0_i32 = arith.constant 0 : i32
    %c0_i32_0 = arith.constant 0 : i32
    %c0_i32_1 = arith.constant 0 : i32
    return %arg0, %arg1, %c0_i32, %c0_i32_0 : i32, i32, i32, i32
  }
}

module attributes {stable_mosaic.version = 11 : i64} {
  func.func @_apply_attention_kernel(%arg0: i32, %arg1: i32, %arg2: memref<1x2x128xf32, #tpu.memory_space<vmem>>, %arg3: memref<2x8x16x128xbf16, #tpu.memory_space<vmem>>, %arg4: memref<1x8x16x128xf32, #tpu.memory_space<vmem>>) attributes {dimension_semantics = [#tpu.dimension_semantics<parallel>, #tpu.dimension_semantics<parallel>], iteration_bounds = array<i64: 2, 2>, scalar_prefetch = 0 : i64, scratch_operands = 0 : i64, tpu.core_type = #tpu.core_type<tc>, window_params = [{transform_indices = @transform_0, window_bounds = array<i64: 1, 2, 128>}, {transform_indices = @transform_1, window_bounds = array<i64: 2, 8, 16, 128>}, {transform_indices = @transform_2, window_bounds = array<i64: 1, 8, 16, 128>}]} {
    %c0 = arith.constant 0 : index
    %c0_0 = arith.constant 0 : index
    %c0_1 = arith.constant 0 : index
    %0 = vector.load %arg2[%c0, %c0_0, %c0_1] : memref<1x2x128xf32, #tpu.memory_space<vmem>>, vector<1x1x128xf32>
    %1 = vector.shape_cast %0 : vector<1x1x128xf32> to vector<1x128xf32>
    %2 = vector.shape_cast %1 : vector<1x128xf32> to vector<1x1x128xf32>
    %c0_2 = arith.constant 0 : index
    %c0_3 = arith.constant 0 : index
    %c0_4 = arith.constant 0 : index
    %c0_5 = arith.constant 0 : index
    %3 = vector.load %arg3[%c0_2, %c0_3, %c0_4, %c0_5] : memref<2x8x16x128xbf16, #tpu.memory_space<vmem>>, vector<1x8x16x128xbf16>
    %4 = vector.shape_cast %3 : vector<1x8x16x128xbf16> to vector<8x16x128xbf16>
    %5 = arith.extf %4 : vector<8x16x128xbf16> to vector<8x16x128xf32>
    %6 = vector.broadcast %2 : vector<1x1x128xf32> to vector<8x16x128xf32>
    %7 = arith.mulf %6, %5 : vector<8x16x128xf32>
    %c0_6 = arith.constant 0 : index
    %c0_7 = arith.constant 0 : index
    %c0_8 = arith.constant 0 : index
    %c0_9 = arith.constant 0 : index
    %8 = vector.load %arg4[%c0_6, %c0_7, %c0_8, %c0_9] : memref<1x8x16x128xf32, #tpu.memory_space<vmem>>, vector<1x8x16x128xf32>
    %9 = vector.shape_cast %8 : vector<1x8x16x128xf32> to vector<8x16x128xf32>
    %10 = vector.shape_cast %7 : vector<8x16x128xf32> to vector<1x8x16x128xf32>
    tpu.vector_store %arg4[%c0_6, %c0_7, %c0_8, %c0_9], %10 {strides = array<i32>} : memref<1x8x16x128xf32, #tpu.memory_space<vmem>>, vector<1x8x16x128xf32>,
    %c0_10 = arith.constant 0 : index
    %c1 = arith.constant 1 : index
    %c0_11 = arith.constant 0 : index
    %11 = vector.load %arg2[%c0_10, %c1, %c0_11] : memref<1x2x128xf32, #tpu.memory_space<vmem>>, vector<1x1x128xf32>
    %12 = vector.shape_cast %11 : vector<1x1x128xf32> to vector<1x128xf32>
    %13 = vector.shape_cast %12 : vector<1x128xf32> to vector<1x1x128xf32>
    %c0_12 = arith.constant 0 : index
    %c0_13 = arith.constant 0 : index
    %c0_14 = arith.constant 0 : index
    %c0_15 = arith.constant 0 : index
    %14 = vector.load %arg4[%c0_12, %c0_13, %c0_14, %c0_15] : memref<1x8x16x128xf32, #tpu.memory_space<vmem>>, vector<1x8x16x128xf32>
    %15 = vector.shape_cast %14 : vector<1x8x16x128xf32> to vector<8x16x128xf32>
    %c1_16 = arith.constant 1 : index
    %c0_17 = arith.constant 0 : index
    %c0_18 = arith.constant 0 : index
    %c0_19 = arith.constant 0 : index
    %16 = vector.load %arg3[%c1_16, %c0_17, %c0_18, %c0_19] : memref<2x8x16x128xbf16, #tpu.memory_space<vmem>>, vector<1x8x16x128xbf16>
    %17 = vector.shape_cast %16 : vector<1x8x16x128xbf16> to vector<8x16x128xbf16>
    %18 = arith.extf %17 : vector<8x16x128xbf16> to vector<8x16x128xf32>
    %19 = vector.broadcast %13 : vector<1x1x128xf32> to vector<8x16x128xf32>
    %20 = arith.mulf %19, %18 : vector<8x16x128xf32>
    %21 = arith.addf %15, %20 : vector<8x16x128xf32>
    %c0_20 = arith.constant 0 : index
    %c0_21 = arith.constant 0 : index
    %c0_22 = arith.constant 0 : index
    %c0_23 = arith.constant 0 : index
    %22 = vector.load %arg4[%c0_20, %c0_21, %c0_22, %c0_23] : memref<1x8x16x128xf32, #tpu.memory_space<vmem>>, vector<1x8x16x128xf32>
    %23 = vector.shape_cast %22 : vector<1x8x16x128xf32> to vector<8x16x128xf32>
    %24 = vector.shape_cast %21 : vector<8x16x128xf32> to vector<1x8x16x128xf32>
    tpu.vector_store %arg4[%c0_20, %c0_21, %c0_22, %c0_23], %24 {strides = array<i32>} : memref<1x8x16x128xf32, #tpu.memory_space<vmem>>, vector<1x8x16x128xf32>,
    return
  }
  func.func @transform_0(%arg0: i32, %arg1: i32) -> (i32, i32, i32) {
    %c0_i32 = arith.constant 0 : i32
    %c0_i32_0 = arith.constant 0 : i32
    %c0_i32_1 = arith.constant 0 : i32
    return %arg0, %c0_i32, %c0_i32_0 : i32, i32, i32
  }
  func.func @transform_1(%arg0: i32, %arg1: i32) -> (i32, i32, i32, i32) {
    %c0_i32 = arith.constant 0 : i32
    %c0_i32_0 = arith.constant 0 : i32
    %c0_i32_1 = arith.constant 0 : i32
    return %arg0, %arg1, %c0_i32, %c0_i32_0 : i32, i32, i32, i32
  }
  func.func @transform_2(%arg0: i32, %arg1: i32) -> (i32, i32, i32, i32) {
    %c0_i32 = arith.constant 0 : i32
    %c0_i32_0 = arith.constant 0 : i32
    %c0_i32_1 = arith.constant 0 : i32
    return %arg0, %arg1, %c0_i32, %c0_i32_0 : i32, i32, i32, i32
  }
}

</mosaic_0001>

<bundles_post_ra>
// kernel: skconv2d_pallas.3
= control target key start
LH: loop header
LB: loop body
LE: loop exit
PB: predicated region body
PF: predicated region fallthrough
CT: control target
= control target key end

     0   :  { %s883_s9 = smov 0   ;;  %s885_s10 = smov 0   ;;  %s1089_s0 = inlined_call_operand.vmem [shape: f32[2,2,128], index: 0, kind: input, shape index: {}]   ;;  %s1090_s1 = inlined_call_operand.vmem [shape: bf16[4,16,16,128], index: 1, kind: input, shape index: {}]   ;;  %s1091_s2 = inlined_call_operand.vmem [shape: f32[2,16,16,128], index: 2, kind: output, shape index: {}]  }
   0x1   :  { %s887_s11 = smov 0   ;;  %s889_s12 = smov 0  }
   0x2   :  { %s891_s13 = smov 0   ;;  %s893_s14 = smov 0  }
   0x3   :  { %s895_s15 = smov 0  }
   0x4 LB: > { %s21_s16 = sadd.s32 1, %s858_s13  ;;  %s24_s17 = sadd.s32 1, %s862_s14  ;;  %s866_s15 = sphi %s895_s15, %s12_s15   ;;  %s862_s14 = sphi %s893_s14, %s1097_s14   ;;  %s858_s13 = sphi %s891_s13, %s1096_s13   ;;  %s854_s12 = sphi %s889_s12, %s1095_s12   ;;  %s850_s11 = sphi %s887_s11, %s1094_s11   ;;  %s846_s10 = sphi %s885_s10, %s1093_s10   ;;  %s842_s9 = sphi %s883_s9, %s1092_s9  }
   0x5   : > { %p22_p0 = scmp.ge.s32.totalorder %s21_s16, 2  ;;  %p66_p1 = scmp.ne.s32.totalorder %s846_s10, %s842_s9 }
   0x6   : > { %p67_p2 = scmp.eq.s32.totalorder %s866_s15, 0  ;;  %s59_s21 = sadd.s32 1, %s846_s10 }
   0x7   : > { %s1099_s16 = smov (%p22_p0, %s21_s16), 0  ;;  %s1101_s17 = smov (!%p22_p0, %s24_s17), %s862_s14 }
   0x8   : > { %p68_p3 = por %p67_p2, %p66_p1  ;;  %p26_p4 = scmp.ge.s32.totalorder %s1101_s17, 2 }
   0x9   : > { %s55_s18 = ssub.s32 %s858_s13, %s1099_s16  ;;  %p641_p6 = scmp.ge.s32.totalorder %s866_s15, 4 }
   0xa   : > { %s1103_s17 = smov (%p26_p4, %s1101_s17), 0 }
   0xb   : > { %s54_s19 = ssub.s32 %s862_s14, %s1103_s17  ;;  %120 = sbr.rel (%p641_p6) target bundleno = 39 (0x27), region = 16 }
   0xc   : > { %s56_s20 = sor.u32 %s55_s18, %s54_s19 }
   0xd   : > { %p57_p5 = scmp.eq.s32.totalorder %s56_s20, 0 }
   0xf   : > { %s934_s22 = scalar_select %p57_p5, %s846_s10, %s59_s21  }
  0x10   : > { %130 = sbr.rel (!%p68_p3) target bundleno = 39 (0x27), region = 24  ;;  %s132_s23 = sand.u32 (%p68_p3), 1, %s846_s10  }
  0x11   : > { %s673_s24 = sshll.u32 (%p68_p3), %s858_s13, 4  ;;  %s642_s25 = sshll.u32 (%p68_p3), %s132_s23, 7 }
  0x12   : > { %s674_s26 = sshll.u32 (%p68_p3), %s862_s14, 6  ;;  %s134_s4 = scalar_lea.vmem (%p68_p3), [#allocation2], %s642_s25 }
  0x13   : > { %s139_s27 = sadd.s32 (%p68_p3), %s674_s26, %s673_s24 }
  0x14   : > { %s647_s28 = sshll.u32 (%p68_p3), %s139_s27, 2 }
  0x15   : > { %s943_s3 = scalar_lea.vmem %s1090_s1, %s647_s28 }
  0x16   : > { %v158_v0 = vld [vmem:[%s943_s3] sm:$0xff]   ;;  %v162_v1 = vld [vmem:[%s943_s3 + $0x8] sm:$0xff]   ;;  %v166_v2 = vld [vmem:[%s943_s3 + $0x10] sm:$0xff]  }
  0x17   : > { %159 = vst [vmem:[%s134_s4] sm:$0xff] %v158_v0   ;;  %v170_v3 = vld [vmem:[%s943_s3 + $0x18] sm:$0xff]   ;;  %v174_v4 = vld [vmem:[%s943_s3 + $0x20] sm:$0xff]   ;;  %v178_v5 = vld [vmem:[%s943_s3 + $0x28] sm:$0xff]  }
  0x18   : > { %163 = vst [vmem:[%s134_s4 + $0x8] sm:$0xff] %v162_v1   ;;  %v182_v6 = vld [vmem:[%s943_s3 + $0x30] sm:$0xff]   ;;  %v186_v7 = vld [vmem:[%s943_s3 + $0x38] sm:$0xff]   ;;  %v190_v8 = vld [vmem:[%s943_s3 + $0x80] sm:$0xff]  }
  0x19   : > { %167 = vst [vmem:[%s134_s4 + $0x10] sm:$0xff] %v166_v2   ;;  %v194_v9 = vld [vmem:[%s943_s3 + $0x88] sm:$0xff]   ;;  %v198_v10 = vld [vmem:[%s943_s3 + $0x90] sm:$0xff]   ;;  %v202_v11 = vld [vmem:[%s943_s3 + $0x98] sm:$0xff]  }
  0x1a   : > { %171 = vst [vmem:[%s134_s4 + $0x18] sm:$0xff] %v170_v3   ;;  %v206_v12 = vld [vmem:[%s943_s3 + $0xa0] sm:$0xff]   ;;  %v210_v13 = vld [vmem:[%s943_s3 + $0xa8] sm:$0xff]   ;;  %v214_v14 = vld [vmem:[%s943_s3 + $0xb0] sm:$0xff]  }
  0x1b   : > { %175 = vst [vmem:[%s134_s4 + $0x20] sm:$0xff] %v174_v4   ;;  %v218_v15 = vld [vmem:[%s943_s3 + $0xb8] sm:$0xff]  }
  0x1c   : > { %179 = vst [vmem:[%s134_s4 + $0x28] sm:$0xff] %v178_v5  }
  0x1d   : > { %183 = vst [vmem:[%s134_s4 + $0x30] sm:$0xff] %v182_v6  }
  0x1e   : > { %187 = vst [vmem:[%s134_s4 + $0x38] sm:$0xff] %v186_v7  }
  0x1f   : > { %191 = vst [vmem:[%s134_s4 + $0x40] sm:$0xff] %v190_v8  }
  0x20   : > { %195 = vst [vmem:[%s134_s4 + $0x48] sm:$0xff] %v194_v9  }
  0x21   : > { %199 = vst [vmem:[%s134_s4 + $0x50] sm:$0xff] %v198_v10  }
  0x22   : > { %203 = vst [vmem:[%s134_s4 + $0x58] sm:$0xff] %v202_v11  }
  0x23   : > { %207 = vst [vmem:[%s134_s4 + $0x60] sm:$0xff] %v206_v12  }
  0x24   : > { %211 = vst [vmem:[%s134_s4 + $0x68] sm:$0xff] %v210_v13  }
  0x25   : > { %215 = vst [vmem:[%s134_s4 + $0x70] sm:$0xff] %v214_v14  }
  0x26   : > { %219 = vst [vmem:[%s134_s4 + $0x78] sm:$0xff] %v218_v15  }
  0x27 PF: > { %p648_p7 = scmp.ge.s32.totalorder %s866_s15, 1  ;;  %p308_p8 = scmp.lt.s32.totalorder %s866_s15, 5 }
  0x29   : > { %p309_p9 = pnand %p648_p7, %p308_p8 }
  0x2a   : > { %s315_s5 = sand.u32 (!%p309_p9), 1, %s842_s9   ;;  %p345_p10 = scmp.lt.s32.totalorder (!%p309_p9), %s854_s12, 1 }
  0x2b   : > { %312 = sbr.rel (%p309_p9) target bundleno = 77 (0x4d), region = 65  ;;  %s649_s6 = sshll.u32 (!%p309_p9), %s315_s5, 7 }
  0x2c   : > { %s651_s7 = sshll.u32 (!%p309_p9), %s850_s11, 3  ;;  %s969_s8 = scalar_lea.vmem (!%p309_p9), [#allocation2], %s649_s6 }
  0x2d   : > { %p354_p11 = scmp.lt.s32.totalorder (!%p309_p9), %s651_s7, 15 }
  0x30   : > { %s1105_s12 = smov (!%p345_p10, %s854_s12), 1  ;;  %v676_v16 = vld [vmem:[%s969_s8] sm:$0xff]   ;;  %v739_v17 = vld [vmem:[%s969_s8 + $0x8] sm:$0xff]   ;;  %v740_v18 = vld [vmem:[%s969_s8 + $0x10] sm:$0xff]   ;;  %s1107_s7 = smov (!%p354_p11, %s651_s7), 15 }
  0x31   : > { %v741_v19 = vld [vmem:[%s969_s8 + $0x18] sm:$0xff]   ;;  %v742_v20 = vld [vmem:[%s969_s8 + $0x20] sm:$0xff]   ;;  %v743_v21 = vld [vmem:[%s969_s8 + $0x28] sm:$0xff]   ;;  %s650_s9 = sshll.u32 %s1105_s12, 1  ;;  %s653_s11 = sshll.u32 %s1105_s12, 5  ;;  %v677_v22 = vunpack.c.l.bf16 %v676_v16  ;;  %v678_v23 = vunpack.c.h.bf16 %v676_v16  ;;  %v681_v24 = vunpack.c.l.bf16 %v739_v17  ;;  %v682_v25 = vunpack.c.h.bf16 %v739_v17 }
  0x32   : > { %v980_v26 = vld [vmem:[%s969_s8 + $0x30] sm:$0xff]   ;;  %v983_v27 = vld [vmem:[%s969_s8 + $0x38] sm:$0xff]   ;;  %s348_s20 = scalar_lea.vmem %s1089_s0, %s650_s9  ;;  %s652_s21 = sshll.u32 %s1107_s7, 1  ;;  %v685_v28 = vunpack.c.l.bf16 %v740_v18  ;;  %v686_v29 = vunpack.c.h.bf16 %v740_v18  ;;  %v689_v30 = vunpack.c.l.bf16 %v741_v19  ;;  %v690_v31 = vunpack.c.h.bf16 %v741_v19  ;;  %v746_v32 = vld [vmem:[%s969_s8 + $0x40] sm:$0xff]  }
  0x33   : > { %v747_v33 = vld [vmem:[%s969_s8 + $0x48] sm:$0xff]   ;;  %v990_v34 = vld [vmem:[%s348_s20] ss:$0 sm:$0xff]  ;;  %v693_v35 = vunpack.c.l.bf16 %v742_v20  ;;  %v694_v36 = vunpack.c.h.bf16 %v742_v20  ;;  %v697_v37 = vunpack.c.l.bf16 %v743_v21  ;;  %v698_v38 = vunpack.c.h.bf16 %v743_v21  ;;  %s992_s12 = sadd.s32 %s653_s11, %s652_s21  ;;  %v998_v43 = vld [vmem:[%s348_s20 + $0x1] ss:$0 sm:$0xff] }
  0x34   : > { %v701_v39 = vunpack.c.l.bf16 %v980_v26  ;;  %v702_v40 = vunpack.c.h.bf16 %v980_v26  ;;  %v705_v41 = vunpack.c.l.bf16 %v983_v27  ;;  %v706_v42 = vunpack.c.h.bf16 %v983_v27  ;;  %s654_s23 = sshll.u32 %s992_s12, 3  ;;  %v748_v56 = vld [vmem:[%s969_s8 + $0x50] sm:$0xff]   ;;  %v749_v57 = vld [vmem:[%s969_s8 + $0x58] sm:$0xff]   ;;  %v750_v6 = vld [vmem:[%s969_s8 + $0x60] sm:$0xff]  }
  0x35   : > { %v709_v44 = vunpack.c.l.bf16 %v746_v32  ;;  %v710_v45 = vunpack.c.h.bf16 %v746_v32  ;;  %v713_v46 = vunpack.c.l.bf16 %v747_v33  ;;  %v714_v47 = vunpack.c.h.bf16 %v747_v33  ;;  %s1022_s26 = scalar_lea.vmem %s1091_s2, %s654_s23  ;;  %v751_v7 = vld [vmem:[%s969_s8 + $0x68] sm:$0xff]   ;;  %v752_v20 = vld [vmem:[%s969_s8 + $0x70] sm:$0xff]   ;;  %v753_v21 = vld [vmem:[%s969_s8 + $0x78] sm:$0xff]  }
  0x36   : > { %v396_v48 = vmul.f32 %v990_v34, %v677_v22  ;;  %v397_v49 = vmul.f32 %v990_v34, %v678_v23  ;;  %v398_v50 = vmul.f32 %v990_v34, %v681_v24  ;;  %v399_v51 = vmul.f32 %v990_v34, %v682_v25 }
  0x37   : > { %v400_v52 = vmul.f32 %v990_v34, %v685_v28  ;;  %v401_v53 = vmul.f32 %v990_v34, %v686_v29  ;;  %v402_v54 = vmul.f32 %v990_v34, %v689_v30  ;;  %v403_v55 = vmul.f32 %v990_v34, %v690_v31 }
  0x38   : > { %v404_v58 = vmul.f32 %v990_v34, %v693_v35  ;;  %v405_v59 = vmul.f32 %v990_v34, %v694_v36  ;;  %v406_v60 = vmul.f32 %v990_v34, %v697_v37  ;;  %v407_v61 = vmul.f32 %v990_v34, %v698_v38 }
  0x39   : > { %v479_v62 = vmul.f32 %v998_v43, %v709_v44  ;;  %v480_v63 = vmul.f32 %v998_v43, %v710_v45  ;;  %v481_v0 = vmul.f32 %v998_v43, %v713_v46  ;;  %v482_v1 = vmul.f32 %v998_v43, %v714_v47 }
  0x3a   : > { %v717_v2 = vunpack.c.l.bf16 %v748_v56  ;;  %v718_v3 = vunpack.c.h.bf16 %v748_v56  ;;  %v721_v4 = vunpack.c.l.bf16 %v749_v57  ;;  %v722_v5 = vunpack.c.h.bf16 %v749_v57 }
  0x3b   : > { %v495_v8 = vadd.f32 %v479_v62, %v396_v48  ;;  %v496_v9 = vadd.f32 %v480_v63, %v397_v49  ;;  %v497_v10 = vadd.f32 %v481_v0, %v398_v50  ;;  %v498_v11 = vadd.f32 %v482_v1, %v399_v51 }
  0x3c   : > { %v483_v12 = vmul.f32 %v998_v43, %v717_v2  ;;  %v484_v13 = vmul.f32 %v998_v43, %v718_v3  ;;  %v485_v14 = vmul.f32 %v998_v43, %v721_v4  ;;  %v486_v15 = vmul.f32 %v998_v43, %v722_v5 }
  0x3d   : > { %511 = vst [vmem:[%s1022_s26] sm:$0xff] %v495_v8  ;;  %v725_v16 = vunpack.c.l.bf16 %v750_v6  ;;  %v726_v17 = vunpack.c.h.bf16 %v750_v6  ;;  %v729_v18 = vunpack.c.l.bf16 %v751_v7  ;;  %v730_v19 = vunpack.c.h.bf16 %v751_v7 }
  0x3e   : > { %512 = vst [vmem:[%s1022_s26 + $0x8] sm:$0xff] %v496_v9  ;;  %v499_v22 = vadd.f32 %v483_v12, %v400_v52  ;;  %v500_v23 = vadd.f32 %v484_v13, %v401_v53  ;;  %v501_v24 = vadd.f32 %v485_v14, %v402_v54  ;;  %v502_v25 = vadd.f32 %v486_v15, %v403_v55 }
  0x3f   : > { %513 = vst [vmem:[%s1022_s26 + $0x10] sm:$0xff] %v497_v10  ;;  %v487_v28 = vmul.f32 %v998_v43, %v725_v16  ;;  %v488_v29 = vmul.f32 %v998_v43, %v726_v17  ;;  %v489_v30 = vmul.f32 %v998_v43, %v729_v18  ;;  %v490_v31 = vmul.f32 %v998_v43, %v730_v19 }
  0x40   : > { %514 = vst [vmem:[%s1022_s26 + $0x18] sm:$0xff] %v498_v11  ;;  %v733_v32 = vunpack.c.l.bf16 %v752_v20  ;;  %v734_v33 = vunpack.c.h.bf16 %v752_v20  ;;  %v737_v35 = vunpack.c.l.bf16 %v753_v21  ;;  %v738_v36 = vunpack.c.h.bf16 %v753_v21 }
  0x41   : > { %v408_v37 = vmul.f32 %v990_v34, %v701_v39  ;;  %515 = vst [vmem:[%s1022_s26 + $0x20] sm:$0xff] %v499_v22  ;;  %v503_v38 = vadd.f32 %v487_v28, %v404_v58  ;;  %v409_v44 = vmul.f32 %v990_v34, %v702_v40  ;;  %v504_v45 = vadd.f32 %v488_v29, %v405_v59 }
  0x42   : > { %516 = vst [vmem:[%s1022_s26 + $0x28] sm:$0xff] %v500_v23  ;;  %v491_v46 = vmul.f32 %v998_v43, %v733_v32  ;;  %v492_v47 = vmul.f32 %v998_v43, %v734_v33  ;;  %v410_v39 = vmul.f32 %v990_v34, %v705_v41  ;;  %v505_v48 = vadd.f32 %v489_v30, %v406_v60 }
  0x43   : > { %517 = vst [vmem:[%s1022_s26 + $0x30] sm:$0xff] %v501_v24  ;;  %v493_v26 = vmul.f32 %v998_v43, %v737_v35  ;;  %v411_v40 = vmul.f32 %v990_v34, %v706_v42  ;;  %v506_v49 = vadd.f32 %v490_v31, %v407_v61  ;;  %v494_v50 = vmul.f32 %v998_v43, %v738_v36 }
  0x44   : > { %518 = vst [vmem:[%s1022_s26 + $0x38] sm:$0xff] %v502_v25  ;;  %v507_v51 = vadd.f32 %v491_v46, %v408_v37  ;;  %v508_v41 = vadd.f32 %v492_v47, %v409_v44 }
  0x45   : > { %519 = vst [vmem:[%s1022_s26 + $0x40] sm:$0xff] %v503_v38  ;;  %v509_v52 = vadd.f32 %v493_v26, %v410_v39  ;;  %v510_v53 = vadd.f32 %v494_v50, %v411_v40 }
  0x46   : > { %520 = vst [vmem:[%s1022_s26 + $0x48] sm:$0xff] %v504_v45 }
  0x47   : > { %521 = vst [vmem:[%s1022_s26 + $0x50] sm:$0xff] %v505_v48 }
  0x48   : > { %522 = vst [vmem:[%s1022_s26 + $0x58] sm:$0xff] %v506_v49 }
  0x49   : > { %523 = vst [vmem:[%s1022_s26 + $0x60] sm:$0xff] %v507_v51 }
  0x4a   : > { %524 = vst [vmem:[%s1022_s26 + $0x68] sm:$0xff] %v508_v41 }
  0x4b   : > { %525 = vst [vmem:[%s1022_s26 + $0x70] sm:$0xff] %v509_v52 }
  0x4c   : > { %526 = vst [vmem:[%s1022_s26 + $0x78] sm:$0xff] %v510_v53 }
  0x4d PF: > { %s12_s15 = sadd.s32 1, %s866_s15   ;;  %s1092_s9 = smov %s846_s10 }
  0x4e   : > { %p9_p12 = scmp.ge.s32.totalorder %s12_s15, 6   ;;  %s1093_s10 = smov %s934_s22 }
  0x4f   : > { %s1094_s11 = smov %s858_s13  ;;  %s1095_s12 = smov %s862_s14 }
  0x50   : > { %s1096_s13 = smov %s1099_s16  ;;  %s1097_s14 = smov %s1103_s17 }
  0x51   :  { %11 = sbr.rel (!%p9_p12) target bundleno = 4 (0x4), region = 108 }

// kernel: skconv2d_pallas.2
= control target key start
LH: loop header
LB: loop body
LE: loop exit
PB: predicated region body
PF: predicated region fallthrough
CT: control target
= control target key end

     0   :  { %s8649_s15 = smov 0   ;;  %s8651_s16 = smov 0   ;;  %s10600_s0 = inlined_call_operand.vmem [shape: bf16[2,20,20,128], index: 0, kind: input, shape index: {}]   ;;  %s10601_s1 = inlined_call_operand.vmem [shape: bf16[2,1152,128], index: 1, kind: input, shape index: {}]   ;;  %s10602_s2 = inlined_call_operand.vmem [shape: f32[2,128], index: 2, kind: input, shape index: {}]   ;;  %s10603_s3 = inlined_call_operand.vmem [shape: bf16[4,16,16,128], index: 3, kind: output, shape index: {0}]   ;;  %s10604_s4 = inlined_call_operand.vmem [shape: f32[2,2,8,128], index: 4, kind: output, shape index: {1}]  }
   0x1   :  { %s8653_s17 = smov 0   ;;  %s8655_s18 = smov 0  }
   0x2   :  { %s8657_s19 = smov 0   ;;  %s8659_s20 = smov 0  }
   0x3   :  { %s8661_s21 = smov 0  }
   0x4 LB: > { %s24_s22 = sadd.s32 1, %s8614_s19  ;;  %s27_s23 = sadd.s32 1, %s8618_s20  ;;  %s8622_s21 = sphi %s8661_s21, %s15_s21   ;;  %s8618_s20 = sphi %s8659_s20, %s10663_s20   ;;  %s8614_s19 = sphi %s8657_s19, %s10662_s19   ;;  %s8610_s18 = sphi %s8655_s18, %s10661_s18   ;;  %s8606_s17 = sphi %s8653_s17, %s10660_s17   ;;  %s8602_s16 = sphi %s8651_s16, %s10659_s16   ;;  %s8598_s15 = sphi %s8649_s15, %s10658_s15  }
   0x5   : > { %p25_p0 = scmp.ge.s32.totalorder %s24_s22, 2  ;;  %s6382_s24 = sadd.s32 4294967295, %s8622_s21  }
   0x6   : > { %p114_p1 = scmp.ne.s32.totalorder %s8602_s16, %s8598_s15  ;;  %p115_p2 = scmp.eq.s32.totalorder %s6382_s24, 3 }
   0x7   : > { %s10665_s22 = smov (%p25_p0, %s24_s22), 0  ;;  %s10667_s23 = smov (!%p25_p0, %s27_s23), %s8618_s20 }
   0x8   : > { %s100_s25 = ssub.s32 %s8614_s19, %s10665_s22  ;;  %p29_p3 = scmp.ge.s32.totalorder %s10667_s23, 2 }
   0x9   : > { %p6386_p4 = scmp.ge.s32.totalorder %s8622_s21, 1  ;;  %p8695_p5 = por %p115_p2, %p114_p1 }
   0xa   : > { %p181_p6 = scmp.lt.s32.totalorder %s8622_s21, 5  ;;  %s10669_s23 = smov (%p29_p3, %s10667_s23), 0 }
   0xb   : > { %s99_s27 = ssub.s32 %s8618_s20, %s10669_s23  ;;  %s104_s29 = sadd.s32 1, %s8602_s16 }
   0xc   : > { %p182_p7 = pnand %p6386_p4, %p181_p6  ;;  %s101_s28 = sor.u32 %s100_s25, %s99_s27 }
   0xd   : > { %p102_p8 = scmp.eq.s32.totalorder %s101_s28, 0 }
   0xe   : > { %185 = sbr.rel (%p182_p7) target bundleno = 897 (0x381), region = 32 }
   0xf   : > { %s8706_s30 = scalar_select %p102_p8, %s8602_s16, %s104_s29  }
  0x13   : > { %v8185_v0 = vld [vmem:[%s10601_s1 + $0x38] sm:$0xff]  ;;  %p214_p9 = scmp.lt.s32.totalorder %s8610_s18, 1  ;;  %v8184_v2 = vld [vmem:[%s10601_s1 + $0x30] sm:$0xff]  ;;  %s6393_s14 = smul.u32 96, %s8606_s17  ;;  %v8183_v4 = vld [vmem:[%s10601_s1 + $0x28] sm:$0xff]  ;;  %vm282_vm1 = vcmask 1042432  }
  0x14   : > { %v8193_v1 = vld [vmem:[%s10601_s1 + $0x78] sm:$0xff]  ;;  %8492 = vmatpush.bf16.msra.mxu2 %v8185_v0  ;;  %v8192_v3 = vld [vmem:[%s10601_s1 + $0x70] sm:$0xff]  ;;  %3269 = vmatpush.bf16.msra.mxu0 %v8185_v0  ;;  %v8191_v5 = vld [vmem:[%s10601_s1 + $0x68] sm:$0xff]  ;;  %vm401_vm0 = vsmask.f32 3328  ;;  %vm283_vm2 = vcmask 1046532  }
  0x15   : > { %8500 = vmatpush.bf16.msra.mxu3 %v8193_v1  ;;  %s8722_s13 = scalar_select %p214_p9, %s8610_s18, 1  ;;  %3318 = vmatpush.bf16.msra.mxu1 %v8193_v1  ;;  %v8182_v9 = vld [vmem:[%s10601_s1 + $0x20] sm:$0xff]  ;;  %vm402_vm3 = vsmask.f32 7440  ;;  %vm8749_vm4 = vmor %vm282_vm1, %vm283_vm2  ;;  %v8181_v23 = vld [vmem:[%s10601_s1 + $0x18] sm:$0xff]  ;;  %vm3982_vm8 = vcmask 1041408  }
  0x16   : > { %v8190_v14 = vld [vmem:[%s10601_s1 + $0x60] sm:$0xff]  ;;  %v8189_v33 = vld [vmem:[%s10601_s1 + $0x58] sm:$0xff]  ;;  %vm8765_vm5 = vmor %vm401_vm0, %vm402_vm3  ;;  %vm788_vm6 = vsmask.f32 2304  ;;  %vm789_vm7 = vsmask.f32 6416 }
  0x17   : > { %s8508_s24 = smul.u32 240, %s8722_s13  ;;  %v8180_v41 = vld [vmem:[%s10601_s1 + $0x10] sm:$0xff]  ;;  %v8179_v59 = vld [vmem:[%s10601_s1 + $0x8] sm:$0xff]  ;;  %vm3983_vm9 = vcmask 1045508   ;;  %vm9086_vm10 = vmor %vm788_vm6, %vm789_vm7  ;;  %s201_s10 = sand.u32 1, %s8598_s15  }
  0x18   : > { %8493 = vmatpush.bf16.msra.mxu2 %v8184_v2  ;;  %3270 = vmatpush.bf16.msra.mxu0 %v8184_v2  ;;  %v8188_v42 = vld [vmem:[%s10601_s1 + $0x50] sm:$0xff]  ;;  %v8187_v60 = vld [vmem:[%s10601_s1 + $0x48] sm:$0xff]  ;;  %vm9113_vm11 = vmor %vm3982_vm8, %vm3983_vm9  ;;  %s10274_s15 = sshll.u32 %s201_s10, 7  ;;  %p223_p10 = scmp.lt.s32.totalorder %s8606_s17, 1 }
  0x19   : > { %8501 = vmatpush.bf16.msra.mxu3 %v8192_v3  ;;  %s218_s7 = scalar_lea.vmem %s10600_s0, %s8508_s24  ;;  %3319 = vmatpush.bf16.msra.mxu1 %v8192_v3  ;;  %s10294_s6 = scalar_lea.vmem [#allocation3], %s10274_s15 }
  0x1a   : > { %s8735_s8 = scalar_lea.vmem %s218_s7, %s6393_s14  ;;  %s6389_s25 = sshll.u32 %s8722_s13, 1 }
  0x1b   : > { %v6440_v6 = vld [vmem:[%s8735_s8 + $0x3c] sm:$0xf]  ;;  %v6441_v7 = vld [vmem:[%s8735_s8 + $0x40] sm:$0xf]  ;;  %v6442_v8 = vld [vmem:[%s8735_s8 + $0x44] sm:$0x1] }
  0x1c   : > { %v501_v10 = vshrl.u32 %v6440_v6, 16  ;;  %v504_v11 = vshll.u32 %v6440_v6, 16  ;;  %v510_v12 = vshll.u32 %v6441_v7, 16  ;;  %v514_v13 = vshrl.u32 %v6441_v7, 16  ;;  %8494 = vmatpush.bf16.msra.mxu2 %v8183_v4  ;;  %v6464_v16 = vld [vmem:[%s8735_s8 + $0x3c] sm:$0xe]  ;;  %3271 = vmatpush.bf16.msra.mxu0 %v8183_v4 }
  0x1d   : > { %8502 = vmatpush.bf16.msra.mxu3 %v8191_v5  ;;  %v520_v15 = vshll.u32 %v6442_v8, 16  ;;  %3320 = vmatpush.bf16.msra.mxu1 %v8191_v5  ;;  %v6465_v22 = vld [vmem:[%s8735_s8 + $0x40] sm:$0xf]  ;;  %v6466_v24 = vld [vmem:[%s8735_s8 + $0x44] sm:$0x1]  ;;  %v6480_v25 = vrot.slane %v6464_v16, 9 }
  0x1e   : > { %v503_v17 = vrot.slane %v501_v10, 4  ;;  %v506_v18 = vrot.slane %v504_v11, 5  ;;  %v512_v19 = vrot.slane %v510_v12, 5  ;;  %v516_v20 = vrot.slane %v514_v13, 4  ;;  %v3810_v31 = vld [vmem:[%s8735_s8 + $0x30] sm:$0xe] }
  0x1f   : > { %v706_v26 = vrot.slane %v6465_v22, 5  ;;  %v522_v29 = vrot.slane %v520_v15, 5  ;;  %v709_v30 = vrot.slane %v6466_v24, 5  ;;  %v3811_v32 = vld [vmem:[%s8735_s8 + $0x34] sm:$0xf]  ;;  %v7220_v44 = vrot.slane %v3810_v31, 9 }
  0x20   : > { %v507_v27 = vor.u32 %v506_v18, %v503_v17  ;;  %v517_v28 = vor.u32 %v516_v20, %v512_v19  ;;  %8495 = vmatpush.bf16.msra.mxu2 %v8182_v9  ;;  %v3812_v37 = vld [vmem:[%s8735_s8 + $0x38] sm:$0x1]  ;;  %v3876_v38 = vrot.slane %v3811_v32, 5  ;;  %3272 = vmatpush.bf16.msra.mxu0 %v8182_v9  ;;  %v6428_v46 = vld [vmem:[%s8735_s8 + $0xc] sm:$0xf]  ;;  %v8178_v13 = vld [vmem:[%s10601_s1] sm:$0xff] }
  0x21   : > { %8503 = vmatpush.bf16.msra.mxu3 %v8190_v14  ;;  %v707_v35 = vsel %vm8749_vm4, %v6480_v25, %v706_v26  ;;  %v708_v36 = vrot.slane %v706_v26, 4  ;;  %3321 = vmatpush.bf16.msra.mxu1 %v8190_v14  ;;  %v3879_v45 = vrot.slane %v3812_v37, 5  ;;  %v6429_v47 = vld [vmem:[%s8735_s8 + $0x10] sm:$0xf]  ;;  %v6430_v50 = vld [vmem:[%s8735_s8 + $0x14] sm:$0x1] }
  0x22   : > { %v508_v39 = vrot.slane %v507_v27, 4  ;;  %v518_v40 = vrot.slane %v517_v28, 4  ;;  %756 = vst [vmem:[#allocation2 + $0x124] sm:$0xf] %v707_v35  ;;  %v405_v51 = vshrl.u32 %v6428_v46, 16  ;;  %v408_v52 = vshll.u32 %v6428_v46, 16 }
  0x23   : > { %v710_v43 = vsel %vm8749_vm4, %v708_v36, %v709_v30  ;;  %v3878_v53 = vrot.slane %v3876_v38, 4  ;;  %v414_v54 = vshll.u32 %v6429_v47, 16  ;;  %v418_v55 = vshrl.u32 %v6429_v47, 16  ;;  %v6452_v1 = vld [vmem:[%s8735_s8 + $0xc] sm:$0xe]  ;;  %v8186_v14 = vld [vmem:[%s10601_s1 + $0x40] sm:$0xff] }
  0x24   : > { %v513_v48 = vsel %vm8765_vm5, %v508_v39, %v512_v19  ;;  %v523_v49 = vsel %vm8765_vm5, %v518_v40, %v522_v29  ;;  %757 = vst [vmem:[#allocation2 + $0x148] sm:$0xf] %v710_v43  ;;  %8496 = vmatpush.bf16.msra.mxu2 %v8181_v23  ;;  %v424_v56 = vshll.u32 %v6430_v50, 16  ;;  %3273 = vmatpush.bf16.msra.mxu0 %v8181_v23  ;;  %v407_v57 = vrot.slane %v405_v51, 4  ;;  %v6453_v2 = vld [vmem:[%s8735_s8 + $0x10] sm:$0xf] }
  0x25   : > { %8504 = vmatpush.bf16.msra.mxu3 %v8189_v33  ;;  %620 = vst [vmem:[#allocation2 + $0x120] sm:$0xf] %v513_v48  ;;  %3322 = vmatpush.bf16.msra.mxu1 %v8189_v33  ;;  %v410_v58 = vrot.slane %v408_v52, 5  ;;  %v3877_v61 = vsel %vm8749_vm4, %v7220_v44, %v3876_v38  ;;  %v416_v62 = vrot.slane %v414_v54, 5  ;;  %v420_v63 = vrot.slane %v418_v55, 4  ;;  %v8201_v20 = vld [vmem:[%s10601_s1 + $0xb8] sm:$0xff] }
  0x26   : > { %621 = vst [vmem:[#allocation2 + $0x144] sm:$0xf] %v523_v49  ;;  %v6454_v3 = vld [vmem:[%s8735_s8 + $0x14] sm:$0x1]  ;;  %v3774_v4 = vld [vmem:[%s8735_s8 + $0x30] sm:$0xf]  ;;  %v3880_v6 = vsel %vm8749_vm4, %v3878_v53, %v3879_v45 }
  0x27   : > { %v411_v0 = vor.u32 %v410_v58, %v407_v57  ;;  %v421_v7 = vor.u32 %v420_v63, %v416_v62  ;;  %v426_v8 = vrot.slane %v424_v56, 5  ;;  %v678_v9 = vrot.slane %v6453_v2, 5  ;;  %v3775_v10 = vld [vmem:[%s8735_s8 + $0x34] sm:$0xf]  ;;  %v8816_v23 = vld [vmem:[%s8735_s8 + $0x4] sm:$0xf] }
  0x28   : > { %8497 = vmatpush.bf16.msra.mxu2 %v8180_v41  ;;  %3274 = vmatpush.bf16.msra.mxu0 %v8180_v41  ;;  %v6476_v12 = vrot.slane %v6452_v1, 9  ;;  %v681_v18 = vrot.slane %v6454_v3, 5  ;;  %v8209_v26 = vld [vmem:[%s10601_s1 + $0xf8] sm:$0xff]  ;;  %v3798_v27 = vld [vmem:[%s8735_s8] sm:$0xe]  ;;  %v3848_v32 = vrot.slane %v8816_v23, 5 }
  0x29   : > { %8505 = vmatpush.bf16.msra.mxu3 %v8188_v42  ;;  %v8799_v5 = vld [vmem:[#allocation2 + $0x124] sm:$0xf]  ;;  %3323 = vmatpush.bf16.msra.mxu1 %v8188_v42  ;;  %v412_v11 = vrot.slane %v411_v0, 4  ;;  %v422_v16 = vrot.slane %v421_v7, 4  ;;  %v680_v17 = vrot.slane %v678_v9, 4  ;;  %v8217_v33 = vld [vmem:[%s10601_s1 + $0x138] sm:$0xff] }
  0x2a   : > { %3926 = vst [vmem:[#allocation2 + $0x124] sm:$0xf] %v3877_v61  ;;  %v679_v28 = vsel %vm8749_vm4, %v6476_v12, %v678_v9  ;;  %v3800_v29 = vld [vmem:[%s8735_s8 + $0x8] sm:$0x1]  ;;  %v6444_v35 = vld [vmem:[%s8735_s8 + $0x4c] sm:$0xf] }
  0x2b   : > { %v6786_v15 = vld [vmem:[#allocation2 + $0x144] sm:$0xf0]  ;;  %v417_v22 = vsel %vm8765_vm5, %v412_v11, %v416_v62  ;;  %v427_v25 = vsel %vm8765_vm5, %v422_v16, %v426_v8  ;;  %v682_v31 = vsel %vm8749_vm4, %v680_v17, %v681_v18  ;;  %v6445_v39 = vld [vmem:[%s8735_s8 + $0x50] sm:$0x1]  ;;  %v534_v41 = vshll.u32 %v6444_v35, 16  ;;  %v8225_v42 = vld [vmem:[%s10601_s1 + $0x178] sm:$0xff] }
  0x2c   : > { %v6784_v19 = vld [vmem:[#allocation2 + $0x120] sm:$0xf]  ;;  %3927 = vst [vmem:[#allocation2 + $0x148] sm:$0xf] %v3880_v6  ;;  %8498 = vmatpush.bf16.msra.mxu2 %v8179_v59  ;;  %3275 = vmatpush.bf16.msra.mxu0 %v8179_v59  ;;  %v6443_v30 = vld [vmem:[%s8735_s8 + $0x48] sm:$0xf]  ;;  %v6789_v38 = vor.u32 %v8799_v5, %v6786_v15 }
  0x2d   : > { %8506 = vmatpush.bf16.msra.mxu3 %v8187_v60  ;;  %v8146_v24 = vld [vmem:[#allocation2 + $0x140] sm:$0xf0]  ;;  %3790 = vst [vmem:[#allocation2 + $0x120] sm:$0xf] %v3774_v4  ;;  %3324 = vmatpush.bf16.msra.mxu1 %v8187_v60  ;;  %v525_v36 = vshrl.u32 %v6443_v30, 16  ;;  %v528_v40 = vshll.u32 %v6443_v30, 16 }
  0x2e   : > { %3791 = vst [vmem:[#allocation2 + $0x144] sm:$0xf] %v3775_v10  ;;  %v6785_v37 = vor.u32 %v8146_v24, %v6784_v19  ;;  %v538_v44 = vshrl.u32 %v6444_v35, 16  ;;  %v544_v45 = vshll.u32 %v6445_v39, 16  ;;  %v3766_v46 = vld [vmem:[%s8735_s8] sm:$0xf] }
  0x2f   : > { %612 = vst [vmem:[#allocation2] sm:$0xf] %v417_v22  ;;  %v527_v43 = vrot.slane %v525_v36, 4  ;;  %v7216_v47 = vrot.slane %v3798_v27, 9  ;;  %v8200_v48 = vld [vmem:[%s10601_s1 + $0xb0] sm:$0xff]  ;;  %v530_v49 = vrot.slane %v528_v40, 5 }
  0x30   : > { %613 = vst [vmem:[#allocation2 + $0x24] sm:$0xf] %v427_v25  ;;  %8499 = vmatpush.bf16.msra.mxu2 %v8178_v13  ;;  %3276 = vmatpush.bf16.msra.mxu0 %v8178_v13  ;;  %v536_v50 = vrot.slane %v534_v41, 5  ;;  %v3850_v51 = vrot.slane %v3848_v32, 4  ;;  %v3851_v52 = vrot.slane %v3800_v29, 5  ;;  %v8208_v53 = vld [vmem:[%s10601_s1 + $0xf0] sm:$0xff] }
  0x31   : > { %8507 = vmatpush.bf16.msra.mxu3 %v8186_v14  ;;  %748 = vst [vmem:[#allocation2 + $0x4] sm:$0xf] %v679_v28  ;;  %3325 = vmatpush.bf16.msra.mxu1 %v8186_v14  ;;  %v540_v54 = vrot.slane %v538_v44, 4  ;;  %v6467_v55 = vld [vmem:[%s8735_s8 + $0x48] sm:$0xe]  ;;  %v531_v57 = vor.u32 %v530_v49, %v527_v43  ;;  %v546_v61 = vrot.slane %v544_v45, 5  ;;  %v3849_v3 = vsel %vm8749_vm4, %v7216_v47, %v3848_v32 }
  0x32   : > { %749 = vst [vmem:[#allocation2 + $0x28] sm:$0xf] %v682_v31  ;;  %v3767_v56 = vld [vmem:[%s8735_s8 + $0x4] sm:$0xf]  ;;  %v6468_v58 = vld [vmem:[%s8735_s8 + $0x4c] sm:$0xf]  ;;  %v3852_v8 = vsel %vm8749_vm4, %v3850_v51, %v3851_v52 }
  0x33   : > { %3297 = vmatmul.bf16.vlgmr.msra.gmra.mxu2 %v6785_v37  ;;  %v6469_v59 = vld [vmem:[%s8735_s8 + $0x50] sm:$0x1]  ;;  %v541_v60 = vor.u32 %v540_v54, %v536_v50  ;;  %v6481_v62 = vrot.slane %v6467_v55, 9  ;;  %v713_v63 = vrot.slane %v6468_v58, 5  ;;  %v8199_v0 = vld [vmem:[%s10601_s1 + $0xa8] sm:$0xff]  ;;  %v532_v4 = vrot.slane %v531_v57, 4 }
  0x34   : > { %3367 = vmatpush.bf16.msrb.mxu2 %v8201_v20  ;;  %3346 = vmatmul.bf16.vlgmr.msra.gmra.mxu3 %v6789_v38  ;;  %v8207_v1 = vld [vmem:[%s10601_s1 + $0xe8] sm:$0xff]  ;;  %v716_v5 = vrot.slane %v6469_v59, 5  ;;  %v3814_v6 = vld [vmem:[%s8735_s8 + $0x40] sm:$0xf]  ;;  %v3813_v16 = vld [vmem:[%s8735_s8 + $0x3c] sm:$0xe] }
  0x35   : > { %3416 = vmatpush.bf16.msrb.mxu3 %v8209_v26  ;;  %3465 = vmatpush.bf16.msrb.mxu0 %v8217_v33  ;;  %v542_v9 = vrot.slane %v541_v60, 4  ;;  %v715_v10 = vrot.slane %v713_v63, 4  ;;  %v537_v13 = vsel %vm8765_vm5, %v532_v4, %v536_v50  ;;  %v3815_v17 = vld [vmem:[%s8735_s8 + $0x44] sm:$0x1]  ;;  %v6431_v18 = vld [vmem:[%s8735_s8 + $0x18] sm:$0xf]  ;;  %v714_v20 = vsel %vm8749_vm4, %v6481_v62, %v713_v63 }
  0x36   : > { %3514 = vmatpush.bf16.msrb.mxu1 %v8225_v42  ;;  %v6640_v2 = vld [vmem:[#allocation2] sm:$0xf]  ;;  %v3883_v22 = vrot.slane %v3814_v6, 5  ;;  %v6432_v23 = vld [vmem:[%s8735_s8 + $0x1c] sm:$0xf]  ;;  %v429_v24 = vshrl.u32 %v6431_v18, 16 }
  0x37   : > { %v8110_v7 = vld [vmem:[#allocation2 + $0x20] sm:$0xf0]  ;;  %3782 = vst [vmem:[#allocation2] sm:$0xf] %v3766_v46  ;;  %v547_v15 = vsel %vm8765_vm5, %v542_v9, %v546_v61  ;;  %v717_v25 = vsel %vm8749_vm4, %v715_v10, %v716_v5  ;;  %v6433_v26 = vld [vmem:[%s8735_s8 + $0x20] sm:$0x1] }
  0x38   : > { %3368 = vmatpush.bf16.msrb.mxu2 %v8200_v48  ;;  %v6641_v11 = vor.u32 %v8110_v7, %v6640_v2  ;;  %3783 = vst [vmem:[#allocation2 + $0x24] sm:$0xf] %v3767_v56  ;;  %v8106_v12 = vld [vmem:[#allocation2 + $0x4] sm:$0xf]  ;;  %v432_v27 = vshll.u32 %v6431_v18, 16  ;;  %v438_v28 = vshll.u32 %v6432_v23, 16 }
  0x39   : > { %3417 = vmatpush.bf16.msrb.mxu3 %v8208_v53  ;;  %v6642_v14 = vld [vmem:[#allocation2 + $0x24] sm:$0xf0]  ;;  %3918 = vst [vmem:[#allocation2 + $0x4] sm:$0xf] %v3849_v3  ;;  %v431_v29 = vrot.slane %v429_v24, 4  ;;  %v442_v30 = vshrl.u32 %v6432_v23, 16 }
  0x3a   : > { %3277 = vmatmul.bf16.vlgmr.msra.gmra.mxu0 %v6641_v11  ;;  %v6645_v19 = vor.u32 %v8106_v12, %v6642_v14  ;;  %3919 = vst [vmem:[#allocation2 + $0x28] sm:$0xf] %v3852_v8  ;;  %v8216_v31 = vld [vmem:[%s10601_s1 + $0x130] sm:$0xff]  ;;  %v434_v32 = vrot.slane %v432_v27, 5  ;;  %v440_v33 = vrot.slane %v438_v28, 5  ;;  %v448_v35 = vshll.u32 %v6433_v26, 16 }
  0x3b   : > { %622 = vst [vmem:[#allocation2 + $0x168] sm:$0xf] %v537_v13  ;;  %v7221_v36 = vrot.slane %v3813_v16, 9  ;;  %v3885_v37 = vrot.slane %v3883_v22, 4  ;;  %v3886_v38 = vrot.slane %v3815_v17, 5  ;;  %v444_v39 = vrot.slane %v442_v30, 4  ;;  %3466 = vmatpush.bf16.msrb.mxu0 %v8216_v31 }
  0x3c   : > { %3369 = vmatpush.bf16.msrb.mxu2 %v8199_v0  ;;  %3326 = vmatmul.bf16.vlgmr.msra.gmra.mxu1 %v6645_v19  ;;  %623 = vst [vmem:[#allocation2 + $0x18c] sm:$0xf] %v547_v15  ;;  %v435_v40 = vor.u32 %v434_v32, %v431_v29  ;;  %v6455_v41 = vld [vmem:[%s8735_s8 + $0x18] sm:$0xe]  ;;  %v6456_v42 = vld [vmem:[%s8735_s8 + $0x1c] sm:$0xf] }
  0x3d   : > { %3418 = vmatpush.bf16.msrb.mxu3 %v8207_v1  ;;  %758 = vst [vmem:[#allocation2 + $0x16c] sm:$0xf] %v714_v20  ;;  %v6457_v43 = vld [vmem:[%s8735_s8 + $0x20] sm:$0x1]  ;;  %v3776_v44 = vld [vmem:[%s8735_s8 + $0x3c] sm:$0xf]  ;;  %v445_v45 = vor.u32 %v444_v39, %v440_v33  ;;  %v3884_v54 = vsel %vm8749_vm4, %v7221_v36, %v3883_v22  ;;  %v3887_v59 = vsel %vm8749_vm4, %v3885_v37, %v3886_v38 }
  0x3e   : > { %759 = vst [vmem:[#allocation2 + $0x190] sm:$0xf] %v717_v25  ;;  %v685_v46 = vrot.slane %v6456_v42, 5  ;;  %v8224_v47 = vld [vmem:[%s10601_s1 + $0x170] sm:$0xff]  ;;  %v3777_v48 = vld [vmem:[%s8735_s8 + $0x40] sm:$0xf] }
  0x3f   : > { %v436_v49 = vrot.slane %v435_v40, 4  ;;  %v450_v50 = vrot.slane %v448_v35, 5  ;;  %v6477_v51 = vrot.slane %v6455_v41, 9  ;;  %v688_v52 = vrot.slane %v6457_v43, 5  ;;  %v8889_v56 = vld [vmem:[%s8735_s8 + $0x10] sm:$0xf]  ;;  %3515 = vmatpush.bf16.msrb.mxu1 %v8224_v47 }
  0x40   : > { %v446_v55 = vrot.slane %v445_v45, 4  ;;  %v8198_v57 = vld [vmem:[%s10601_s1 + $0xa0] sm:$0xff]  ;;  %v687_v60 = vrot.slane %v685_v46, 4  ;;  %v8215_v1 = vld [vmem:[%s10601_s1 + $0x128] sm:$0xff]  ;;  %v3855_v6 = vrot.slane %v8889_v56, 5  ;;  %v8197_v7 = vld [vmem:[%s10601_s1 + $0x98] sm:$0xff] }
  0x41   : > { %v8206_v61 = vld [vmem:[%s10601_s1 + $0xe0] sm:$0xff]  ;;  %v441_v0 = vsel %vm8765_vm5, %v436_v49, %v440_v33  ;;  %v8223_v2 = vld [vmem:[%s10601_s1 + $0x168] sm:$0xff]  ;;  %3370 = vmatpush.bf16.msrb.mxu2 %v8198_v57  ;;  %v686_v9 = vsel %vm8749_vm4, %v6477_v51, %v685_v46  ;;  %3467 = vmatpush.bf16.msrb.mxu0 %v8215_v1  ;;  %v6446_v10 = vld [vmem:[%s8735_s8 + $0x54] sm:$0xf]  ;;  %s224_s24 = scalar_select %p223_p10, %s8606_s17, 1 }
  0x42   : > { %v6820_v53 = vld [vmem:[#allocation2 + $0x168] sm:$0xf]  ;;  %v451_v4 = vsel %vm8765_vm5, %v446_v55, %v450_v50  ;;  %v3801_v5 = vld [vmem:[%s8735_s8 + $0xc] sm:$0xe]  ;;  %3419 = vmatpush.bf16.msrb.mxu3 %v8206_v61  ;;  %v6447_v11 = vld [vmem:[%s8735_s8 + $0x58] sm:$0xf]  ;;  %v689_v12 = vsel %vm8749_vm4, %v687_v60, %v688_v52 }
  0x43   : > { %v8155_v58 = vld [vmem:[#allocation2 + $0x188] sm:$0xf0]  ;;  %3792 = vst [vmem:[#allocation2 + $0x168] sm:$0xf] %v3776_v44  ;;  %3516 = vmatpush.bf16.msrb.mxu1 %v8223_v2  ;;  %v6448_v13 = vld [vmem:[%s8735_s8 + $0x5c] sm:$0x1]  ;;  %s226_s27 = sadd.s32 %s6389_s25, %s224_s24 }
  0x44   : > { %v6821_v62 = vor.u32 %v8155_v58, %v6820_v53  ;;  %3793 = vst [vmem:[#allocation2 + $0x18c] sm:$0xf] %v3777_v48  ;;  %v8151_v63 = vld [vmem:[#allocation2 + $0x16c] sm:$0xf]  ;;  %v549_v14 = vshrl.u32 %v6446_v10, 16  ;;  %v552_v15 = vshll.u32 %v6446_v10, 16 }
  0x45   : > { %v6822_v3 = vld [vmem:[#allocation2 + $0x18c] sm:$0xf0]  ;;  %3928 = vst [vmem:[#allocation2 + $0x16c] sm:$0xf] %v3884_v54  ;;  %v3803_v16 = vld [vmem:[%s8735_s8 + $0x14] sm:$0x1]  ;;  %3371 = vmatpush.bf16.msrb.mxu2 %v8197_v7 }
  0x46   : > { %3302 = vmatmul.bf16.gmra.mxu2 %v6821_v62  ;;  %v6825_v8 = vor.u32 %v8151_v63, %v6822_v3  ;;  %3929 = vst [vmem:[#allocation2 + $0x190] sm:$0xf] %v3887_v59  ;;  %v558_v17 = vshll.u32 %v6447_v11, 16  ;;  %v562_v18 = vshrl.u32 %v6447_v11, 16  ;;  %v551_v19 = vrot.slane %v549_v14, 4  ;;  %v8205_v26 = vld [vmem:[%s10601_s1 + $0xd8] sm:$0xff] }
  0x47   : > { %614 = vst [vmem:[#allocation2 + $0x48] sm:$0xf] %v441_v0  ;;  %v554_v20 = vrot.slane %v552_v15, 5  ;;  %v568_v22 = vshll.u32 %v6448_v13, 16  ;;  %v7217_v23 = vrot.slane %v3801_v5, 9  ;;  %v3857_v27 = vrot.slane %v3855_v6, 4  ;;  %3420 = vmatpush.bf16.msrb.mxu3 %v8205_v26 }
  0x48   : > { %3351 = vmatmul.bf16.gmra.mxu3 %v6825_v8  ;;  %615 = vst [vmem:[#allocation2 + $0x6c] sm:$0xf] %v451_v4  ;;  %v560_v24 = vrot.slane %v558_v17, 5  ;;  %v564_v25 = vrot.slane %v562_v18, 4  ;;  %v3858_v28 = vrot.slane %v3803_v16, 5  ;;  %v8214_v45 = vld [vmem:[%s10601_s1 + $0x120] sm:$0xff] }
  0x49   : > { %750 = vst [vmem:[#allocation2 + $0x4c] sm:$0xf] %v686_v9  ;;  %v555_v29 = vor.u32 %v554_v20, %v551_v19  ;;  %v6470_v30 = vld [vmem:[%s8735_s8 + $0x54] sm:$0xe]  ;;  %v6471_v31 = vld [vmem:[%s8735_s8 + $0x58] sm:$0xf]  ;;  %v3856_v42 = vsel %vm8749_vm4, %v7217_v23, %v3855_v6  ;;  %3468 = vmatpush.bf16.msrb.mxu0 %v8214_v45 }
  0x4a   : > { %751 = vst [vmem:[#allocation2 + $0x70] sm:$0xf] %v689_v12  ;;  %v3768_v32 = vld [vmem:[%s8735_s8 + $0xc] sm:$0xf]  ;;  %v565_v33 = vor.u32 %v564_v25, %v560_v24  ;;  %v6472_v35 = vld [vmem:[%s8735_s8 + $0x5c] sm:$0x1]  ;;  %v3859_v47 = vsel %vm8749_vm4, %v3857_v27, %v3858_v28 }
  0x4b   : > { %v720_v36 = vrot.slane %v6471_v31, 5  ;;  %v3769_v37 = vld [vmem:[%s8735_s8 + $0x10] sm:$0xf]  ;;  %v556_v38 = vrot.slane %v555_v29, 4  ;;  %v570_v39 = vrot.slane %v568_v22, 5  ;;  %v6482_v40 = vrot.slane %v6470_v30, 9 }
  0x4c   : > { %v566_v43 = vrot.slane %v565_v33, 4  ;;  %v8933_v44 = vld [vmem:[%s8735_s8 + $0x4c] sm:$0xf]  ;;  %v723_v49 = vrot.slane %v6472_v35, 5  ;;  %v3816_v53 = vld [vmem:[%s8735_s8 + $0x48] sm:$0xe] }
  0x4d   : > { %v722_v48 = vrot.slane %v720_v36, 4  ;;  %v561_v52 = vsel %vm8765_vm5, %v556_v38, %v560_v24  ;;  %v6434_v54 = vld [vmem:[%s8735_s8 + $0x24] sm:$0xf]  ;;  %v3818_v57 = vld [vmem:[%s8735_s8 + $0x50] sm:$0x1]  ;;  %v3890_v58 = vrot.slane %v8933_v44, 5  ;;  %v721_v61 = vsel %vm8749_vm4, %v6482_v40, %v720_v36 }
  0x4e   : > { %v6676_v41 = vld [vmem:[#allocation2 + $0x48] sm:$0xf]  ;;  %v571_v56 = vsel %vm8765_vm5, %v566_v43, %v570_v39  ;;  %v453_v59 = vshrl.u32 %v6434_v54, 16  ;;  %v6436_v63 = vld [vmem:[%s8735_s8 + $0x2c] sm:$0x1]  ;;  %v456_v2 = vshll.u32 %v6434_v54, 16 }
  0x4f   : > { %v8119_v46 = vld [vmem:[#allocation2 + $0x68] sm:$0xf0]  ;;  %3784 = vst [vmem:[#allocation2 + $0x48] sm:$0xf] %v3768_v32  ;;  %v6435_v62 = vld [vmem:[%s8735_s8 + $0x28] sm:$0xf]  ;;  %v724_v0 = vsel %vm8749_vm4, %v722_v48, %v723_v49 }
  0x50   : > { %v6677_v50 = vor.u32 %v8119_v46, %v6676_v41  ;;  %3785 = vst [vmem:[#allocation2 + $0x6c] sm:$0xf] %v3769_v37  ;;  %v8115_v51 = vld [vmem:[#allocation2 + $0x4c] sm:$0xf]  ;;  %v455_v1 = vrot.slane %v453_v59, 4  ;;  %v462_v3 = vshll.u32 %v6435_v62, 16 }
  0x51   : > { %v6678_v55 = vld [vmem:[#allocation2 + $0x6c] sm:$0xf0]  ;;  %3920 = vst [vmem:[#allocation2 + $0x4c] sm:$0xf] %v3856_v42  ;;  %v8222_v4 = vld [vmem:[%s10601_s1 + $0x160] sm:$0xff]  ;;  %v466_v5 = vshrl.u32 %v6435_v62, 16 }
  0x52   : > { %3282 = vmatmul.bf16.gmra.mxu0 %v6677_v50  ;;  %v6681_v60 = vor.u32 %v8115_v51, %v6678_v55  ;;  %3921 = vst [vmem:[#allocation2 + $0x70] sm:$0xf] %v3859_v47  ;;  %v7222_v6 = vrot.slane %v3816_v53, 9  ;;  %v458_v7 = vrot.slane %v456_v2, 5  ;;  %v464_v8 = vrot.slane %v462_v3, 5  ;;  %3517 = vmatpush.bf16.msrb.mxu1 %v8222_v4  ;;  %v8196_v17 = vld [vmem:[%s10601_s1 + $0x90] sm:$0xff] }
  0x53   : > { %624 = vst [vmem:[#allocation2 + $0x1b0] sm:$0xf] %v561_v52  ;;  %v472_v9 = vshll.u32 %v6436_v63, 16  ;;  %v3893_v10 = vrot.slane %v3818_v57, 5  ;;  %v468_v11 = vrot.slane %v466_v5, 4  ;;  %v3892_v13 = vrot.slane %v3890_v58, 4  ;;  %3372 = vmatpush.bf16.msrb.mxu2 %v8196_v17 }
  0x54   : > { %3331 = vmatmul.bf16.gmra.mxu1 %v6681_v60  ;;  %625 = vst [vmem:[#allocation2 + $0x1d4] sm:$0xf] %v571_v56  ;;  %v6458_v12 = vld [vmem:[%s8735_s8 + $0x24] sm:$0xe]  ;;  %v459_v14 = vor.u32 %v458_v7, %v455_v1  ;;  %v6459_v15 = vld [vmem:[%s8735_s8 + $0x28] sm:$0xf]  ;;  %v3891_v29 = vsel %vm8749_vm4, %v7222_v6, %v3890_v58 }
  0x55   : > { %760 = vst [vmem:[#allocation2 + $0x1b4] sm:$0xf] %v721_v61  ;;  %v6460_v16 = vld [vmem:[%s8735_s8 + $0x2c] sm:$0x1]  ;;  %v3778_v18 = vld [vmem:[%s8735_s8 + $0x48] sm:$0xf]  ;;  %v469_v20 = vor.u32 %v468_v11, %v464_v8  ;;  %v3894_v35 = vsel %vm8749_vm4, %v3892_v13, %v3893_v10 }
  0x56   : > { %761 = vst [vmem:[#allocation2 + $0x1d8] sm:$0xf] %v724_v0  ;;  %v3779_v19 = vld [vmem:[%s8735_s8 + $0x4c] sm:$0xf]  ;;  %v692_v22 = vrot.slane %v6459_v15, 5  ;;  %v460_v23 = vrot.slane %v459_v14, 4 }
  0x57   : > { %v474_v24 = vrot.slane %v472_v9, 5  ;;  %v6478_v25 = vrot.slane %v6458_v12, 9  ;;  %v695_v26 = vrot.slane %v6460_v16, 5  ;;  %v8204_v27 = vld [vmem:[%s10601_s1 + $0xd0] sm:$0xff]  ;;  %v470_v30 = vrot.slane %v469_v20, 4  ;;  %v8213_v32 = vld [vmem:[%s10601_s1 + $0x118] sm:$0xff] }
  0x58   : > { %v8971_v31 = vld [vmem:[%s8735_s8 + $0x1c] sm:$0xf]  ;;  %v694_v36 = vrot.slane %v692_v22, 4  ;;  %3421 = vmatpush.bf16.msrb.mxu3 %v8204_v27  ;;  %v465_v40 = vsel %vm8765_vm5, %v460_v23, %v464_v8  ;;  %3469 = vmatpush.bf16.msrb.mxu0 %v8213_v32  ;;  %v6449_v41 = vld [vmem:[%s8735_s8 + $0x60] sm:$0xf]  ;;  %v8195_v56 = vld [vmem:[%s10601_s1 + $0x88] sm:$0xff] }
  0x59   : > { %v8221_v37 = vld [vmem:[%s10601_s1 + $0x158] sm:$0xff]  ;;  %v475_v43 = vsel %vm8765_vm5, %v470_v30, %v474_v24  ;;  %v3806_v45 = vld [vmem:[%s8735_s8 + $0x20] sm:$0x1]  ;;  %v6450_v46 = vld [vmem:[%s8735_s8 + $0x64] sm:$0xf]  ;;  %v693_v48 = vsel %vm8749_vm4, %v6478_v25, %v692_v22  ;;  %v573_v50 = vshrl.u32 %v6449_v41, 16  ;;  %3373 = vmatpush.bf16.msrb.mxu2 %v8195_v56 }
  0x5a   : > { %v6856_v28 = vld [vmem:[#allocation2 + $0x1b0] sm:$0xf]  ;;  %v3804_v44 = vld [vmem:[%s8735_s8 + $0x18] sm:$0xe]  ;;  %3518 = vmatpush.bf16.msrb.mxu1 %v8221_v37  ;;  %v6451_v49 = vld [vmem:[%s8735_s8 + $0x68] sm:$0x1]  ;;  %v696_v52 = vsel %vm8749_vm4, %v694_v36, %v695_v26 }
  0x5b   : > { %v8164_v33 = vld [vmem:[#allocation2 + $0x1d0] sm:$0xf0]  ;;  %3794 = vst [vmem:[#allocation2 + $0x1b0] sm:$0xf] %v3778_v18  ;;  %v576_v51 = vshll.u32 %v6449_v41, 16  ;;  %v3862_v53 = vrot.slane %v8971_v31, 5 }
  0x5c   : > { %v6857_v38 = vor.u32 %v8164_v33, %v6856_v28  ;;  %3795 = vst [vmem:[#allocation2 + $0x1d4] sm:$0xf] %v3779_v19  ;;  %v8160_v39 = vld [vmem:[#allocation2 + $0x1b4] sm:$0xf]  ;;  %v582_v54 = vshll.u32 %v6450_v46, 16  ;;  %v586_v55 = vshrl.u32 %v6450_v46, 16 }
  0x5d   : > { %v6858_v42 = vld [vmem:[#allocation2 + $0x1d4] sm:$0xf0]  ;;  %3930 = vst [vmem:[#allocation2 + $0x1b4] sm:$0xf] %v3891_v29  ;;  %v575_v57 = vrot.slane %v573_v50, 4  ;;  %v578_v58 = vrot.slane %v576_v51, 5 }
  0x5e   : > { %3307 = vmatmul.bf16.gmra.mxu2 %v6857_v38  ;;  %v6861_v47 = vor.u32 %v8160_v39, %v6858_v42  ;;  %3931 = vst [vmem:[#allocation2 + $0x1d8] sm:$0xf] %v3894_v35  ;;  %v584_v59 = vrot.slane %v582_v54, 5  ;;  %v588_v60 = vrot.slane %v586_v55, 4  ;;  %v592_v61 = vshll.u32 %v6451_v49, 16  ;;  %v8203_v6 = vld [vmem:[%s10601_s1 + $0xc8] sm:$0xff] }
  0x5f   : > { %616 = vst [vmem:[#allocation2 + $0x90] sm:$0xf] %v465_v40  ;;  %v7218_v62 = vrot.slane %v3804_v44, 9  ;;  %v3865_v63 = vrot.slane %v3806_v45, 5  ;;  %v579_v0 = vor.u32 %v578_v58, %v575_v57  ;;  %v6473_v1 = vld [vmem:[%s8735_s8 + $0x60] sm:$0xe]  ;;  %3422 = vmatpush.bf16.msrb.mxu3 %v8203_v6 }
  0x60   : > { %3356 = vmatmul.bf16.gmra.mxu3 %v6861_v47  ;;  %617 = vst [vmem:[#allocation2 + $0xb4] sm:$0xf] %v475_v43  ;;  %v3864_v2 = vrot.slane %v3862_v53, 4  ;;  %v589_v3 = vor.u32 %v588_v60, %v584_v59  ;;  %v6474_v4 = vld [vmem:[%s8735_s8 + $0x64] sm:$0xf]  ;;  %v8212_v10 = vld [vmem:[%s10601_s1 + $0x110] sm:$0xff] }
  0x61   : > { %752 = vst [vmem:[#allocation2 + $0x94] sm:$0xf] %v693_v48  ;;  %v6475_v5 = vld [vmem:[%s8735_s8 + $0x68] sm:$0x1]  ;;  %v3770_v7 = vld [vmem:[%s8735_s8 + $0x18] sm:$0xf]  ;;  %v3863_v17 = vsel %vm8749_vm4, %v7218_v62, %v3862_v53  ;;  %3470 = vmatpush.bf16.msrb.mxu0 %v8212_v10 }
  0x62   : > { %753 = vst [vmem:[#allocation2 + $0xb8] sm:$0xf] %v696_v52  ;;  %v580_v8 = vrot.slane %v579_v0, 4  ;;  %v727_v9 = vrot.slane %v6474_v4, 5  ;;  %v3771_v11 = vld [vmem:[%s8735_s8 + $0x1c] sm:$0xf]  ;;  %v3866_v22 = vsel %vm8749_vm4, %v3864_v2, %v3865_v63 }
  0x63   : > { %v590_v12 = vrot.slane %v589_v3, 4  ;;  %v594_v13 = vrot.slane %v592_v61, 5  ;;  %v6483_v14 = vrot.slane %v6473_v1, 9  ;;  %v730_v15 = vrot.slane %v6475_v5, 5  ;;  %v9012_v18 = vld [vmem:[%s8735_s8 + $0x58] sm:$0xf] }
  0x64   : > { %v6437_v19 = vld [vmem:[%s8735_s8 + $0x30] sm:$0xf]  ;;  %v729_v23 = vrot.slane %v727_v9, 4  ;;  %v585_v27 = vsel %vm8765_vm5, %v580_v8, %v584_v59  ;;  %v3819_v31 = vld [vmem:[%s8735_s8 + $0x54] sm:$0xe]  ;;  %v3897_v41 = vrot.slane %v9012_v18, 5 }
  0x65   : > { %v477_v24 = vshrl.u32 %v6437_v19, 16  ;;  %v8220_v28 = vld [vmem:[%s10601_s1 + $0x150] sm:$0xff]  ;;  %v595_v30 = vsel %vm8765_vm5, %v590_v12, %v594_v13  ;;  %v3821_v32 = vld [vmem:[%s8735_s8 + $0x5c] sm:$0x1]  ;;  %v728_v36 = vsel %vm8749_vm4, %v6483_v14, %v727_v9  ;;  %v6439_v37 = vld [vmem:[%s8735_s8 + $0x38] sm:$0x1] }
  0x66   : > { %v6712_v16 = vld [vmem:[#allocation2 + $0x90] sm:$0xf]  ;;  %v6438_v33 = vld [vmem:[%s8735_s8 + $0x34] sm:$0xf]  ;;  %v480_v39 = vshll.u32 %v6437_v19, 16  ;;  %3519 = vmatpush.bf16.msrb.mxu1 %v8220_v28  ;;  %v731_v40 = vsel %vm8749_vm4, %v729_v23, %v730_v15  ;;  %v8194_v44 = vld [vmem:[%s10601_s1 + $0x80] sm:$0xff] }
  0x67   : > { %v8128_v20 = vld [vmem:[#allocation2 + $0xb0] sm:$0xf0]  ;;  %3786 = vst [vmem:[#allocation2 + $0x90] sm:$0xf] %v3770_v7  ;;  %v479_v38 = vrot.slane %v477_v24, 4  ;;  %v486_v42 = vshll.u32 %v6438_v33, 16  ;;  %3374 = vmatpush.bf16.msrb.mxu2 %v8194_v44 }
  0x68   : > { %v6713_v25 = vor.u32 %v8128_v20, %v6712_v16  ;;  %3787 = vst [vmem:[#allocation2 + $0xb4] sm:$0xf] %v3771_v11  ;;  %v8124_v26 = vld [vmem:[#allocation2 + $0x94] sm:$0xf]  ;;  %v490_v43 = vshrl.u32 %v6438_v33, 16  ;;  %v482_v45 = vrot.slane %v480_v39, 5 }
  0x69   : > { %v6714_v29 = vld [vmem:[#allocation2 + $0xb4] sm:$0xf0]  ;;  %3922 = vst [vmem:[#allocation2 + $0x94] sm:$0xf] %v3863_v17  ;;  %v8202_v46 = vld [vmem:[%s10601_s1 + $0xc0] sm:$0xff]  ;;  %v488_v47 = vrot.slane %v486_v42, 5 }
  0x6a   : > { %3287 = vmatmul.bf16.gmra.mxu0 %v6713_v25  ;;  %v6717_v35 = vor.u32 %v8124_v26, %v6714_v29  ;;  %3923 = vst [vmem:[#allocation2 + $0xb8] sm:$0xf] %v3866_v22  ;;  %v492_v48 = vrot.slane %v490_v43, 4  ;;  %v496_v49 = vshll.u32 %v6439_v37, 16  ;;  %v8211_v50 = vld [vmem:[%s10601_s1 + $0x108] sm:$0xff]  ;;  %v7223_v51 = vrot.slane %v3819_v31, 9  ;;  %3423 = vmatpush.bf16.msrb.mxu3 %v8202_v46 }
  0x6b   : > { %626 = vst [vmem:[#allocation2 + $0x1f8] sm:$0xf] %v585_v27  ;;  %v3900_v52 = vrot.slane %v3821_v32, 5  ;;  %v483_v53 = vor.u32 %v482_v45, %v479_v38  ;;  %v6461_v54 = vld [vmem:[%s8735_s8 + $0x30] sm:$0xe]  ;;  %v3899_v55 = vrot.slane %v3897_v41, 4  ;;  %3471 = vmatpush.bf16.msrb.mxu0 %v8211_v50 }
  0x6c   : > { %3336 = vmatmul.bf16.gmra.mxu1 %v6717_v35  ;;  %627 = vst [vmem:[#allocation2 + $0x21c] sm:$0xf] %v595_v30  ;;  %v493_v56 = vor.u32 %v492_v48, %v488_v47  ;;  %v6462_v57 = vld [vmem:[%s8735_s8 + $0x34] sm:$0xf]  ;;  %v6463_v58 = vld [vmem:[%s8735_s8 + $0x38] sm:$0x1]  ;;  %v3898_v6 = vsel %vm8749_vm4, %v7223_v51, %v3897_v41 }
  0x6d   : > { %762 = vst [vmem:[#allocation2 + $0x1fc] sm:$0xf] %v728_v36  ;;  %v8219_v59 = vld [vmem:[%s10601_s1 + $0x148] sm:$0xff]  ;;  %v3780_v60 = vld [vmem:[%s8735_s8 + $0x54] sm:$0xf]  ;;  %v484_v61 = vrot.slane %v483_v53, 4  ;;  %v3901_v10 = vsel %vm8749_vm4, %v3899_v55, %v3900_v52 }
  0x6e   : > { %763 = vst [vmem:[#allocation2 + $0x220] sm:$0xf] %v731_v40  ;;  %v699_v62 = vrot.slane %v6462_v57, 5  ;;  %v8210_v63 = vld [vmem:[%s10601_s1 + $0x100] sm:$0xff]  ;;  %v3781_v0 = vld [vmem:[%s8735_s8 + $0x58] sm:$0xf]  ;;  %3520 = vmatpush.bf16.msrb.mxu1 %v8219_v59 }
  0x6f   : > { %v494_v1 = vrot.slane %v493_v56, 4  ;;  %v498_v2 = vrot.slane %v496_v49, 5  ;;  %v6479_v3 = vrot.slane %v6461_v54, 9  ;;  %v702_v4 = vrot.slane %v6463_v58, 5  ;;  %v9056_v7 = vld [vmem:[%s8735_s8 + $0x28] sm:$0xf]  ;;  %3472 = vmatpush.bf16.msrb.mxu0 %v8210_v63 }
  0x70   : > { %v6484_v8 = vld [vmem:[%s8735_s8 + $0xc] sm:$0xe]  ;;  %v701_v11 = vrot.slane %v699_v62, 4  ;;  %v489_v15 = vsel %vm8765_vm5, %v484_v61, %v488_v47  ;;  %v3807_v16 = vld [vmem:[%s8735_s8 + $0x24] sm:$0xe]  ;;  %v8233_v17 = vld [vmem:[%s10601_s1 + $0x1b8] sm:$0xff] }
  0x71   : > { %v792_v12 = vshrl.u32 %v6484_v8, 16  ;;  %v499_v19 = vsel %vm8765_vm5, %v494_v1, %v498_v2  ;;  %v6485_v20 = vld [vmem:[%s8735_s8 + $0x10] sm:$0xf]  ;;  %v700_v23 = vsel %vm8749_vm4, %v6479_v3, %v699_v62  ;;  %v3809_v24 = vld [vmem:[%s8735_s8 + $0x2c] sm:$0x1]  ;;  %v3869_v25 = vrot.slane %v9056_v7, 5  ;;  %3563 = vmatpush.bf16.msra.mxu2 %v8233_v17 }
  0x72   : > { %v6892_v5 = vld [vmem:[#allocation2 + $0x1f8] sm:$0xf]  ;;  %v6486_v26 = vld [vmem:[%s8735_s8 + $0x14] sm:$0x3]  ;;  %618 = vst [vmem:[#allocation2 + $0xd8] sm:$0xf] %v489_v15  ;;  %v703_v27 = vsel %vm8749_vm4, %v701_v11, %v702_v4 }
  0x73   : > { %v8173_v9 = vld [vmem:[#allocation2 + $0x218] sm:$0xf0]  ;;  %3796 = vst [vmem:[#allocation2 + $0x1f8] sm:$0xf] %v3780_v60  ;;  %v794_v28 = vrot.slane %v792_v12, 5  ;;  %v795_v29 = vshll.u32 %v6484_v8, 16 }
  0x74   : > { %v6893_v13 = vor.u32 %v8173_v9, %v6892_v5  ;;  %3797 = vst [vmem:[#allocation2 + $0x21c] sm:$0xf] %v3781_v0  ;;  %v8169_v14 = vld [vmem:[#allocation2 + $0x1fc] sm:$0xf]  ;;  %v801_v30 = vshrl.u32 %v6485_v20, 16  ;;  %v804_v31 = vshll.u32 %v6485_v20, 16 }
  0x75   : > { %v6894_v18 = vld [vmem:[#allocation2 + $0x21c] sm:$0xf0]  ;;  %3932 = vst [vmem:[#allocation2 + $0x1fc] sm:$0xf] %v3898_v6  ;;  %v811_v32 = vshrl.u32 %v6486_v26, 16  ;;  %v814_v33 = vshll.u32 %v6486_v26, 16 }
  0x76   : > { %3312 = vmatmul.bf16.gmra.mxu2 %v6893_v13  ;;  %v6897_v22 = vor.u32 %v8169_v14, %v6894_v18  ;;  %3933 = vst [vmem:[#allocation2 + $0x220] sm:$0xf] %v3901_v10  ;;  %v7219_v35 = vrot.slane %v3807_v16, 9  ;;  %v797_v36 = vrot.slane %v795_v29, 6  ;;  %v3772_v37 = vld [vmem:[%s8735_s8 + $0x24] sm:$0xf] }
  0x77   : > { %619 = vst [vmem:[#allocation2 + $0xfc] sm:$0xf] %v499_v19  ;;  %v803_v38 = vrot.slane %v801_v30, 5  ;;  %v806_v39 = vrot.slane %v804_v31, 6  ;;  %v813_v40 = vrot.slane %v811_v32, 5  ;;  %v816_v41 = vrot.slane %v814_v33, 6 }
  0x78   : > { %3361 = vmatmul.bf16.gmra.mxu3 %v6897_v22  ;;  %754 = vst [vmem:[#allocation2 + $0xdc] sm:$0xf] %v700_v23  ;;  %v3773_v42 = vld [vmem:[%s8735_s8 + $0x28] sm:$0xf]  ;;  %v3871_v43 = vrot.slane %v3869_v25, 4  ;;  %v3872_v44 = vrot.slane %v3809_v24, 5  ;;  %v798_v45 = vor.u32 %v797_v36, %v794_v28  ;;  %v3870_v60 = vsel %vm8749_vm4, %v7219_v35, %v3869_v25 }
  0x79   : > { %755 = vst [vmem:[#allocation2 + $0x100] sm:$0xf] %v703_v27  ;;  %v9080_v46 = vld [vmem:[%s8735_s8 + $0x4] sm:$0xf]  ;;  %v807_v47 = vor.u32 %v806_v39, %v803_v38  ;;  %v817_v48 = vor.u32 %v816_v41, %v813_v40  ;;  %v6508_v49 = vld [vmem:[%s8735_s8 + $0x18] sm:$0xf] }
  0x7a   : > { %v6509_v50 = vld [vmem:[%s8735_s8 + $0x1c] sm:$0xf]  ;;  %v799_v52 = vrot.slane %v798_v45, 4  ;;  %v3934_v53 = vld [vmem:[%s8735_s8] sm:$0xc]  ;;  %v1072_v56 = vshrl.u32 %v6508_v49, 16  ;;  %v3873_v2 = vsel %vm8749_vm4, %v3871_v43, %v3872_v44 }
  0x7b   : > { %v9092_v54 = vld [vmem:[%s8735_s8 + $0x8] sm:$0x3]  ;;  %v6510_v55 = vld [vmem:[%s8735_s8 + $0x20] sm:$0x1]  ;;  %v1075_v57 = vshll.u32 %v6508_v49, 16  ;;  %v1081_v58 = vshll.u32 %v6509_v50, 16 }
  0x7c   : > { %v6748_v59 = vld [vmem:[#allocation2 + $0xd8] sm:$0xf]  ;;  %v809_v61 = vrot.slane %v807_v47, 4  ;;  %v3987_v62 = vrot.slane %v9080_v46, 6  ;;  %v1085_v63 = vshrl.u32 %v6509_v50, 16  ;;  %v8218_v0 = vld [vmem:[%s10601_s1 + $0x140] sm:$0xff]  ;;  %v808_v7 = vsel %vm9086_vm10, %v799_v52, %v807_v47 }
  0x7d   : > { %3788 = vst [vmem:[#allocation2 + $0xd8] sm:$0xf] %v3772_v37  ;;  %v1074_v3 = vrot.slane %v1072_v56, 4  ;;  %v1077_v4 = vrot.slane %v1075_v57, 5  ;;  %v1083_v8 = vrot.slane %v1081_v58, 5  ;;  %3521 = vmatpush.bf16.msrb.mxu1 %v8218_v0  ;;  %v8241_v9 = vld [vmem:[%s10601_s1 + $0x1f8] sm:$0xff] }
  0x7e   : > { %v8137_v1 = vld [vmem:[#allocation2 + $0xf8] sm:$0xf0]  ;;  %v818_v11 = vsel %vm9086_vm10, %v809_v61, %v817_v48  ;;  %v1087_v13 = vrot.slane %v1085_v63, 4  ;;  %v1091_v14 = vshll.u32 %v6510_v55, 16  ;;  %v7224_v16 = vrot.slane %v3934_v53, 10  ;;  %3612 = vmatpush.bf16.msra.mxu3 %v8241_v9  ;;  %v8232_v9 = vld [vmem:[%s10601_s1 + $0x1b0] sm:$0xff] }
  0x7f   : > { %v6749_v5 = vor.u32 %v8137_v1, %v6748_v59  ;;  %3789 = vst [vmem:[#allocation2 + $0xfc] sm:$0xf] %v3773_v42  ;;  %v8133_v6 = vld [vmem:[#allocation2 + $0xdc] sm:$0xf]  ;;  %v1078_v12 = vor.u32 %v1077_v4, %v1074_v3  ;;  %v3989_v17 = vrot.slane %v3987_v62, 4  ;;  %v3990_v18 = vrot.slane %v9092_v54, 6  ;;  %3564 = vmatpush.bf16.msra.mxu2 %v8232_v9 }
  0x80   : > { %v6750_v10 = vld [vmem:[#allocation2 + $0xfc] sm:$0xf0]  ;;  %3924 = vst [vmem:[#allocation2 + $0xdc] sm:$0xf] %v3870_v60  ;;  %v1088_v22 = vor.u32 %v1087_v13, %v1083_v8  ;;  %v1093_v23 = vrot.slane %v1091_v14, 5  ;;  %v8249_v32 = vld [vmem:[%s10601_s1 + $0x238] sm:$0xff]  ;;  %v3988_v33 = vsel %vm9113_vm11, %v7224_v16, %v3987_v62 }
  0x81   : > { %3292 = vmatmul.bf16.gmra.mxu0 %v6749_v5  ;;  %v6753_v15 = vor.u32 %v8133_v6, %v6750_v10  ;;  %3925 = vst [vmem:[#allocation2 + $0x100] sm:$0xf] %v3873_v2  ;;  %v1079_v20 = vrot.slane %v1078_v12, 4  ;;  %v6394_v24 = vld [vmem:[%s8735_s8 + $0x18] sm:$0xe]  ;;  %v3991_v48 = vsel %vm9113_vm11, %v3989_v17, %v3990_v18  ;;  %s6390_s28 = sshll.u32 %s226_s27, 3 }
  0x82   : > { %1031 = vst [vmem:[#allocation2 + $0x8] sm:$0xf] %v808_v7  ;;  %v6395_v25 = vld [vmem:[%s8735_s8 + $0x1c] sm:$0xf]  ;;  %v6396_v26 = vld [vmem:[%s8735_s8 + $0x20] sm:$0x1]  ;;  %3661 = vmatpush.bf16.msra.mxu0 %v8249_v32  ;;  %s228_s7 = scalar_lea.vmem %s10604_s4, %s6390_s28 }
  0x83   : > { %3341 = vmatmul.bf16.gmra.mxu1 %v6753_v15  ;;  %1032 = vst [vmem:[#allocation2 + $0x2c] sm:$0xf] %v818_v11  ;;  %v1084_v27 = vsel %vm8765_vm5, %v1079_v20, %v1083_v8  ;;  %v1089_v28 = vrot.slane %v1088_v22, 4  ;;  %v6418_v29 = vrot.slane %v6394_v24, 9  ;;  %v287_v30 = vrot.slane %v6395_v25, 5  ;;  %v8330_v8 = vld [vmem:[%s10601_s1 + $0x278] sm:$0xff] }
  0x84   : > { %v6532_v31 = vld [vmem:[%s8735_s8 + $0x18] sm:$0xe]  ;;  %1279 = vst [vmem:[#allocation2 + $0xc] sm:$0xf] %v1084_v27  ;;  %v290_v35 = vrot.slane %v6396_v26, 5  ;;  %5576 = vmatpush.bf16.msra.mxu1 %v8330_v8  ;;  %s8395_s13 = sshll.u32 (%p8695_p5), %s8606_s17, 4 }
  0x85   : > { %v6533_v36 = vld [vmem:[%s8735_s8 + $0x1c] sm:$0xf]  ;;  %v1320_v37 = vshrl.u32 %v6532_v31, 16  ;;  %v1094_v38 = vsel %vm8765_vm5, %v1089_v28, %v1093_v23  ;;  %v288_v39 = vsel %vm8749_vm4, %v6418_v29, %v287_v30  ;;  %v289_v40 = vrot.slane %v287_v30, 4  ;;  %v6534_v41 = vld [vmem:[%s8735_s8 + $0x20] sm:$0x3] }
  0x86   : > { %v1323_v42 = vshll.u32 %v6532_v31, 16  ;;  %v9135_v43 = vld [vmem:[%s8735_s8 + $0x18] sm:$0xc]  ;;  %1280 = vst [vmem:[#allocation2 + $0x30] sm:$0xf] %v1094_v38  ;;  %v1329_v45 = vshrl.u32 %v6533_v36, 16 }
  0x87   : > { %v1322_v44 = vrot.slane %v1320_v37, 5  ;;  %v1332_v46 = vshll.u32 %v6533_v36, 16  ;;  %v1339_v47 = vshrl.u32 %v6534_v41, 16  ;;  %v7232_v49 = vld [vmem:[%s8735_s8 + $0x18] sm:$0xf]  ;;  %v291_v50 = vsel %vm8749_vm4, %v289_v40, %v290_v35  ;;  %v8240_v23 = vld [vmem:[%s10601_s1 + $0x1f0] sm:$0xff] }
  0x88   : > { %357 = vst [vmem:[#allocation2 + $0x10] sm:$0xf] %v288_v39  ;;  %v1325_v52 = vrot.slane %v1323_v42, 6  ;;  %v1342_v53 = vshll.u32 %v6534_v41, 16  ;;  %v7249_v54 = vld [vmem:[%s8735_s8 + $0x1c] sm:$0xf]  ;;  %3613 = vmatpush.bf16.msra.mxu3 %v8240_v23 }
  0x89   : > { %v6648_v55 = vld [vmem:[#allocation2 + $0x8] sm:$0xf]  ;;  %358 = vst [vmem:[#allocation2 + $0x34] sm:$0xf] %v291_v50  ;;  %v1331_v56 = vrot.slane %v1329_v45, 5  ;;  %v1334_v57 = vrot.slane %v1332_v46, 6 }
  0x8a   : > { %v8111_v58 = vld [vmem:[#allocation2 + $0x28] sm:$0xf0]  ;;  %4057 = vst [vmem:[#allocation2 + $0x8] sm:$0xf] %v3988_v33  ;;  %v7233_v59 = vld [vmem:[%s8735_s8 + $0x1c] sm:$0xf]  ;;  %v1326_v60 = vor.u32 %v1325_v52, %v1322_v44 }
  0x8b   : > { %v1341_v61 = vrot.slane %v1339_v47, 5  ;;  %v1344_v62 = vrot.slane %v1342_v53, 6  ;;  %v6649_v63 = vor.u32 %v8111_v58, %v6648_v55  ;;  %4058 = vst [vmem:[#allocation2 + $0x2c] sm:$0xf] %v3991_v48  ;;  %v1335_v0 = vor.u32 %v1334_v57, %v1331_v56  ;;  %v7250_v1 = vld [vmem:[%s8735_s8 + $0x20] sm:$0x3] }
  0x8c   : > { %v7272_v2 = vrot.slane %v9135_v43, 10  ;;  %v4155_v3 = vrot.slane %v7249_v54, 6  ;;  %v8107_v4 = vld [vmem:[#allocation2 + $0xc] sm:$0xf]  ;;  %v1327_v5 = vrot.slane %v1326_v60, 4  ;;  %v4158_v7 = vrot.slane %v7250_v1, 6 }
  0x8d   : > { %v1345_v6 = vor.u32 %v1344_v62, %v1341_v61  ;;  %3375 = vmatmul.bf16.vlgmr.msrb.gmra.mxu2 %v6649_v63  ;;  %4089 = vst [vmem:[#allocation2 + $0xc] sm:$0xf] %v7232_v49  ;;  %v1337_v10 = vrot.slane %v1335_v0, 4  ;;  %v6487_v12 = vld [vmem:[%s8735_s8 + $0x18] sm:$0xe]  ;;  %v8248_v45 = vld [vmem:[%s10601_s1 + $0x230] sm:$0xff] }
  0x8e   : > { %v4157_v11 = vrot.slane %v4155_v3, 4  ;;  %v6650_v13 = vld [vmem:[#allocation2 + $0x2c] sm:$0xf0]  ;;  %v1336_v14 = vsel %vm9086_vm10, %v1327_v5, %v1335_v0  ;;  %v6488_v15 = vld [vmem:[%s8735_s8 + $0x1c] sm:$0xf]  ;;  %v820_v22 = vshrl.u32 %v6487_v12, 16  ;;  %v4156_v40 = vsel %vm9113_vm11, %v7272_v2, %v4155_v3  ;;  %3662 = vmatpush.bf16.msra.mxu0 %v8248_v45 }
  0x8f   : > { %v6489_v16 = vld [vmem:[%s8735_s8 + $0x20] sm:$0x3]  ;;  %v6653_v17 = vor.u32 %v8107_v4, %v6650_v13  ;;  %4090 = vst [vmem:[#allocation2 + $0x30] sm:$0xf] %v7233_v59  ;;  %v6656_v18 = vld [vmem:[#allocation2 + $0x10] sm:$0xf]  ;;  %v1346_v20 = vsel %vm9086_vm10, %v1337_v10, %v1345_v6 }
  0x90   : > { %v8112_v24 = vld [vmem:[#allocation2 + $0x30] sm:$0xf0]  ;;  %1559 = vst [vmem:[#allocation2 + $0x14] sm:$0xf] %v1336_v14  ;;  %v823_v25 = vshll.u32 %v6487_v12, 16  ;;  %v829_v26 = vshrl.u32 %v6488_v15, 16  ;;  %v4159_v46 = vsel %vm9113_vm11, %v4157_v11, %v4158_v7 }
  0x91   : > { %3424 = vmatmul.bf16.vlgmr.msrb.gmra.mxu3 %v6653_v17  ;;  %v6657_v27 = vor.u32 %v8112_v24, %v6656_v18  ;;  %1560 = vst [vmem:[#allocation2 + $0x38] sm:$0xf] %v1346_v20  ;;  %v822_v28 = vrot.slane %v820_v22, 5  ;;  %v832_v29 = vshll.u32 %v6488_v15, 16  ;;  %v839_v30 = vshrl.u32 %v6489_v16, 16  ;;  %v8329_v20 = vld [vmem:[%s10601_s1 + $0x270] sm:$0xff] }
  0x92   : > { %v825_v31 = vrot.slane %v823_v25, 6  ;;  %v831_v32 = vrot.slane %v829_v26, 5  ;;  %v842_v33 = vshll.u32 %v6489_v16, 16  ;;  %v3937_v35 = vld [vmem:[%s8735_s8 + $0xc] sm:$0xc]  ;;  %5577 = vmatpush.bf16.msra.mxu1 %v8329_v20  ;;  %v8386_v51 = vld [vmem:[%s10601_s1 + $0x438] sm:$0xff] }
  0x93   : > { %3473 = vmatmul.bf16.vlgmr.msrb.gmra.mxu0 %v6657_v27  ;;  %v834_v36 = vrot.slane %v832_v29, 6  ;;  %v841_v37 = vrot.slane %v839_v30, 5  ;;  %v3938_v38 = vld [vmem:[%s8735_s8 + $0x10] sm:$0xf]  ;;  %v9165_v39 = vld [vmem:[%s8735_s8 + $0x14] sm:$0x3] }
  0x94   : > { %v826_v41 = vor.u32 %v825_v31, %v822_v28  ;;  %v844_v42 = vrot.slane %v842_v33, 6  ;;  %v3994_v43 = vrot.slane %v3938_v38, 6  ;;  %v6511_v44 = vld [vmem:[%s8735_s8 + $0x24] sm:$0xf]  ;;  %v7225_v48 = vrot.slane %v3937_v35, 10  ;;  %s8396_s9 = sshll.u32 (%p8695_p5), %s8610_s18, 6 }
  0x95   : > { %v835_v47 = vor.u32 %v834_v36, %v831_v32  ;;  %v6512_v49 = vld [vmem:[%s8735_s8 + $0x28] sm:$0xf]  ;;  %v6513_v50 = vld [vmem:[%s8735_s8 + $0x2c] sm:$0x1]  ;;  %v1096_v52 = vshrl.u32 %v6511_v44, 16  ;;  %v3997_v56 = vrot.slane %v9165_v39, 6  ;;  %s6092_s10 = sadd.s32 (%p8695_p5), %s8396_s9, %s8395_s13 }
  0x96   : > { %v827_v53 = vrot.slane %v826_v41, 4  ;;  %v845_v54 = vor.u32 %v844_v42, %v841_v37  ;;  %v3996_v55 = vrot.slane %v3994_v43, 4  ;;  %v1099_v60 = vshll.u32 %v6511_v44, 16  ;;  %v6397_v6 = vld [vmem:[%s8735_s8 + $0x24] sm:$0xe]  ;;  %s8103_s11 = sshll.u32 (%p8695_p5), %s6092_s10, 2 }
  0x97   : > { %v8108_v57 = vld [vmem:[#allocation2 + $0x14] sm:$0xf]  ;;  %v837_v58 = vrot.slane %v835_v47, 4  ;;  %v1098_v59 = vrot.slane %v1096_v52, 4  ;;  %v1105_v61 = vshll.u32 %v6512_v49, 16  ;;  %v1109_v0 = vshrl.u32 %v6512_v49, 16  ;;  %s6094_s12 = scalar_lea.vmem (%p8695_p5), %s10603_s3, %s8103_s11 }
  0x98   : > { %v6658_v62 = vld [vmem:[#allocation2 + $0x34] sm:$0xf0]  ;;  %4225 = vst [vmem:[#allocation2 + $0x14] sm:$0xf] %v4156_v40  ;;  %v836_v63 = vsel %vm9086_vm10, %v827_v53, %v835_v47  ;;  %v1115_v1 = vshll.u32 %v6513_v50, 16  ;;  %v1101_v4 = vrot.slane %v1099_v60, 5  ;;  %v3995_v14 = vsel %vm9113_vm11, %v7225_v48, %v3994_v43 }
  0x99   : > { %v6661_v2 = vor.u32 %v8108_v57, %v6658_v62  ;;  %4226 = vst [vmem:[#allocation2 + $0x38] sm:$0xf] %v4159_v46  ;;  %v846_v3 = vsel %vm9086_vm10, %v837_v58, %v845_v54  ;;  %v1107_v5 = vrot.slane %v1105_v61, 5  ;;  %v1111_v7 = vrot.slane %v1109_v0, 4  ;;  %v6398_v9 = vld [vmem:[%s8735_s8 + $0x28] sm:$0xf] }
  0x9a   : > { %1033 = vst [vmem:[#allocation2 + $0x50] sm:$0xf] %v836_v63  ;;  %v1117_v8 = vrot.slane %v1115_v1, 5  ;;  %v1102_v10 = vor.u32 %v1101_v4, %v1098_v59  ;;  %v6399_v11 = vld [vmem:[%s8735_s8 + $0x2c] sm:$0x1]  ;;  %v6419_v12 = vrot.slane %v6397_v6, 9  ;;  %v3998_v31 = vsel %vm9113_vm11, %v3996_v55, %v3997_v56 }
  0x9b   : > { %3522 = vmatmul.bf16.vlgmr.msrb.gmra.mxu1 %v6661_v2  ;;  %1034 = vst [vmem:[#allocation2 + $0x74] sm:$0xf] %v846_v3  ;;  %v294_v13 = vrot.slane %v6398_v9, 5  ;;  %v1112_v15 = vor.u32 %v1111_v7, %v1107_v5  ;;  %v297_v16 = vrot.slane %v6399_v11, 5  ;;  %v6535_v17 = vld [vmem:[%s8735_s8 + $0x24] sm:$0xe] }
  0x9c   : > { %v6536_v18 = vld [vmem:[%s8735_s8 + $0x28] sm:$0xf]  ;;  %v1103_v22 = vrot.slane %v1102_v10, 4  ;;  %v6537_v25 = vld [vmem:[%s8735_s8 + $0x2c] sm:$0x3]  ;;  %v1348_v26 = vshrl.u32 %v6535_v17, 16 }
  0x9d   : > { %v295_v23 = vsel %vm8749_vm4, %v6419_v12, %v294_v13  ;;  %v296_v24 = vrot.slane %v294_v13, 4  ;;  %v1113_v27 = vrot.slane %v1112_v15, 4  ;;  %v1351_v28 = vshll.u32 %v6535_v17, 16  ;;  %v7251_v40 = vld [vmem:[%s8735_s8 + $0x24] sm:$0xc]  ;;  %v8231_v62 = vld [vmem:[%s10601_s1 + $0x1a8] sm:$0xff] }
  0x9e   : > { %359 = vst [vmem:[#allocation2 + $0x58] sm:$0xf] %v295_v23  ;;  %v1357_v29 = vshrl.u32 %v6536_v18, 16  ;;  %v1360_v30 = vshll.u32 %v6536_v18, 16  ;;  %v1108_v32 = vsel %vm8765_vm5, %v1103_v22, %v1107_v5  ;;  %v1350_v33 = vrot.slane %v1348_v26, 5  ;;  %3565 = vmatpush.bf16.msra.mxu2 %v8231_v62 }
  0x9f   : > { %v1367_v35 = vshrl.u32 %v6537_v25, 16  ;;  %v1118_v36 = vsel %vm8765_vm5, %v1113_v27, %v1117_v8  ;;  %1281 = vst [vmem:[#allocation2 + $0x54] sm:$0xf] %v1108_v32  ;;  %v1353_v37 = vrot.slane %v1351_v28, 6  ;;  %v7252_v41 = vld [vmem:[%s8735_s8 + $0x28] sm:$0xf]  ;;  %v298_v43 = vsel %vm8749_vm4, %v296_v24, %v297_v16 }
  0xa0   : > { %v1359_v38 = vrot.slane %v1357_v29, 5  ;;  %v1362_v39 = vrot.slane %v1360_v30, 6  ;;  %1282 = vst [vmem:[#allocation2 + $0x78] sm:$0xf] %v1118_v36  ;;  %v1370_v45 = vshll.u32 %v6537_v25, 16  ;;  %v7273_v58 = vrot.slane %v7251_v40, 10 }
  0xa1   : > { %v6684_v42 = vld [vmem:[#allocation2 + $0x50] sm:$0xf]  ;;  %v1369_v44 = vrot.slane %v1367_v35, 5  ;;  %v1354_v47 = vor.u32 %v1353_v37, %v1350_v33  ;;  %v9206_v49 = vld [vmem:[%s8735_s8 + $0x2c] sm:$0x3]  ;;  %v4162_v59 = vrot.slane %v7252_v41, 6 }
  0xa2   : > { %v8120_v46 = vld [vmem:[#allocation2 + $0x70] sm:$0xf0]  ;;  %4059 = vst [vmem:[#allocation2 + $0x50] sm:$0xf] %v3995_v14  ;;  %v1363_v48 = vor.u32 %v1362_v39, %v1359_v38  ;;  %v7234_v52 = vld [vmem:[%s8735_s8 + $0x24] sm:$0xf] }
  0xa3   : > { %v6685_v50 = vor.u32 %v8120_v46, %v6684_v42  ;;  %4060 = vst [vmem:[#allocation2 + $0x74] sm:$0xf] %v3998_v31  ;;  %v1372_v53 = vrot.slane %v1370_v45, 6  ;;  %v7235_v54 = vld [vmem:[%s8735_s8 + $0x28] sm:$0xf]  ;;  %v1355_v55 = vrot.slane %v1354_v47, 4  ;;  %v4163_v24 = vsel %vm9113_vm11, %v7273_v58, %v4162_v59 }
  0xa4   : > { %360 = vst [vmem:[#allocation2 + $0x7c] sm:$0xf] %v298_v43  ;;  %v1365_v56 = vrot.slane %v1363_v48, 4  ;;  %v4165_v60 = vrot.slane %v9206_v49, 6  ;;  %v6490_v61 = vld [vmem:[%s8735_s8 + $0x24] sm:$0xe] }
  0xa5   : > { %3380 = vmatmul.bf16.gmra.mxu2 %v6685_v50  ;;  %v1373_v57 = vor.u32 %v1372_v53, %v1369_v44  ;;  %v1364_v63 = vsel %vm9086_vm10, %v1355_v55, %v1363_v48  ;;  %v6491_v0 = vld [vmem:[%s8735_s8 + $0x28] sm:$0xf]  ;;  %v6492_v1 = vld [vmem:[%s8735_s8 + $0x2c] sm:$0x3]  ;;  %v848_v2 = vshrl.u32 %v6490_v61, 16  ;;  %v851_v3 = vshll.u32 %v6490_v61, 16 }
  0xa6   : > { %v8116_v4 = vld [vmem:[#allocation2 + $0x54] sm:$0xf]  ;;  %v6692_v5 = vld [vmem:[#allocation2 + $0x58] sm:$0xf]  ;;  %1561 = vst [vmem:[#allocation2 + $0x5c] sm:$0xf] %v1364_v63 }
  0xa7   : > { %v1374_v6 = vsel %vm9086_vm10, %v1365_v56, %v1373_v57  ;;  %v857_v7 = vshrl.u32 %v6491_v0, 16  ;;  %v860_v8 = vshll.u32 %v6491_v0, 16  ;;  %v6686_v9 = vld [vmem:[#allocation2 + $0x74] sm:$0xf0]  ;;  %4091 = vst [vmem:[#allocation2 + $0x54] sm:$0xf] %v7234_v52 }
  0xa8   : > { %v850_v10 = vrot.slane %v848_v2, 5  ;;  %v853_v11 = vrot.slane %v851_v3, 6  ;;  %v6689_v12 = vor.u32 %v8116_v4, %v6686_v9  ;;  %4092 = vst [vmem:[#allocation2 + $0x78] sm:$0xf] %v7235_v54  ;;  %v867_v15 = vshrl.u32 %v6492_v1, 16  ;;  %v8239_v16 = vld [vmem:[%s10601_s1 + $0x1e8] sm:$0xff] }
  0xa9   : > { %v859_v13 = vrot.slane %v857_v7, 5  ;;  %v862_v14 = vrot.slane %v860_v8, 6  ;;  %1562 = vst [vmem:[#allocation2 + $0x80] sm:$0xf] %v1374_v6  ;;  %v4164_v17 = vrot.slane %v4162_v59, 4  ;;  %v870_v20 = vshll.u32 %v6492_v1, 16  ;;  %3614 = vmatpush.bf16.msra.mxu3 %v8239_v16 }
  0xaa   : > { %v854_v18 = vor.u32 %v853_v11, %v850_v10  ;;  %v3940_v22 = vld [vmem:[%s8735_s8 + $0x18] sm:$0xc]  ;;  %3429 = vmatmul.bf16.gmra.mxu3 %v6689_v12  ;;  %v869_v26 = vrot.slane %v867_v15, 5  ;;  %v3941_v27 = vld [vmem:[%s8735_s8 + $0x1c] sm:$0xf]  ;;  %v8247_v33 = vld [vmem:[%s10601_s1 + $0x228] sm:$0xff] }
  0xab   : > { %v8121_v23 = vld [vmem:[#allocation2 + $0x78] sm:$0xf0]  ;;  %v863_v25 = vor.u32 %v862_v14, %v859_v13  ;;  %v872_v30 = vrot.slane %v870_v20, 6  ;;  %v3942_v31 = vld [vmem:[%s8735_s8 + $0x20] sm:$0x3]  ;;  %v4001_v32 = vrot.slane %v3941_v27, 6  ;;  %v4166_v39 = vsel %vm9113_vm11, %v4164_v17, %v4165_v60  ;;  %3663 = vmatpush.bf16.msra.mxu0 %v8247_v33 }
  0xac   : > { %v6693_v28 = vor.u32 %v8121_v23, %v6692_v5  ;;  %v855_v29 = vrot.slane %v854_v18, 4  ;;  %v6514_v36 = vld [vmem:[%s8735_s8 + $0x30] sm:$0xf]  ;;  %v6515_v37 = vld [vmem:[%s8735_s8 + $0x34] sm:$0xf]  ;;  %v7226_v42 = vrot.slane %v3940_v22, 10 }
  0xad   : > { %v865_v35 = vrot.slane %v863_v25, 4  ;;  %v8117_v38 = vld [vmem:[#allocation2 + $0x5c] sm:$0xf]  ;;  %v873_v41 = vor.u32 %v872_v30, %v869_v26  ;;  %v6516_v43 = vld [vmem:[%s8735_s8 + $0x38] sm:$0x1]  ;;  %v8328_v44 = vld [vmem:[%s10601_s1 + $0x268] sm:$0xff] }
  0xae   : > { %3478 = vmatmul.bf16.gmra.mxu0 %v6693_v28  ;;  %v864_v40 = vsel %vm9086_vm10, %v855_v29, %v863_v25  ;;  %4227 = vst [vmem:[#allocation2 + $0x5c] sm:$0xf] %v4163_v24  ;;  %v1120_v45 = vshrl.u32 %v6514_v36, 16  ;;  %v1123_v46 = vshll.u32 %v6514_v36, 16  ;;  %v1129_v47 = vshll.u32 %v6515_v37, 16  ;;  %5578 = vmatpush.bf16.msra.mxu1 %v8328_v44 }
  0xaf   : > { %v1133_v48 = vshrl.u32 %v6515_v37, 16  ;;  %v874_v49 = vsel %vm9086_vm10, %v865_v35, %v873_v41  ;;  %1035 = vst [vmem:[#allocation2 + $0x98] sm:$0xf] %v864_v40  ;;  %v4003_v50 = vrot.slane %v4001_v32, 4  ;;  %v4004_v52 = vrot.slane %v3942_v31, 6  ;;  %v8230_v41 = vld [vmem:[%s10601_s1 + $0x1a0] sm:$0xff] }
  0xb0   : > { %v1139_v53 = vshll.u32 %v6516_v43, 16  ;;  %v6694_v54 = vld [vmem:[#allocation2 + $0x7c] sm:$0xf0]  ;;  %1036 = vst [vmem:[#allocation2 + $0xbc] sm:$0xf] %v874_v49  ;;  %v1122_v55 = vrot.slane %v1120_v45, 4  ;;  %v4002_v5 = vsel %vm9113_vm11, %v7226_v42, %v4001_v32  ;;  %3566 = vmatpush.bf16.msra.mxu2 %v8230_v41 }
  0xb1   : > { %v1125_v56 = vrot.slane %v1123_v46, 5  ;;  %v6697_v57 = vor.u32 %v8117_v38, %v6694_v54  ;;  %4228 = vst [vmem:[#allocation2 + $0x80] sm:$0xf] %v4166_v39  ;;  %v1131_v58 = vrot.slane %v1129_v47, 5  ;;  %v1135_v59 = vrot.slane %v1133_v48, 4 }
  0xb2   : > { %v1141_v61 = vrot.slane %v1139_v53, 5  ;;  %v6400_v62 = vld [vmem:[%s8735_s8 + $0x30] sm:$0xe]  ;;  %v6401_v63 = vld [vmem:[%s8735_s8 + $0x34] sm:$0xf]  ;;  %v4005_v6 = vsel %vm9113_vm11, %v4003_v50, %v4004_v52 }
  0xb3   : > { %v1126_v60 = vor.u32 %v1125_v56, %v1122_v55  ;;  %3527 = vmatmul.bf16.gmra.mxu1 %v6697_v57  ;;  %v1136_v0 = vor.u32 %v1135_v59, %v1131_v58  ;;  %v6402_v1 = vld [vmem:[%s8735_s8 + $0x38] sm:$0x1]  ;;  %v6420_v2 = vrot.slane %v6400_v62, 9  ;;  %v301_v3 = vrot.slane %v6401_v63, 5  ;;  %v6538_v4 = vld [vmem:[%s8735_s8 + $0x30] sm:$0xe] }
  0xb4   : > { %v304_v8 = vrot.slane %v6402_v1, 5  ;;  %v6539_v9 = vld [vmem:[%s8735_s8 + $0x34] sm:$0xf]  ;;  %v6540_v13 = vld [vmem:[%s8735_s8 + $0x38] sm:$0x3]  ;;  %v1376_v14 = vshrl.u32 %v6538_v4, 16 }
  0xb5   : > { %v1127_v7 = vrot.slane %v1126_v60, 4  ;;  %v1137_v10 = vrot.slane %v1136_v0, 4  ;;  %v302_v11 = vsel %vm8749_vm4, %v6420_v2, %v301_v3  ;;  %v303_v12 = vrot.slane %v301_v3, 4  ;;  %v7254_v26 = vld [vmem:[%s8735_s8 + $0x30] sm:$0xc]  ;;  %v8238_v60 = vld [vmem:[%s10601_s1 + $0x1e0] sm:$0xff] }
  0xb6   : > { %v6720_v15 = vld [vmem:[#allocation2 + $0x98] sm:$0xf]  ;;  %361 = vst [vmem:[#allocation2 + $0xa0] sm:$0xf] %v302_v11  ;;  %v1379_v17 = vshll.u32 %v6538_v4, 16  ;;  %v1385_v18 = vshrl.u32 %v6539_v9, 16  ;;  %3615 = vmatpush.bf16.msra.mxu3 %v8238_v60 }
  0xb7   : > { %v1132_v16 = vsel %vm8765_vm5, %v1127_v7, %v1131_v58  ;;  %v8129_v20 = vld [vmem:[#allocation2 + $0xb8] sm:$0xf0]  ;;  %4061 = vst [vmem:[#allocation2 + $0x98] sm:$0xf] %v4002_v5  ;;  %v1142_v22 = vsel %vm8765_vm5, %v1137_v10, %v1141_v61  ;;  %v305_v23 = vsel %vm8749_vm4, %v303_v12, %v304_v8  ;;  %v1378_v24 = vrot.slane %v1376_v14, 5 }
  0xb8   : > { %v1388_v25 = vshll.u32 %v6539_v9, 16  ;;  %v6721_v27 = vor.u32 %v8129_v20, %v6720_v15  ;;  %4062 = vst [vmem:[#allocation2 + $0xbc] sm:$0xf] %v4005_v6  ;;  %v1381_v28 = vrot.slane %v1379_v17, 6  ;;  %v1387_v29 = vrot.slane %v1385_v18, 5 }
  0xb9   : > { %v1395_v30 = vshrl.u32 %v6540_v13, 16  ;;  %1283 = vst [vmem:[#allocation2 + $0x9c] sm:$0xf] %v1132_v16  ;;  %v1398_v32 = vshll.u32 %v6540_v13, 16  ;;  %v7255_v33 = vld [vmem:[%s8735_s8 + $0x34] sm:$0xf] }
  0xba   : > { %v1390_v31 = vrot.slane %v1388_v25, 6  ;;  %3385 = vmatmul.bf16.gmra.mxu2 %v6721_v27  ;;  %1284 = vst [vmem:[#allocation2 + $0xc0] sm:$0xf] %v1142_v22  ;;  %v1382_v35 = vor.u32 %v1381_v28, %v1378_v24  ;;  %v7256_v37 = vld [vmem:[%s8735_s8 + $0x38] sm:$0x3]  ;;  %v4169_v40 = vrot.slane %v7255_v33, 6 }
  0xbb   : > { %v1397_v36 = vrot.slane %v1395_v30, 5  ;;  %362 = vst [vmem:[#allocation2 + $0xc4] sm:$0xf] %v305_v23  ;;  %v1400_v39 = vrot.slane %v1398_v32, 6  ;;  %v7236_v42 = vld [vmem:[%s8735_s8 + $0x30] sm:$0xf] }
  0xbc   : > { %v1391_v38 = vor.u32 %v1390_v31, %v1387_v29  ;;  %v1383_v43 = vrot.slane %v1382_v35, 4  ;;  %v7274_v44 = vrot.slane %v7254_v26, 10  ;;  %v6493_v45 = vld [vmem:[%s8735_s8 + $0x30] sm:$0xe]  ;;  %v6494_v46 = vld [vmem:[%s8735_s8 + $0x34] sm:$0xf] }
  0xbd   : > { %v7237_v47 = vld [vmem:[%s8735_s8 + $0x34] sm:$0xf]  ;;  %v1401_v49 = vor.u32 %v1400_v39, %v1397_v36  ;;  %v4171_v50 = vrot.slane %v4169_v40, 4  ;;  %v4172_v52 = vrot.slane %v7256_v37, 6  ;;  %v6495_v53 = vld [vmem:[%s8735_s8 + $0x38] sm:$0x3] }
  0xbe   : > { %v1393_v48 = vrot.slane %v1391_v38, 4  ;;  %v6728_v54 = vld [vmem:[#allocation2 + $0xa0] sm:$0xf]  ;;  %v1392_v55 = vsel %vm9086_vm10, %v1383_v43, %v1391_v38  ;;  %v876_v56 = vshrl.u32 %v6493_v45, 16  ;;  %v879_v57 = vshll.u32 %v6493_v45, 16 }
  0xbf   : > { %v885_v58 = vshrl.u32 %v6494_v46, 16  ;;  %v9276_v59 = vld [vmem:[%s8735_s8 + $0x24] sm:$0xc]  ;;  %1563 = vst [vmem:[#allocation2 + $0xa4] sm:$0xf] %v1392_v55  ;;  %v888_v62 = vshll.u32 %v6494_v46, 16  ;;  %v4170_v5 = vsel %vm9113_vm11, %v7274_v44, %v4169_v40  ;;  %v4173_v26 = vsel %vm9113_vm11, %v4171_v50, %v4172_v52 }
  0xc0   : > { %v1402_v61 = vsel %vm9086_vm10, %v1393_v48, %v1401_v49  ;;  %v895_v63 = vshrl.u32 %v6495_v53, 16  ;;  %v9284_v0 = vld [vmem:[%s8735_s8 + $0x28] sm:$0xf]  ;;  %v8125_v1 = vld [vmem:[#allocation2 + $0x9c] sm:$0xf]  ;;  %v878_v2 = vrot.slane %v876_v56, 5 }
  0xc1   : > { %1564 = vst [vmem:[#allocation2 + $0xc8] sm:$0xf] %v1402_v61  ;;  %v881_v3 = vrot.slane %v879_v57, 6  ;;  %v6722_v4 = vld [vmem:[#allocation2 + $0xbc] sm:$0xf0]  ;;  %v887_v6 = vrot.slane %v885_v58, 5 }
  0xc2   : > { %4093 = vst [vmem:[#allocation2 + $0x9c] sm:$0xf] %v7236_v42  ;;  %v890_v7 = vrot.slane %v888_v62, 6  ;;  %v6725_v8 = vor.u32 %v8125_v1, %v6722_v4  ;;  %v8130_v9 = vld [vmem:[#allocation2 + $0xc0] sm:$0xf0]  ;;  %v897_v11 = vrot.slane %v895_v63, 5 }
  0xc3   : > { %4094 = vst [vmem:[#allocation2 + $0xc0] sm:$0xf] %v7237_v47  ;;  %v882_v10 = vor.u32 %v881_v3, %v878_v2  ;;  %v898_v12 = vshll.u32 %v6495_v53, 16  ;;  %v6729_v13 = vor.u32 %v8130_v9, %v6728_v54  ;;  %v9289_v15 = vld [vmem:[%s8735_s8 + $0x2c] sm:$0x3]  ;;  %v7227_v16 = vrot.slane %v9276_v59, 10 }
  0xc4   : > { %v891_v14 = vor.u32 %v890_v7, %v887_v6  ;;  %v4008_v17 = vrot.slane %v9284_v0, 6  ;;  %v6517_v18 = vld [vmem:[%s8735_s8 + $0x3c] sm:$0xf]  ;;  %3434 = vmatmul.bf16.gmra.mxu3 %v6725_v8  ;;  %v4011_v23 = vrot.slane %v9289_v15, 6  ;;  %v6518_v24 = vld [vmem:[%s8735_s8 + $0x40] sm:$0xf] }
  0xc5   : > { %v883_v20 = vrot.slane %v882_v10, 4  ;;  %v900_v22 = vrot.slane %v898_v12, 6  ;;  %v1144_v25 = vshrl.u32 %v6517_v18, 16  ;;  %3483 = vmatmul.bf16.gmra.mxu0 %v6729_v13  ;;  %v6519_v29 = vld [vmem:[%s8735_s8 + $0x44] sm:$0x1]  ;;  %v1147_v30 = vshll.u32 %v6517_v18, 16 }
  0xc6   : > { %v893_v27 = vrot.slane %v891_v14, 4  ;;  %v4010_v28 = vrot.slane %v4008_v17, 4  ;;  %v8246_v31 = vld [vmem:[%s10601_s1 + $0x220] sm:$0xff]  ;;  %v1153_v37 = vshll.u32 %v6518_v24, 16  ;;  %v1157_v40 = vshrl.u32 %v6518_v24, 16 }
  0xc7   : > { %v8126_v32 = vld [vmem:[#allocation2 + $0xa4] sm:$0xf]  ;;  %v892_v33 = vsel %vm9086_vm10, %v883_v20, %v891_v14  ;;  %v901_v35 = vor.u32 %v900_v22, %v897_v11  ;;  %v1146_v36 = vrot.slane %v1144_v25, 4  ;;  %v1149_v39 = vrot.slane %v1147_v30, 5  ;;  %3664 = vmatpush.bf16.msra.mxu0 %v8246_v31  ;;  %v6403_v47 = vld [vmem:[%s8735_s8 + $0x3c] sm:$0xe] }
  0xc8   : > { %v6730_v38 = vld [vmem:[#allocation2 + $0xc4] sm:$0xf0]  ;;  %4229 = vst [vmem:[#allocation2 + $0xa4] sm:$0xf] %v4170_v5  ;;  %v1155_v43 = vrot.slane %v1153_v37, 5  ;;  %v1163_v44 = vshll.u32 %v6519_v29, 16  ;;  %v4009_v58 = vsel %vm9113_vm11, %v7227_v16, %v4008_v17  ;;  %v4012_v8 = vsel %vm9113_vm11, %v4010_v28, %v4011_v23 }
  0xc9   : > { %v6733_v41 = vor.u32 %v8126_v32, %v6730_v38  ;;  %4230 = vst [vmem:[#allocation2 + $0xc8] sm:$0xf] %v4173_v26  ;;  %v902_v42 = vsel %vm9086_vm10, %v893_v27, %v901_v35  ;;  %v1150_v45 = vor.u32 %v1149_v39, %v1146_v36  ;;  %v1159_v46 = vrot.slane %v1157_v40, 4  ;;  %v8327_v48 = vld [vmem:[%s10601_s1 + $0x260] sm:$0xff]  ;;  %v6541_v57 = vld [vmem:[%s8735_s8 + $0x3c] sm:$0xe]  ;;  %v3278_v32 = vpop.f32.mrf.mxu0 }
  0xca   : > { %1037 = vst [vmem:[#allocation2 + $0xe0] sm:$0xf] %v892_v33  ;;  %v1165_v49 = vrot.slane %v1163_v44, 5  ;;  %v6404_v50 = vld [vmem:[%s8735_s8 + $0x40] sm:$0xf]  ;;  %v6421_v52 = vrot.slane %v6403_v47, 9  ;;  %5579 = vmatpush.bf16.msra.mxu1 %v8327_v48 }
  0xcb   : > { %3532 = vmatmul.bf16.gmra.mxu1 %v6733_v41  ;;  %1038 = vst [vmem:[#allocation2 + $0x104] sm:$0xf] %v902_v42  ;;  %v1151_v53 = vrot.slane %v1150_v45, 4  ;;  %v1160_v54 = vor.u32 %v1159_v46, %v1155_v43  ;;  %v6405_v55 = vld [vmem:[%s8735_s8 + $0x44] sm:$0x1]  ;;  %v308_v56 = vrot.slane %v6404_v50, 5  ;;  %v3327_v46 = vpop.f32.mrf.mxu1 }
  0xcc   : > { %v311_v59 = vrot.slane %v6405_v55, 5  ;;  %v6542_v60 = vld [vmem:[%s8735_s8 + $0x40] sm:$0xf]  ;;  %v6543_v61 = vld [vmem:[%s8735_s8 + $0x44] sm:$0x3]  ;;  %v1404_v62 = vshrl.u32 %v6541_v57, 16 }
  0xcd   : > { %v1156_v63 = vsel %vm8765_vm5, %v1151_v53, %v1155_v43  ;;  %v1161_v0 = vrot.slane %v1160_v54, 4  ;;  %v309_v1 = vsel %vm8749_vm4, %v6421_v52, %v308_v56  ;;  %v310_v2 = vrot.slane %v308_v56, 4  ;;  %v9322_v7 = vld [vmem:[%s8735_s8 + $0x3c] sm:$0xc]  ;;  %v9329_v12 = vld [vmem:[%s8735_s8 + $0x40] sm:$0xf]  ;;  %v3298_v53 = vpop.f32.mrf.mxu2 }
  0xce   : > { %1285 = vst [vmem:[#allocation2 + $0xe4] sm:$0xf] %v1156_v63  ;;  %v1406_v3 = vrot.slane %v1404_v62, 5  ;;  %v1407_v4 = vshll.u32 %v6541_v57, 16  ;;  %v1413_v5 = vshrl.u32 %v6542_v60, 16  ;;  %v1416_v6 = vshll.u32 %v6542_v60, 16 }
  0xcf   : > { %v1166_v9 = vsel %vm8765_vm5, %v1161_v0, %v1165_v49  ;;  %363 = vst [vmem:[#allocation2 + $0xe8] sm:$0xf] %v309_v1  ;;  %v1423_v10 = vshrl.u32 %v6543_v61, 16  ;;  %v1426_v11 = vshll.u32 %v6543_v61, 16  ;;  %v312_v14 = vsel %vm8749_vm4, %v310_v2, %v311_v59  ;;  %v9334_v17 = vld [vmem:[%s8735_s8 + $0x44] sm:$0x3] }
  0xd0   : > { %1286 = vst [vmem:[#allocation2 + $0x108] sm:$0xf] %v1166_v9  ;;  %v1409_v15 = vrot.slane %v1407_v4, 6  ;;  %v1415_v16 = vrot.slane %v1413_v5, 5  ;;  %v7238_v20 = vld [vmem:[%s8735_s8 + $0x3c] sm:$0xf] }
  0xd1   : > { %v6756_v13 = vld [vmem:[#allocation2 + $0xe0] sm:$0xf]  ;;  %v1418_v22 = vrot.slane %v1416_v6, 6  ;;  %v1425_v23 = vrot.slane %v1423_v10, 5  ;;  %v1428_v26 = vrot.slane %v1426_v11, 6  ;;  %v7275_v30 = vrot.slane %v9322_v7, 10 }
  0xd2   : > { %v8138_v18 = vld [vmem:[#allocation2 + $0x100] sm:$0xf0]  ;;  %4063 = vst [vmem:[#allocation2 + $0xe0] sm:$0xf] %v4009_v58  ;;  %v1410_v25 = vor.u32 %v1409_v15, %v1406_v3  ;;  %v9340_v27 = vld [vmem:[%s10602_s2] ss:$0 sm:$0xff]  ;;  %v3347_v15 = vpop.f32.mrf.mxu3 }
  0xd3   : > { %v6757_v24 = vor.u32 %v8138_v18, %v6756_v13  ;;  %4064 = vst [vmem:[#allocation2 + $0x104] sm:$0xf] %v4012_v8  ;;  %v7239_v28 = vld [vmem:[%s8735_s8 + $0x40] sm:$0xf]  ;;  %v1419_v29 = vor.u32 %v1418_v22, %v1415_v16  ;;  %v4176_v31 = vrot.slane %v9329_v12, 6  ;;  %v1429_v36 = vor.u32 %v1428_v26, %v1425_v23  ;;  %v8229_v45 = vld [vmem:[%s10601_s1 + $0x198] sm:$0xff] }
  0xd4   : > { %364 = vst [vmem:[#allocation2 + $0x10c] sm:$0xf] %v312_v14  ;;  %v6496_v33 = vld [vmem:[%s8735_s8 + $0x3c] sm:$0xe]  ;;  %v1411_v35 = vrot.slane %v1410_v25, 4  ;;  %v3279_v37 = vadd.f32 %v9340_v27, %v3278_v32  ;;  %v4179_v43 = vrot.slane %v9334_v17, 6  ;;  %3567 = vmatpush.bf16.msra.mxu2 %v8229_v45  ;;  %v3299_v3 = vadd.f32 %v9340_v27, %v3298_v53 }
  0xd5   : > { %3390 = vmatmul.bf16.gmra.mxu2 %v6757_v24  ;;  %v6497_v38 = vld [vmem:[%s8735_s8 + $0x40] sm:$0xf]  ;;  %v6498_v39 = vld [vmem:[%s8735_s8 + $0x44] sm:$0x3]  ;;  %v904_v40 = vshrl.u32 %v6496_v33, 16  ;;  %v1421_v42 = vrot.slane %v1419_v29, 4  ;;  %v4177_v5 = vsel %vm9113_vm11, %v7275_v30, %v4176_v31 }
  0xd6   : > { %v8134_v41 = vld [vmem:[#allocation2 + $0xe4] sm:$0xf]  ;;  %v907_v44 = vshll.u32 %v6496_v33, 16  ;;  %v6764_v47 = vld [vmem:[#allocation2 + $0xe8] sm:$0xf]  ;;  %v1420_v48 = vsel %vm9086_vm10, %v1411_v35, %v1419_v29  ;;  %v913_v50 = vshrl.u32 %v6497_v38, 16  ;;  %v9355_v52 = vadd.f32 %v3327_v46, %v3279_v37 }
  0xd7   : > { %4095 = vst [vmem:[#allocation2 + $0xe4] sm:$0xf] %v7238_v20  ;;  %v906_v49 = vrot.slane %v904_v40, 5  ;;  %v6758_v54 = vld [vmem:[#allocation2 + $0x104] sm:$0xf0]  ;;  %v1430_v55 = vsel %vm9086_vm10, %v1421_v42, %v1429_v36  ;;  %v916_v57 = vshll.u32 %v6497_v38, 16  ;;  %v9370_v22 = vadd.f32 %v3347_v15, %v3299_v3 }
  0xd8   : > { %1565 = vst [vmem:[#allocation2 + $0xec] sm:$0xf] %v1420_v48  ;;  %v909_v56 = vrot.slane %v907_v44, 6  ;;  %v6761_v58 = vor.u32 %v8134_v41, %v6758_v54  ;;  %v915_v59 = vrot.slane %v913_v50, 5  ;;  %v923_v60 = vshrl.u32 %v6498_v39, 16  ;;  %v8237_v62 = vld [vmem:[%s10601_s1 + $0x1d8] sm:$0xff] }
  0xd9   : > { %4096 = vst [vmem:[#allocation2 + $0x108] sm:$0xf] %v7239_v28  ;;  %v926_v61 = vshll.u32 %v6498_v39, 16  ;;  %v4178_v63 = vrot.slane %v4176_v31, 4  ;;  %v918_v1 = vrot.slane %v916_v57, 6  ;;  %3616 = vmatpush.bf16.msra.mxu3 %v8237_v62  ;;  %v8245_v29 = vld [vmem:[%s10601_s1 + $0x218] sm:$0xff]  ;;  %v9382_v39 = vpop.f32.mrf.mxu0 }
  0xda   : > { %1566 = vst [vmem:[#allocation2 + $0x110] sm:$0xf] %v1430_v55  ;;  %v910_v0 = vor.u32 %v909_v56, %v906_v49  ;;  %v3946_v2 = vld [vmem:[%s8735_s8 + $0x30] sm:$0xc]  ;;  %3439 = vmatmul.bf16.gmra.mxu3 %v6761_v58  ;;  %v925_v6 = vrot.slane %v923_v60, 5  ;;  %3665 = vmatpush.bf16.msra.mxu0 %v8245_v29  ;;  %v8326_v40 = vld [vmem:[%s10601_s1 + $0x258] sm:$0xff]  ;;  %v9392_v58 = vpop.f32.mrf.mxu1  ;;  %v9409_v15 = vpop.f32.mrf.mxu3 }
  0xdb   : > { %v8139_v4 = vld [vmem:[#allocation2 + $0x108] sm:$0xf0]  ;;  %v928_v7 = vrot.slane %v926_v61, 6  ;;  %v3947_v8 = vld [vmem:[%s8735_s8 + $0x34] sm:$0xf]  ;;  %v919_v11 = vor.u32 %v918_v1, %v915_v59  ;;  %v7228_v13 = vrot.slane %v3946_v2, 10  ;;  %v4180_v31 = vsel %vm9113_vm11, %v4178_v63, %v4179_v43  ;;  %5580 = vmatpush.bf16.msra.mxu1 %v8326_v40  ;;  %v9394_v59 = vpop.f32.mrf.mxu2 }
  0xdc   : > { %v6765_v9 = vor.u32 %v8139_v4, %v6764_v47  ;;  %v911_v10 = vrot.slane %v910_v0, 4  ;;  %v3948_v12 = vld [vmem:[%s8735_s8 + $0x38] sm:$0x3]  ;;  %v6520_v14 = vld [vmem:[%s8735_s8 + $0x48] sm:$0xf]  ;;  %v4015_v17 = vrot.slane %v3947_v8, 6 }
  0xdd   : > { %v929_v16 = vor.u32 %v928_v7, %v925_v6  ;;  %v4018_v18 = vrot.slane %v3948_v12, 6  ;;  %v6521_v20 = vld [vmem:[%s8735_s8 + $0x4c] sm:$0xf]  ;;  %v921_v24 = vrot.slane %v919_v11, 4  ;;  %v6522_v25 = vld [vmem:[%s8735_s8 + $0x50] sm:$0x1] }
  0xde   : > { %3488 = vmatmul.bf16.gmra.mxu0 %v6765_v9  ;;  %v920_v23 = vsel %vm9086_vm10, %v911_v10, %v919_v11  ;;  %v1168_v26 = vshrl.u32 %v6520_v14, 16  ;;  %v1171_v28 = vshll.u32 %v6520_v14, 16  ;;  %v4017_v32 = vrot.slane %v4015_v17, 4  ;;  %v6406_v49 = vld [vmem:[%s8735_s8 + $0x48] sm:$0xe]  ;;  %10614 = vst [vmem:[#allocation4_spill] sm:$0xff] %v9394_v59 }
  0xdf   : > { %v8135_v30 = vld [vmem:[#allocation2 + $0xec] sm:$0xf]  ;;  %1039 = vst [vmem:[#allocation2 + $0x128] sm:$0xf] %v920_v23  ;;  %v1177_v33 = vshll.u32 %v6521_v20, 16  ;;  %v930_v35 = vsel %vm9086_vm10, %v921_v24, %v929_v16  ;;  %v1181_v38 = vshrl.u32 %v6521_v20, 16  ;;  %v4016_v47 = vsel %vm9113_vm11, %v7228_v13, %v4015_v17 }
  0xe0   : > { %4231 = vst [vmem:[#allocation2 + $0xec] sm:$0xf] %v4177_v5  ;;  %v1170_v36 = vrot.slane %v1168_v26, 4  ;;  %v1173_v37 = vrot.slane %v1171_v28, 5  ;;  %v1187_v43 = vshll.u32 %v6522_v25, 16  ;;  %v6422_v56 = vrot.slane %v6406_v49, 9 }
  0xe1   : > { %v6766_v41 = vld [vmem:[#allocation2 + $0x10c] sm:$0xf0]  ;;  %1040 = vst [vmem:[#allocation2 + $0x14c] sm:$0xf] %v930_v35  ;;  %v1179_v42 = vrot.slane %v1177_v33, 5  ;;  %v1183_v46 = vrot.slane %v1181_v38, 4  ;;  %v4019_v60 = vsel %vm9113_vm11, %v4017_v32, %v4018_v18  ;;  %v3283_v26 = vpop.f32.mrf.mxu0 }
  0xe2   : > { %v6769_v44 = vor.u32 %v8135_v30, %v6766_v41  ;;  %4232 = vst [vmem:[#allocation2 + $0x110] sm:$0xf] %v4180_v31  ;;  %v1174_v45 = vor.u32 %v1173_v37, %v1170_v36  ;;  %v1189_v48 = vrot.slane %v1187_v43, 5  ;;  %v6407_v50 = vld [vmem:[%s8735_s8 + $0x4c] sm:$0xf]  ;;  %v3284_v41 = vadd.f32 %v9340_v27, %v3283_v26  ;;  %v3332_v49 = vpop.f32.mrf.mxu1 }
  0xe3   : > { %v1184_v54 = vor.u32 %v1183_v46, %v1179_v42  ;;  %v6408_v55 = vld [vmem:[%s8735_s8 + $0x50] sm:$0x1]  ;;  %v315_v57 = vrot.slane %v6407_v50, 5  ;;  %v6544_v62 = vld [vmem:[%s8735_s8 + $0x48] sm:$0xe]  ;;  %10615 = vst [vmem:[#allocation5_spill] sm:$0xff] %v9409_v15  ;;  %v3303_v50 = vpop.f32.mrf.mxu2 }
  0xe4   : > { %3537 = vmatmul.bf16.gmra.mxu1 %v6769_v44  ;;  %v1175_v53 = vrot.slane %v1174_v45, 4  ;;  %v318_v61 = vrot.slane %v6408_v55, 5  ;;  %v6545_v63 = vld [vmem:[%s8735_s8 + $0x4c] sm:$0xf]  ;;  %v6546_v5 = vld [vmem:[%s8735_s8 + $0x50] sm:$0x3] }
  0xe5   : > { %v1185_v2 = vrot.slane %v1184_v54, 4  ;;  %v316_v3 = vsel %vm8749_vm4, %v6422_v56, %v315_v57  ;;  %v317_v4 = vrot.slane %v315_v57, 4  ;;  %v1432_v6 = vshrl.u32 %v6544_v62, 16  ;;  %v7240_v28 = vld [vmem:[%s8735_s8 + $0x48] sm:$0xf] }
  0xe6   : > { %v6792_v0 = vld [vmem:[#allocation2 + $0x128] sm:$0xf]  ;;  %v1180_v1 = vsel %vm8765_vm5, %v1175_v53, %v1179_v42  ;;  %v1435_v7 = vshll.u32 %v6544_v62, 16  ;;  %v1441_v8 = vshrl.u32 %v6545_v63, 16  ;;  %v1444_v9 = vshll.u32 %v6545_v63, 16 }
  0xe7   : > { %4065 = vst [vmem:[#allocation2 + $0x128] sm:$0xf] %v4016_v47  ;;  %v1190_v11 = vsel %vm8765_vm5, %v1185_v2, %v1189_v48  ;;  %v319_v12 = vsel %vm8749_vm4, %v317_v4, %v318_v61  ;;  %v1451_v13 = vshrl.u32 %v6546_v5, 16  ;;  %v1454_v14 = vshll.u32 %v6546_v5, 16  ;;  %v7260_v30 = vld [vmem:[%s8735_s8 + $0x48] sm:$0xc] }
  0xe8   : > { %v8147_v10 = vld [vmem:[#allocation2 + $0x148] sm:$0xf0]  ;;  %1287 = vst [vmem:[#allocation2 + $0x12c] sm:$0xf] %v1180_v1  ;;  %v1434_v17 = vrot.slane %v1432_v6, 5  ;;  %v1437_v18 = vrot.slane %v1435_v7, 6  ;;  %v9436_v4 = vadd.f32 %v3332_v49, %v3284_v41  ;;  %v3304_v5 = vadd.f32 %v9340_v27, %v3303_v50 }
  0xe9   : > { %v6793_v16 = vor.u32 %v8147_v10, %v6792_v0  ;;  %4066 = vst [vmem:[#allocation2 + $0x14c] sm:$0xf] %v4019_v60  ;;  %v1443_v20 = vrot.slane %v1441_v8, 5  ;;  %v1446_v23 = vrot.slane %v1444_v9, 6  ;;  %v1453_v24 = vrot.slane %v1451_v13, 5  ;;  %v8228_v48 = vld [vmem:[%s10601_s1 + $0x190] sm:$0xff]  ;;  %v3352_v10 = vpop.f32.mrf.mxu3  ;;  %v9448_v26 = vpop.f32.mrf.mxu0 }
  0xea   : > { %1288 = vst [vmem:[#allocation2 + $0x150] sm:$0xf] %v1190_v11  ;;  %v1456_v25 = vrot.slane %v1454_v14, 6  ;;  %v1438_v29 = vor.u32 %v1437_v18, %v1434_v17  ;;  %v7261_v31 = vld [vmem:[%s8735_s8 + $0x4c] sm:$0xf]  ;;  %v7276_v36 = vrot.slane %v7260_v30, 10  ;;  %3568 = vmatpush.bf16.msra.mxu2 %v8228_v48 }
  0xeb   : > { %3395 = vmatmul.bf16.gmra.mxu2 %v6793_v16  ;;  %365 = vst [vmem:[#allocation2 + $0x130] sm:$0xf] %v316_v3  ;;  %v1447_v32 = vor.u32 %v1446_v23, %v1443_v20  ;;  %v9415_v35 = vld [vmem:[%s8735_s8 + $0x50] sm:$0x3]  ;;  %v7241_v37 = vld [vmem:[%s8735_s8 + $0x4c] sm:$0xf]  ;;  %v9439_v16 = vadd.f32 %v3352_v10, %v3304_v5 }
  0xec   : > { %366 = vst [vmem:[#allocation2 + $0x154] sm:$0xf] %v319_v12  ;;  %v1457_v33 = vor.u32 %v1456_v25, %v1453_v24  ;;  %v1439_v38 = vrot.slane %v1438_v29, 4  ;;  %v4183_v40 = vrot.slane %v7261_v31, 6  ;;  %v6499_v42 = vld [vmem:[%s8735_s8 + $0x48] sm:$0xe] }
  0xed   : > { %v6500_v43 = vld [vmem:[%s8735_s8 + $0x4c] sm:$0xf]  ;;  %v1449_v44 = vrot.slane %v1447_v32, 4  ;;  %v4186_v45 = vrot.slane %v9415_v35, 6  ;;  %v6501_v46 = vld [vmem:[%s8735_s8 + $0x50] sm:$0x3] }
  0xee   : > { %v932_v47 = vshrl.u32 %v6499_v42, 16  ;;  %v1448_v54 = vsel %vm9086_vm10, %v1439_v38, %v1447_v32  ;;  %v935_v55 = vshll.u32 %v6499_v42, 16  ;;  %v941_v56 = vshrl.u32 %v6500_v43, 16  ;;  %v8236_v60 = vld [vmem:[%s10601_s1 + $0x1d0] sm:$0xff]  ;;  %v9434_v0 = vld [vmem:[%s8735_s8 + $0x3c] sm:$0xc] }
  0xef   : > { %v8143_v53 = vld [vmem:[#allocation2 + $0x12c] sm:$0xf]  ;;  %v944_v57 = vshll.u32 %v6500_v43, 16  ;;  %v1458_v61 = vsel %vm9086_vm10, %v1449_v44, %v1457_v33  ;;  %v951_v63 = vshrl.u32 %v6501_v46, 16  ;;  %1567 = vst [vmem:[#allocation2 + $0x134] sm:$0xf] %v1448_v54  ;;  %3617 = vmatpush.bf16.msra.mxu3 %v8236_v60  ;;  %v4184_v18 = vsel %vm9113_vm11, %v7276_v36, %v4183_v40 }
  0xf0   : > { %4097 = vst [vmem:[#allocation2 + $0x12c] sm:$0xf] %v7240_v28  ;;  %v934_v62 = vrot.slane %v932_v47, 5  ;;  %v937_v2 = vrot.slane %v935_v55, 6  ;;  %v943_v3 = vrot.slane %v941_v56, 5  ;;  %v4185_v8 = vrot.slane %v4183_v40, 4 }
  0xf1   : > { %v6794_v1 = vld [vmem:[#allocation2 + $0x14c] sm:$0xf0]  ;;  %v946_v9 = vrot.slane %v944_v57, 6  ;;  %1568 = vst [vmem:[#allocation2 + $0x158] sm:$0xf] %v1458_v61  ;;  %v953_v13 = vrot.slane %v951_v63, 5 }
  0xf2   : > { %v6797_v6 = vor.u32 %v8143_v53, %v6794_v1  ;;  %4098 = vst [vmem:[#allocation2 + $0x150] sm:$0xf] %v7241_v37  ;;  %v6800_v7 = vld [vmem:[#allocation2 + $0x130] sm:$0xf]  ;;  %v938_v12 = vor.u32 %v937_v2, %v934_v62  ;;  %v954_v14 = vshll.u32 %v6501_v46, 16  ;;  %v7229_v30 = vrot.slane %v9434_v0, 10  ;;  %v9463_v53 = vpop.f32.mrf.mxu1 }
  0xf3   : > { %v8148_v11 = vld [vmem:[#allocation2 + $0x150] sm:$0xf0]  ;;  %v947_v20 = vor.u32 %v946_v9, %v943_v3  ;;  %v3950_v23 = vld [vmem:[%s8735_s8 + $0x40] sm:$0xf]  ;;  %v9445_v24 = vld [vmem:[%s8735_s8 + $0x44] sm:$0x3]  ;;  %v4187_v48 = vsel %vm9113_vm11, %v4185_v8, %v4186_v45 }
  0xf4   : > { %3444 = vmatmul.bf16.gmra.mxu3 %v6797_v6  ;;  %v6801_v17 = vor.u32 %v8148_v11, %v6800_v7  ;;  %v6523_v25 = vld [vmem:[%s8735_s8 + $0x54] sm:$0xf]  ;;  %v939_v28 = vrot.slane %v938_v12, 4  ;;  %v956_v29 = vrot.slane %v954_v14, 6  ;;  %v4022_v31 = vrot.slane %v3950_v23, 6  ;;  %v9477_v12 = vpop.f32.mrf.mxu2 }
  0xf5   : > { %v6524_v32 = vld [vmem:[%s8735_s8 + $0x58] sm:$0xf]  ;;  %v949_v33 = vrot.slane %v947_v20, 4  ;;  %v1192_v37 = vshrl.u32 %v6523_v25, 16  ;;  %v1195_v38 = vshll.u32 %v6523_v25, 16  ;;  %v4025_v43 = vrot.slane %v9445_v24, 6  ;;  %v3288_v24 = vpop.f32.mrf.mxu0 }
  0xf6   : > { %3493 = vmatmul.bf16.gmra.mxu0 %v6801_v17  ;;  %v1201_v41 = vshll.u32 %v6524_v32, 16  ;;  %v948_v36 = vsel %vm9086_vm10, %v939_v28, %v947_v20  ;;  %v957_v40 = vor.u32 %v956_v29, %v953_v13  ;;  %v4024_v42 = vrot.slane %v4022_v31, 4  ;;  %v6525_v44 = vld [vmem:[%s8735_s8 + $0x5c] sm:$0x1]  ;;  %v8244_v46 = vld [vmem:[%s10601_s1 + $0x210] sm:$0xff]  ;;  %10616 = vst [vmem:[#allocation6_spill] sm:$0xff] %v9477_v12 }
  0xf7   : > { %v8144_v47 = vld [vmem:[#allocation2 + $0x134] sm:$0xf]  ;;  %1041 = vst [vmem:[#allocation2 + $0x170] sm:$0xf] %v948_v36  ;;  %v1194_v49 = vrot.slane %v1192_v37, 4  ;;  %v1197_v50 = vrot.slane %v1195_v38, 5  ;;  %3666 = vmatpush.bf16.msra.mxu0 %v8244_v46  ;;  %v4023_v6 = vsel %vm9113_vm11, %v7229_v30, %v4022_v31  ;;  %v3289_v31 = vadd.f32 %v9340_v27, %v3288_v24 }
  0xf8   : > { %4233 = vst [vmem:[#allocation2 + $0x134] sm:$0xf] %v4184_v18  ;;  %v958_v54 = vsel %vm9086_vm10, %v949_v33, %v957_v40  ;;  %v1203_v55 = vrot.slane %v1201_v41, 5  ;;  %v1205_v56 = vshrl.u32 %v6524_v32, 16  ;;  %v6409_v57 = vld [vmem:[%s8735_s8 + $0x54] sm:$0xe]  ;;  %v4026_v28 = vsel %vm9113_vm11, %v4024_v42, %v4025_v43  ;;  %v9494_v43 = vpop.f32.mrf.mxu3 }
  0xf9   : > { %v6802_v60 = vld [vmem:[#allocation2 + $0x154] sm:$0xf0]  ;;  %1042 = vst [vmem:[#allocation2 + $0x194] sm:$0xf] %v958_v54  ;;  %v1198_v35 = vor.u32 %v1197_v50, %v1194_v49  ;;  %v1211_v45 = vshll.u32 %v6525_v44, 16  ;;  %v6423_v61 = vrot.slane %v6409_v57, 9 }
  0xfa   : > { %v6805_v62 = vor.u32 %v8144_v47, %v6802_v60  ;;  %4234 = vst [vmem:[#allocation2 + $0x158] sm:$0xf] %v4187_v48  ;;  %v1207_v63 = vrot.slane %v1205_v56, 4  ;;  %v6410_v0 = vld [vmem:[%s8735_s8 + $0x58] sm:$0xf]  ;;  %v8325_v1 = vld [vmem:[%s10601_s1 + $0x250] sm:$0xff]  ;;  %v3337_v54 = vpop.f32.mrf.mxu1 }
  0xfb   : > { %v1199_v2 = vrot.slane %v1198_v35, 4  ;;  %v6411_v3 = vld [vmem:[%s8735_s8 + $0x5c] sm:$0x1]  ;;  %v322_v5 = vrot.slane %v6410_v0, 5  ;;  %v1213_v8 = vrot.slane %v1211_v45, 5  ;;  %5581 = vmatpush.bf16.msra.mxu1 %v8325_v1  ;;  %10617 = vst [vmem:[#allocation7_spill] sm:$0xff] %v9494_v43  ;;  %v9502_v35 = vadd.f32 %v3337_v54, %v3289_v31 }
  0xfc   : > { %3542 = vmatmul.bf16.gmra.mxu1 %v6805_v62  ;;  %v1208_v7 = vor.u32 %v1207_v63, %v1203_v55  ;;  %v325_v9 = vrot.slane %v6411_v3, 5  ;;  %v6547_v10 = vld [vmem:[%s8735_s8 + $0x54] sm:$0xe]  ;;  %v6548_v11 = vld [vmem:[%s8735_s8 + $0x58] sm:$0xf]  ;;  %v8227_v50 = vld [vmem:[%s10601_s1 + $0x188] sm:$0xff] }
  0xfd   : > { %v1204_v13 = vsel %vm8765_vm5, %v1199_v2, %v1203_v55  ;;  %v323_v14 = vsel %vm8749_vm4, %v6423_v61, %v322_v5  ;;  %v324_v17 = vrot.slane %v322_v5, 4  ;;  %v6549_v18 = vld [vmem:[%s8735_s8 + $0x5c] sm:$0x3]  ;;  %v1460_v20 = vshrl.u32 %v6547_v10, 16  ;;  %v9485_v23 = vld [vmem:[%s8735_s8 + $0x54] sm:$0xc]  ;;  %3569 = vmatpush.bf16.msra.mxu2 %v8227_v50 }
  0xfe   : > { %v6828_v25 = vld [vmem:[#allocation2 + $0x170] sm:$0xf]  ;;  %v1209_v29 = vrot.slane %v1208_v7, 4  ;;  %1289 = vst [vmem:[#allocation2 + $0x174] sm:$0xf] %v1204_v13  ;;  %v1463_v30 = vshll.u32 %v6547_v10, 16 }
  0xff   : > { %4067 = vst [vmem:[#allocation2 + $0x170] sm:$0xf] %v4023_v6  ;;  %v1462_v32 = vrot.slane %v1460_v20, 5  ;;  %v1469_v33 = vshrl.u32 %v6548_v11, 16  ;;  %v1472_v37 = vshll.u32 %v6548_v11, 16  ;;  %v326_v36 = vsel %vm8749_vm4, %v324_v17, %v325_v9  ;;  %v3308_v20 = vpop.f32.mrf.mxu2 }
 0x100   : > { %v8156_v38 = vld [vmem:[#allocation2 + $0x190] sm:$0xf0]  ;;  %v1214_v41 = vsel %vm8765_vm5, %v1209_v29, %v1213_v8  ;;  %367 = vst [vmem:[#allocation2 + $0x178] sm:$0xf] %v323_v14  ;;  %v1465_v40 = vrot.slane %v1463_v30, 6  ;;  %v1479_v42 = vshrl.u32 %v6549_v18, 16 }
 0x101   : > { %v6829_v44 = vor.u32 %v8156_v38, %v6828_v25  ;;  %4068 = vst [vmem:[#allocation2 + $0x194] sm:$0xf] %v4026_v28  ;;  %v7242_v46 = vld [vmem:[%s8735_s8 + $0x54] sm:$0xf]  ;;  %v1471_v47 = vrot.slane %v1469_v33, 5  ;;  %v1474_v48 = vrot.slane %v1472_v37, 6 }
 0x102   : > { %v1482_v49 = vshll.u32 %v6549_v18, 16  ;;  %1290 = vst [vmem:[#allocation2 + $0x198] sm:$0xf] %v1214_v41  ;;  %v1466_v55 = vor.u32 %v1465_v40, %v1462_v32  ;;  %v1481_v56 = vrot.slane %v1479_v42, 5  ;;  %v7264_v57 = vld [vmem:[%s8735_s8 + $0x58] sm:$0xf] }
 0x103   : > { %v7277_v60 = vrot.slane %v9485_v23, 10  ;;  %3400 = vmatmul.bf16.gmra.mxu2 %v6829_v44  ;;  %368 = vst [vmem:[#allocation2 + $0x19c] sm:$0xf] %v326_v36  ;;  %v1475_v45 = vor.u32 %v1474_v48, %v1471_v47  ;;  %v7265_v62 = vld [vmem:[%s8735_s8 + $0x5c] sm:$0x3]  ;;  %v4190_v63 = vrot.slane %v7264_v57, 6  ;;  %v3309_v36 = vadd.f32 %v9340_v27, %v3308_v20  ;;  %v3357_v48 = vpop.f32.mrf.mxu3 }
 0x104   : > { %v1484_v61 = vrot.slane %v1482_v49, 6  ;;  %v1467_v0 = vrot.slane %v1466_v55, 4  ;;  %v4193_v1 = vrot.slane %v7265_v62, 6  ;;  %v6502_v2 = vld [vmem:[%s8735_s8 + $0x54] sm:$0xe]  ;;  %v8235_v18 = vld [vmem:[%s10601_s1 + $0x1c8] sm:$0xff] }
 0x105   : > { %v6503_v3 = vld [vmem:[%s8735_s8 + $0x58] sm:$0xf]  ;;  %v8152_v5 = vld [vmem:[#allocation2 + $0x174] sm:$0xf]  ;;  %v1477_v7 = vrot.slane %v1475_v45, 4  ;;  %v4192_v9 = vrot.slane %v4190_v63, 4  ;;  %3618 = vmatpush.bf16.msra.mxu3 %v8235_v18  ;;  %v4191_v44 = vsel %vm9113_vm11, %v7277_v60, %v4190_v63 }
 0x106   : > { %v7243_v6 = vld [vmem:[%s8735_s8 + $0x58] sm:$0xf]  ;;  %v1485_v8 = vor.u32 %v1484_v61, %v1481_v56  ;;  %v6504_v10 = vld [vmem:[%s8735_s8 + $0x5c] sm:$0x3]  ;;  %4099 = vst [vmem:[#allocation2 + $0x174] sm:$0xf] %v7242_v46  ;;  %v1476_v11 = vsel %vm9086_vm10, %v1467_v0, %v1475_v45  ;;  %v9527_v45 = vadd.f32 %v3357_v48, %v3309_v36 }
 0x107   : > { %v960_v13 = vshrl.u32 %v6502_v2, 16  ;;  %v963_v14 = vshll.u32 %v6502_v2, 16  ;;  %v969_v17 = vshrl.u32 %v6503_v3, 16  ;;  %v6836_v23 = vld [vmem:[#allocation2 + $0x178] sm:$0xf]  ;;  %v972_v25 = vshll.u32 %v6503_v3, 16  ;;  %v9531_v2 = vpop.f32.mrf.mxu0 }
 0x108   : > { %v1486_v24 = vsel %vm9086_vm10, %v1477_v7, %v1485_v8  ;;  %1569 = vst [vmem:[#allocation2 + $0x17c] sm:$0xf] %v1476_v11  ;;  %v979_v28 = vshrl.u32 %v6504_v10, 16  ;;  %v982_v32 = vshll.u32 %v6504_v10, 16  ;;  %v9517_v41 = vld [vmem:[%s8735_s8 + $0x48] sm:$0xc]  ;;  %v4194_v50 = vsel %vm9113_vm11, %v4192_v9, %v4193_v1 }
 0x109   : > { %1570 = vst [vmem:[#allocation2 + $0x1a0] sm:$0xf] %v1486_v24  ;;  %v962_v29 = vrot.slane %v960_v13, 5  ;;  %v965_v30 = vrot.slane %v963_v14, 6  ;;  %v971_v31 = vrot.slane %v969_v17, 5  ;;  %v974_v37 = vrot.slane %v972_v25, 6 }
 0x10a   : > { %v6830_v33 = vld [vmem:[#allocation2 + $0x194] sm:$0xf0]  ;;  %v981_v38 = vrot.slane %v979_v28, 5  ;;  %v8157_v42 = vld [vmem:[#allocation2 + $0x198] sm:$0xf0]  ;;  %v984_v47 = vrot.slane %v982_v32, 6 }
 0x10b   : > { %v6833_v40 = vor.u32 %v8152_v5, %v6830_v33  ;;  %4100 = vst [vmem:[#allocation2 + $0x198] sm:$0xf] %v7243_v6  ;;  %v966_v46 = vor.u32 %v965_v30, %v962_v29  ;;  %v6837_v49 = vor.u32 %v8157_v42, %v6836_v23  ;;  %v975_v54 = vor.u32 %v974_v37, %v971_v31  ;;  %v3953_v55 = vld [vmem:[%s8735_s8 + $0x4c] sm:$0xf]  ;;  %v3954_v56 = vld [vmem:[%s8735_s8 + $0x50] sm:$0x3]  ;;  %v9541_v29 = vpop.f32.mrf.mxu1 }
 0x10c   : > { %v6526_v57 = vld [vmem:[%s8735_s8 + $0x60] sm:$0xf]  ;;  %v985_v62 = vor.u32 %v984_v47, %v981_v38  ;;  %v7230_v60 = vrot.slane %v9517_v41, 10  ;;  %v4029_v63 = vrot.slane %v3953_v55, 6  ;;  %v6527_v0 = vld [vmem:[%s8735_s8 + $0x64] sm:$0xf]  ;;  %v9550_v47 = vpop.f32.mrf.mxu2 }
 0x10d   : > { %3449 = vmatmul.bf16.gmra.mxu3 %v6833_v40  ;;  %v967_v61 = vrot.slane %v966_v46, 4  ;;  %v8243_v1 = vld [vmem:[%s10601_s1 + $0x208] sm:$0xff]  ;;  %3498 = vmatmul.bf16.gmra.mxu0 %v6837_v49  ;;  %v977_v3 = vrot.slane %v975_v54, 4  ;;  %v1216_v5 = vshrl.u32 %v6526_v57, 16  ;;  %v1219_v6 = vshll.u32 %v6526_v57, 16  ;;  %10618 = vst [vmem:[#allocation8_spill] sm:$0xff] %v9550_v47 }
 0x10e   : > { %v1225_v7 = vshll.u32 %v6527_v0, 16  ;;  %v4032_v10 = vrot.slane %v3954_v56, 6  ;;  %v6528_v11 = vld [vmem:[%s8735_s8 + $0x68] sm:$0x1]  ;;  %v1229_v13 = vshrl.u32 %v6527_v0, 16  ;;  %3667 = vmatpush.bf16.msra.mxu0 %v8243_v1  ;;  %v4031_v24 = vrot.slane %v4029_v63, 4 }
 0x10f   : > { %v8153_v8 = vld [vmem:[#allocation2 + $0x17c] sm:$0xf]  ;;  %v976_v9 = vsel %vm9086_vm10, %v967_v61, %v975_v54  ;;  %v986_v17 = vsel %vm9086_vm10, %v977_v3, %v985_v62  ;;  %v1218_v18 = vrot.slane %v1216_v5, 4  ;;  %v1221_v20 = vrot.slane %v1219_v6, 5  ;;  %v6412_v32 = vld [vmem:[%s8735_s8 + $0x60] sm:$0xe] }
 0x110   : > { %v6838_v14 = vld [vmem:[#allocation2 + $0x19c] sm:$0xf0]  ;;  %4235 = vst [vmem:[#allocation2 + $0x17c] sm:$0xf] %v4191_v44  ;;  %v1227_v25 = vrot.slane %v1225_v7, 5  ;;  %v1231_v28 = vrot.slane %v1229_v13, 4  ;;  %v4030_v48 = vsel %vm9113_vm11, %v7230_v60, %v4029_v63  ;;  %v4033_v49 = vsel %vm9113_vm11, %v4031_v24, %v4032_v10  ;;  %v9570_v7 = vpop.f32.mrf.mxu3 }
 0x111   : > { %v6841_v23 = vor.u32 %v8153_v8, %v6838_v14  ;;  %4236 = vst [vmem:[#allocation2 + $0x1a0] sm:$0xf] %v4194_v50  ;;  %v1222_v30 = vor.u32 %v1221_v20, %v1218_v18  ;;  %v1235_v31 = vshll.u32 %v6528_v11, 16  ;;  %v8324_v33 = vld [vmem:[%s10601_s1 + $0x248] sm:$0xff]  ;;  %v6413_v38 = vld [vmem:[%s8735_s8 + $0x64] sm:$0xf]  ;;  %v3293_v8 = vpop.f32.mrf.mxu0 }
 0x112   : > { %1043 = vst [vmem:[#allocation2 + $0x1b8] sm:$0xf] %v976_v9  ;;  %v1232_v37 = vor.u32 %v1231_v28, %v1227_v25  ;;  %v6414_v41 = vld [vmem:[%s8735_s8 + $0x68] sm:$0x1]  ;;  %v6424_v42 = vrot.slane %v6412_v32, 9  ;;  %v329_v44 = vrot.slane %v6413_v38, 5  ;;  %5582 = vmatpush.bf16.msra.mxu1 %v8324_v33  ;;  %v3294_v13 = vadd.f32 %v9340_v27, %v3293_v8 }
 0x113   : > { %3547 = vmatmul.bf16.gmra.mxu1 %v6841_v23  ;;  %1044 = vst [vmem:[#allocation2 + $0x1dc] sm:$0xf] %v986_v17  ;;  %v1223_v36 = vrot.slane %v1222_v30, 4  ;;  %v1237_v40 = vrot.slane %v1235_v31, 5  ;;  %v6550_v46 = vld [vmem:[%s8735_s8 + $0x60] sm:$0xe] }
 0x114   : > { %v1233_v50 = vrot.slane %v1232_v37, 4  ;;  %v332_v54 = vrot.slane %v6414_v41, 5  ;;  %v6551_v55 = vld [vmem:[%s8735_s8 + $0x64] sm:$0xf]  ;;  %v6552_v56 = vld [vmem:[%s8735_s8 + $0x68] sm:$0x3]  ;;  %v330_v61 = vsel %vm8749_vm4, %v6424_v42, %v329_v44  ;;  %v3342_v41 = vpop.f32.mrf.mxu1 }
 0x115   : > { %v1228_v57 = vsel %vm8765_vm5, %v1223_v36, %v1227_v25  ;;  %v331_v62 = vrot.slane %v329_v44, 4  ;;  %v1488_v0 = vshrl.u32 %v6550_v46, 16  ;;  %v9563_v1 = vld [vmem:[%s8735_s8 + $0x60] sm:$0xc]  ;;  %v1491_v63 = vshll.u32 %v6550_v46, 16  ;;  %10619 = vst [vmem:[#allocation9_spill] sm:$0xff] %v9570_v7 }
 0x116   : > { %v1238_v60 = vsel %vm8765_vm5, %v1233_v50, %v1237_v40  ;;  %1291 = vst [vmem:[#allocation2 + $0x1bc] sm:$0xf] %v1228_v57  ;;  %v1497_v3 = vshrl.u32 %v6551_v55, 16  ;;  %v1500_v5 = vshll.u32 %v6551_v55, 16  ;;  %v9568_v6 = vld [vmem:[%s8735_s8 + $0x64] sm:$0xf]  ;;  %v9584_v46 = vadd.f32 %v3342_v41, %v3294_v13 }
 0x117   : > { %1292 = vst [vmem:[#allocation2 + $0x1e0] sm:$0xf] %v1238_v60  ;;  %v1490_v9 = vrot.slane %v1488_v0, 5  ;;  %v1507_v10 = vshrl.u32 %v6552_v56, 16  ;;  %v1510_v11 = vshll.u32 %v6552_v56, 16  ;;  %v333_v17 = vsel %vm8749_vm4, %v331_v62, %v332_v54  ;;  %v8226_v0 = vld [vmem:[%s10601_s1 + $0x180] sm:$0xff] }
 0x118   : > { %369 = vst [vmem:[#allocation2 + $0x1c0] sm:$0xf] %v330_v61  ;;  %v1493_v18 = vrot.slane %v1491_v63, 6  ;;  %v1499_v20 = vrot.slane %v1497_v3, 5  ;;  %v7244_v24 = vld [vmem:[%s8735_s8 + $0x60] sm:$0xf]  ;;  %3570 = vmatpush.bf16.msra.mxu2 %v8226_v0 }
 0x119   : > { %v6864_v14 = vld [vmem:[#allocation2 + $0x1b8] sm:$0xf]  ;;  %v1502_v25 = vrot.slane %v1500_v5, 6  ;;  %v1509_v28 = vrot.slane %v1507_v10, 5  ;;  %v7245_v31 = vld [vmem:[%s8735_s8 + $0x64] sm:$0xf] }
 0x11a   : > { %v8165_v23 = vld [vmem:[#allocation2 + $0x1d8] sm:$0xf0]  ;;  %4069 = vst [vmem:[#allocation2 + $0x1b8] sm:$0xf] %v4030_v48  ;;  %v1494_v32 = vor.u32 %v1493_v18, %v1490_v9  ;;  %v1512_v33 = vrot.slane %v1510_v11, 6  ;;  %v7278_v38 = vrot.slane %v9563_v1, 10  ;;  %v3313_v1 = vpop.f32.mrf.mxu2 }
 0x11b   : > { %v6865_v30 = vor.u32 %v8165_v23, %v6864_v14  ;;  %4070 = vst [vmem:[#allocation2 + $0x1dc] sm:$0xf] %v4033_v49  ;;  %v9578_v37 = vld [vmem:[%s8735_s8 + $0x68] sm:$0x3]  ;;  %v1503_v36 = vor.u32 %v1502_v25, %v1499_v20  ;;  %v4197_v40 = vrot.slane %v9568_v6, 6  ;;  %v3314_v6 = vadd.f32 %v9340_v27, %v3313_v1  ;;  %v8234_v13 = vld [vmem:[%s10601_s1 + $0x1c0] sm:$0xff]  ;;  %v3362_v27 = vpop.f32.mrf.mxu3 }
 0x11c   : > { %370 = vst [vmem:[#allocation2 + $0x1e4] sm:$0xf] %v333_v17  ;;  %v4200_v42 = vrot.slane %v9578_v37, 6  ;;  %v6505_v44 = vld [vmem:[%s8735_s8 + $0x60] sm:$0xe]  ;;  %v1495_v48 = vrot.slane %v1494_v32, 4  ;;  %v1513_v49 = vor.u32 %v1512_v33, %v1509_v28  ;;  %3619 = vmatpush.bf16.msra.mxu3 %v8234_v13 }
 0x11d   : > { %3405 = vmatmul.bf16.gmra.mxu2 %v6865_v30  ;;  %v6506_v50 = vld [vmem:[%s8735_s8 + $0x64] sm:$0xf]  ;;  %v6507_v54 = vld [vmem:[%s8735_s8 + $0x68] sm:$0x3]  ;;  %v988_v55 = vshrl.u32 %v6505_v44, 16  ;;  %v1505_v57 = vrot.slane %v1503_v36, 4  ;;  %v9601_v28 = vadd.f32 %v3362_v27, %v3314_v6  ;;  %v4198_v41 = vsel %vm9113_vm11, %v7278_v38, %v4197_v40 }
 0x11e   : > { %v8161_v56 = vld [vmem:[#allocation2 + $0x1bc] sm:$0xf]  ;;  %v4199_v61 = vrot.slane %v4197_v40, 4  ;;  %v991_v62 = vshll.u32 %v6505_v44, 16  ;;  %v6866_v60 = vld [vmem:[#allocation2 + $0x1dc] sm:$0xf0]  ;;  %v1504_v63 = vsel %vm9086_vm10, %v1495_v48, %v1503_v36 }
 0x11f   : > { %4101 = vst [vmem:[#allocation2 + $0x1bc] sm:$0xf] %v7244_v24  ;;  %v990_v3 = vrot.slane %v988_v55, 5  ;;  %v997_v5 = vshrl.u32 %v6506_v50, 16  ;;  %v6869_v8 = vor.u32 %v8161_v56, %v6866_v60  ;;  %v6872_v9 = vld [vmem:[#allocation2 + $0x1c0] sm:$0xf]  ;;  %v1514_v10 = vsel %vm9086_vm10, %v1505_v57, %v1513_v49 }
 0x120   : > { %4102 = vst [vmem:[#allocation2 + $0x1e0] sm:$0xf] %v7245_v31  ;;  %v993_v11 = vrot.slane %v991_v62, 6  ;;  %v1000_v17 = vshll.u32 %v6506_v50, 16  ;;  %v1007_v18 = vshrl.u32 %v6507_v54, 16  ;;  %v1010_v20 = vshll.u32 %v6507_v54, 16 }
 0x121   : > { %1571 = vst [vmem:[#allocation2 + $0x1c4] sm:$0xf] %v1504_v63  ;;  %v999_v14 = vrot.slane %v997_v5, 5  ;;  %3454 = vmatmul.bf16.gmra.mxu3 %v6869_v8  ;;  %v3955_v24 = vld [vmem:[%s8735_s8 + $0x54] sm:$0xc]  ;;  %v4201_v62 = vsel %vm9113_vm11, %v4199_v61, %v4200_v42  ;;  %v8242_v38 = vld [vmem:[%s10601_s1 + $0x200] sm:$0xff] }
 0x122   : > { %1572 = vst [vmem:[#allocation2 + $0x1e8] sm:$0xf] %v1514_v10  ;;  %v994_v23 = vor.u32 %v993_v11, %v990_v3  ;;  %v3956_v25 = vld [vmem:[%s8735_s8 + $0x58] sm:$0xf]  ;;  %v1002_v31 = vrot.slane %v1000_v17, 6  ;;  %v1009_v32 = vrot.slane %v1007_v18, 5  ;;  %3668 = vmatpush.bf16.msra.mxu0 %v8242_v38 }
 0x123   : > { %v8166_v30 = vld [vmem:[#allocation2 + $0x1e0] sm:$0xf0]  ;;  %v1012_v33 = vrot.slane %v1010_v20, 6  ;;  %v9606_v44 = vld [vmem:[%s8735_s8 + $0x5c] sm:$0x3]  ;;  %v7231_v48 = vrot.slane %v3955_v24, 10  ;;  %v9640_v38 = vpop.f32.mrf.mxu3 }
 0x124   : > { %v6873_v37 = vor.u32 %v8166_v30, %v6872_v9  ;;  %v995_v36 = vrot.slane %v994_v23, 4  ;;  %v6529_v49 = vld [vmem:[%s8735_s8 + $0x6c] sm:$0xf]  ;;  %v1003_v50 = vor.u32 %v1002_v31, %v999_v14  ;;  %v4036_v55 = vrot.slane %v3956_v25, 6  ;;  %v6530_v56 = vld [vmem:[%s8735_s8 + $0x70] sm:$0xf]  ;;  %v9627_v31 = vpop.f32.mrf.mxu0 }
 0x125   : > { %v1013_v54 = vor.u32 %v1012_v33, %v1009_v32  ;;  %v1240_v57 = vshrl.u32 %v6529_v49, 16  ;;  %v4039_v0 = vrot.slane %v9606_v44, 6  ;;  %v6531_v1 = vld [vmem:[%s8735_s8 + $0x74] sm:$0x1]  ;;  %v1243_v60 = vshll.u32 %v6529_v49, 16  ;;  %v8323_v42 = vld [vmem:[%s10601_s1 + $0x240] sm:$0xff]  ;;  %v9629_v32 = vpop.f32.mrf.mxu1 }
 0x126   : > { %3503 = vmatmul.bf16.gmra.mxu0 %v6873_v37  ;;  %v1249_v63 = vshll.u32 %v6530_v56, 16  ;;  %v1004_v40 = vsel %vm9086_vm10, %v995_v36, %v1003_v50  ;;  %v1005_v3 = vrot.slane %v1003_v50, 4  ;;  %v1253_v6 = vshrl.u32 %v6530_v56, 16  ;;  %5583 = vmatpush.bf16.msra.mxu1 %v8323_v42  ;;  %v6415_v20 = vld [vmem:[%s8735_s8 + $0x6c] sm:$0xe]  ;;  %10621 = vst [vmem:[#allocation11_spill] sm:$0xff] %v9640_v38 }
 0x127   : > { %v1242_v5 = vrot.slane %v1240_v57, 4  ;;  %1045 = vst [vmem:[#allocation2 + $0x200] sm:$0xf] %v1004_v40  ;;  %v1245_v8 = vrot.slane %v1243_v60, 5  ;;  %v1259_v14 = vshll.u32 %v6531_v1, 16  ;;  %v6425_v30 = vrot.slane %v6415_v20, 9 }
 0x128   : > { %v8162_v61 = vld [vmem:[#allocation2 + $0x1c4] sm:$0xf]  ;;  %v1251_v9 = vrot.slane %v1249_v63, 5  ;;  %v1014_v11 = vsel %vm9086_vm10, %v1005_v3, %v1013_v54  ;;  %v1255_v13 = vrot.slane %v1253_v6, 4  ;;  %v6416_v27 = vld [vmem:[%s8735_s8 + $0x70] sm:$0xf]  ;;  %v4037_v49 = vsel %vm9113_vm11, %v7231_v48, %v4036_v55  ;;  %v9638_v63 = vpop.f32.mrf.mxu2 }
 0x129   : > { %v6874_v10 = vld [vmem:[#allocation2 + $0x1e4] sm:$0xf0]  ;;  %4237 = vst [vmem:[#allocation2 + $0x1c4] sm:$0xf] %v4198_v41  ;;  %v1246_v18 = vor.u32 %v1245_v8, %v1242_v5  ;;  %v1261_v24 = vrot.slane %v1259_v14, 5  ;;  %v4038_v33 = vrot.slane %v4036_v55, 4 }
 0x12a   : > { %v6877_v17 = vor.u32 %v8162_v61, %v6874_v10  ;;  %4238 = vst [vmem:[#allocation2 + $0x1e8] sm:$0xf] %v4201_v62  ;;  %v1256_v23 = vor.u32 %v1255_v13, %v1251_v9  ;;  %v6417_v25 = vld [vmem:[%s8735_s8 + $0x74] sm:$0x1]  ;;  %v336_v41 = vrot.slane %v6416_v27, 5 }
 0x12b   : > { %1046 = vst [vmem:[#allocation2 + $0x224] sm:$0xf] %v1014_v11  ;;  %v1247_v37 = vrot.slane %v1246_v18, 4  ;;  %v339_v36 = vrot.slane %v6417_v25, 5  ;;  %v6553_v44 = vld [vmem:[%s8735_s8 + $0x6c] sm:$0xe]  ;;  %v4040_v6 = vsel %vm9113_vm11, %v4038_v33, %v4039_v0 }
 0x12c   : > { %3552 = vmatmul.bf16.gmra.mxu1 %v6877_v17  ;;  %v1257_v50 = vrot.slane %v1256_v23, 4  ;;  %v6554_v54 = vld [vmem:[%s8735_s8 + $0x70] sm:$0xf]  ;;  %v6555_v56 = vld [vmem:[%s8735_s8 + $0x74] sm:$0x3]  ;;  %v1516_v57 = vshrl.u32 %v6553_v44, 16  ;;  %v337_v48 = vsel %vm8749_vm4, %v6425_v30, %v336_v41 }
 0x12d   : > { %v1252_v62 = vsel %vm8765_vm5, %v1247_v37, %v1251_v9  ;;  %v338_v1 = vrot.slane %v336_v41, 4  ;;  %v1519_v60 = vshll.u32 %v6553_v44, 16  ;;  %10620 = vst [vmem:[#allocation10_spill] sm:$0xff] %v9638_v63  ;;  %v1525_v5 = vshrl.u32 %v6554_v54, 16  ;;  %v8338_v9 = vld [vmem:[%s10601_s1 + $0x2b8] sm:$0xff] }
 0x12e   : > { %v6900_v40 = vld [vmem:[#allocation2 + $0x200] sm:$0xf]  ;;  %v1262_v3 = vsel %vm8765_vm5, %v1257_v50, %v1261_v24  ;;  %1293 = vst [vmem:[#allocation2 + $0x204] sm:$0xf] %v1252_v62  ;;  %v1518_v55 = vrot.slane %v1516_v57, 5  ;;  %v1528_v61 = vshll.u32 %v6554_v54, 16  ;;  %5625 = vmatpush.bf16.msrb.mxu2 %v8338_v9  ;;  %v3474_v50 = vpop.f32.mrf.mxu0  ;;  %v9664_v62 = vpop.f32.mrf.mxu1 }
 0x12f   : > { %4071 = vst [vmem:[#allocation2 + $0x200] sm:$0xf] %v4037_v49  ;;  %v1521_v42 = vrot.slane %v1519_v60, 6  ;;  %v1535_v8 = vshrl.u32 %v6555_v56, 16  ;;  %v340_v10 = vsel %vm8749_vm4, %v338_v1, %v339_v36  ;;  %v1527_v11 = vrot.slane %v1525_v5, 5 }
 0x130   : > { %1294 = vst [vmem:[#allocation2 + $0x228] sm:$0xf] %v1262_v3  ;;  %v1538_v13 = vshll.u32 %v6555_v56, 16  ;;  %v9654_v14 = vld [vmem:[%s8735_s8 + $0x70] sm:$0xf]  ;;  %v1530_v18 = vrot.slane %v1528_v61, 6 }
 0x131   : > { %371 = vst [vmem:[#allocation2 + $0x208] sm:$0xf] %v337_v48  ;;  %v1522_v17 = vor.u32 %v1521_v42, %v1518_v55  ;;  %v1537_v20 = vrot.slane %v1535_v8, 5  ;;  %v7246_v23 = vld [vmem:[%s8735_s8 + $0x6c] sm:$0xf]  ;;  %v4204_v49 = vrot.slane %v9654_v14, 6 }
 0x132   : > { %v8174_v0 = vld [vmem:[#allocation2 + $0x220] sm:$0xf0]  ;;  %v1540_v24 = vrot.slane %v1538_v13, 6  ;;  %v7247_v25 = vld [vmem:[%s8735_s8 + $0x70] sm:$0xf]  ;;  %v1531_v33 = vor.u32 %v1530_v18, %v1527_v11  ;;  %v3425_v11 = vpop.f32.mrf.mxu3 }
 0x133   : > { %v6901_v27 = vor.u32 %v8174_v0, %v6900_v40  ;;  %4072 = vst [vmem:[#allocation2 + $0x224] sm:$0xf] %v4040_v6  ;;  %v1523_v30 = vrot.slane %v1522_v17, 4  ;;  %v7269_v37 = vld [vmem:[%s8735_s8 + $0x6c] sm:$0xc] }
 0x134   : > { %372 = vst [vmem:[#allocation2 + $0x22c] sm:$0xf] %v340_v10  ;;  %v6558_v41 = vld [vmem:[%s8735_s8 + $0x24] sm:$0xf]  ;;  %v1541_v36 = vor.u32 %v1540_v24, %v1537_v20  ;;  %v7271_v44 = vld [vmem:[%s8735_s8 + $0x74] sm:$0x3]  ;;  %v3376_v10 = vpop.f32.mrf.mxu2 }
 0x135   : > { %3410 = vmatmul.bf16.gmra.mxu2 %v6901_v27  ;;  %v6559_v54 = vld [vmem:[%s8735_s8 + $0x28] sm:$0xf]  ;;  %v6560_v56 = vld [vmem:[%s8735_s8 + $0x2c] sm:$0x1]  ;;  %v1604_v57 = vshrl.u32 %v6558_v41, 16  ;;  %v1532_v60 = vsel %vm9086_vm10, %v1523_v30, %v1531_v33  ;;  %v1533_v40 = vrot.slane %v1531_v33, 4  ;;  %v3377_v18 = vadd.f32 %v3376_v10, %v9355_v52 }
 0x136   : > { %v8170_v1 = vld [vmem:[#allocation2 + $0x204] sm:$0xf]  ;;  %v1607_v3 = vshll.u32 %v6558_v41, 16  ;;  %v1613_v48 = vshll.u32 %v6559_v54, 16  ;;  %v1617_v5 = vshrl.u32 %v6559_v54, 16  ;;  %v1623_v6 = vshll.u32 %v6560_v56, 16  ;;  %v9693_v10 = vpop.f32.mrf.mxu0 }
 0x137   : > { %4103 = vst [vmem:[#allocation2 + $0x204] sm:$0xf] %v7246_v23  ;;  %v1606_v55 = vrot.slane %v1604_v57, 4  ;;  %v6902_v42 = vld [vmem:[#allocation2 + $0x224] sm:$0xf0]  ;;  %v1542_v61 = vsel %vm9086_vm10, %v1533_v40, %v1541_v36  ;;  %v7279_v0 = vrot.slane %v7269_v37, 10  ;;  %v3426_v54 = vadd.f32 %v3425_v11, %v3377_v18  ;;  %v9695_v11 = vpop.f32.mrf.mxu1 }
 0x138   : > { %1573 = vst [vmem:[#allocation2 + $0x20c] sm:$0xf] %v1532_v60  ;;  %v1609_v8 = vrot.slane %v1607_v3, 5  ;;  %v1615_v9 = vrot.slane %v1613_v48, 5  ;;  %v6905_v13 = vor.u32 %v8170_v1, %v6902_v42  ;;  %v6908_v14 = vld [vmem:[#allocation2 + $0x208] sm:$0xf] }
 0x139   : > { %4104 = vst [vmem:[#allocation2 + $0x228] sm:$0xf] %v7247_v25  ;;  %v1619_v17 = vrot.slane %v1617_v5, 4  ;;  %v4206_v20 = vrot.slane %v4204_v49, 4  ;;  %v4207_v27 = vrot.slane %v7271_v44, 6  ;;  %v1625_v24 = vrot.slane %v1623_v6, 5 }
 0x13a   : > { %1574 = vst [vmem:[#allocation2 + $0x230] sm:$0xf] %v1542_v61  ;;  %v1610_v23 = vor.u32 %v1609_v8, %v1606_v55  ;;  %3459 = vmatmul.bf16.gmra.mxu3 %v6905_v13  ;;  %v6582_v41 = vld [vmem:[%s8735_s8 + $0x24] sm:$0xe]  ;;  %v6583_v36 = vld [vmem:[%s8735_s8 + $0x28] sm:$0xf]  ;;  %v4205_v44 = vsel %vm9113_vm11, %v7279_v0, %v4204_v49  ;;  %v9682_v48 = vadd.f32 %v3474_v50, %v3426_v54 }
 0x13b   : > { %v8175_v30 = vld [vmem:[#allocation2 + $0x228] sm:$0xf0]  ;;  %v1620_v33 = vor.u32 %v1619_v17, %v1615_v9  ;;  %v6606_v57 = vrot.slane %v6582_v41, 9  ;;  %v1877_v1 = vrot.slane %v6583_v36, 5  ;;  %v8346_v52 = vld [vmem:[%s10601_s1 + $0x2f8] sm:$0xff]  ;;  %v4208_v49 = vsel %vm9113_vm11, %v4206_v20, %v4207_v27 }
 0x13c   : > { %v6909_v25 = vor.u32 %v8175_v30, %v6908_v14  ;;  %v1611_v37 = vrot.slane %v1610_v23, 4  ;;  %v6584_v56 = vld [vmem:[%s8735_s8 + $0x2c] sm:$0x1]  ;;  %v9680_v3 = vld [vmem:[%s8735_s8 + $0x30] sm:$0xe]  ;;  %5674 = vmatpush.bf16.msrb.mxu3 %v8346_v52  ;;  %v8354_v36 = vld [vmem:[%s10601_s1 + $0x338] sm:$0xff]  ;;  %v9708_v54 = vpop.f32.mrf.mxu2 }
 0x13d   : > { %v1621_v60 = vrot.slane %v1620_v33, 4  ;;  %v1880_v40 = vrot.slane %v6584_v56, 5  ;;  %v1879_v5 = vrot.slane %v1877_v1, 4  ;;  %v7299_v6 = vld [vmem:[%s8735_s8 + $0x34] sm:$0xf]  ;;  %v7322_v50 = vrot.slane %v9680_v3, 9  ;;  %5723 = vmatpush.bf16.msrb.mxu0 %v8354_v36 }
 0x13e   : > { %3508 = vmatmul.bf16.gmra.mxu0 %v6909_v25  ;;  %v1616_v55 = vsel %vm8765_vm5, %v1611_v37, %v1615_v9  ;;  %v6614_v42 = vld [vmem:[%s8735_s8 + $0x24] sm:$0xe]  ;;  %v1878_v9 = vsel %vm8749_vm4, %v6606_v57, %v1877_v1  ;;  %v7300_v13 = vld [vmem:[%s8735_s8 + $0x38] sm:$0x1]  ;;  %v6615_v14 = vld [vmem:[%s8735_s8 + $0x28] sm:$0xf]  ;;  %v9710_v25 = vpop.f32.mrf.mxu3 }
 0x13f   : > { %v8171_v61 = vld [vmem:[#allocation2 + $0x20c] sm:$0xf]  ;;  %v1626_v8 = vsel %vm8765_vm5, %v1621_v60, %v1625_v24  ;;  %1811 = vst [vmem:[#allocation2 + $0x18] sm:$0xf] %v1616_v55  ;;  %v1881_v18 = vsel %vm8749_vm4, %v1879_v5, %v1880_v40  ;;  %v4327_v20 = vrot.slane %v7299_v6, 5  ;;  %v1988_v27 = vshrl.u32 %v6614_v42, 16 }
 0x140   : > { %4239 = vst [vmem:[#allocation2 + $0x20c] sm:$0xf] %v4205_v44  ;;  %v6616_v0 = vld [vmem:[%s8735_s8 + $0x2c] sm:$0x3]  ;;  %v7282_v24 = vld [vmem:[%s8735_s8 + $0x30] sm:$0xf] }
 0x141   : > { %v6910_v17 = vld [vmem:[#allocation2 + $0x22c] sm:$0xf0]  ;;  %1812 = vst [vmem:[#allocation2 + $0x3c] sm:$0xf] %v1626_v8  ;;  %v1991_v30 = vshll.u32 %v6614_v42, 16  ;;  %v1997_v33 = vshrl.u32 %v6615_v14, 16 }
 0x142   : > { %v6913_v23 = vor.u32 %v8171_v61, %v6910_v17  ;;  %4240 = vst [vmem:[#allocation2 + $0x230] sm:$0xf] %v4208_v49  ;;  %v2000_v41 = vshll.u32 %v6615_v14, 16  ;;  %v1990_v37 = vrot.slane %v1988_v27, 5  ;;  %v2007_v56 = vshrl.u32 %v6616_v0, 16  ;;  %v8362_v1 = vld [vmem:[%s10601_s1 + $0x378] sm:$0xff] }
 0x143   : > { %1947 = vst [vmem:[#allocation2 + $0x1c] sm:$0xf] %v1878_v9  ;;  %v2010_v57 = vshll.u32 %v6616_v0, 16  ;;  %v1993_v52 = vrot.slane %v1991_v30, 6  ;;  %v1999_v44 = vrot.slane %v1997_v33, 5  ;;  %v8337_v40 = vld [vmem:[%s10601_s1 + $0x2b0] sm:$0xff]  ;;  %5772 = vmatpush.bf16.msrb.mxu1 %v8362_v1 }
 0x144   : > { %3557 = vmatmul.bf16.gmra.mxu1 %v6913_v23  ;;  %1948 = vst [vmem:[#allocation2 + $0x40] sm:$0xf] %v1881_v18  ;;  %v2002_v60 = vrot.slane %v2000_v41, 6  ;;  %v7283_v3 = vld [vmem:[%s8735_s8 + $0x34] sm:$0xf]  ;;  %v4329_v55 = vrot.slane %v4327_v20, 4  ;;  %5626 = vmatpush.bf16.msrb.mxu2 %v8337_v40 }
 0x145   : > { %v4330_v5 = vrot.slane %v7300_v13, 5  ;;  %v2009_v6 = vrot.slane %v2007_v56, 5  ;;  %v2012_v42 = vrot.slane %v2010_v57, 6  ;;  %v1994_v49 = vor.u32 %v1993_v52, %v1990_v37  ;;  %v9720_v9 = vld [vmem:[%s8735_s8 + $0x30] sm:$0xc]  ;;  %v9733_v56 = vpop.f32.mrf.mxu1 }
 0x146   : > { %v6664_v61 = vld [vmem:[#allocation2 + $0x18] sm:$0xf]  ;;  %v2003_v8 = vor.u32 %v2002_v60, %v1999_v44  ;;  %v9723_v14 = vld [vmem:[%s8735_s8 + $0x34] sm:$0xf]  ;;  %v4328_v13 = vsel %vm8749_vm4, %v7322_v50, %v4327_v20  ;;  %v7354_v41 = vrot.slane %v9720_v9, 10 }
 0x147   : > { %4261 = vst [vmem:[#allocation2 + $0x18] sm:$0xf] %v7282_v24  ;;  %v2013_v0 = vor.u32 %v2012_v42, %v2009_v6  ;;  %v1995_v18 = vrot.slane %v1994_v49, 4  ;;  %v4331_v30 = vsel %vm8749_vm4, %v4329_v55, %v4330_v5  ;;  %v7332_v33 = vld [vmem:[%s8735_s8 + $0x38] sm:$0x3]  ;;  %v4463_v36 = vrot.slane %v9723_v14, 6  ;;  %v3479_v24 = vpop.f32.mrf.mxu0  ;;  %v3381_v49 = vpop.f32.mrf.mxu2 }
 0x148   : > { %v8113_v17 = vld [vmem:[#allocation2 + $0x38] sm:$0xf0]  ;;  %v2005_v27 = vrot.slane %v2003_v8, 4  ;;  %v6561_v37 = vld [vmem:[%s8735_s8 + $0x30] sm:$0xf] }
 0x149   : > { %v6665_v23 = vor.u32 %v8113_v17, %v6664_v61  ;;  %4262 = vst [vmem:[#allocation2 + $0x3c] sm:$0xf] %v7283_v3  ;;  %v2004_v50 = vsel %vm9086_vm10, %v1995_v18, %v2003_v8  ;;  %v6562_v20 = vld [vmem:[%s8735_s8 + $0x34] sm:$0xf]  ;;  %v6563_v1 = vld [vmem:[%s8735_s8 + $0x38] sm:$0x1]  ;;  %v3430_v8 = vpop.f32.mrf.mxu3  ;;  %v3382_v17 = vadd.f32 %v3381_v49, %v9436_v4 }
 0x14a   : > { %v8109_v57 = vld [vmem:[#allocation2 + $0x1c] sm:$0xf]  ;;  %v2014_v44 = vsel %vm9086_vm10, %v2005_v27, %v2013_v0  ;;  %v7508_v60 = vld [vmem:[#allocation2] sm:$0xf]  ;;  %v1628_v40 = vshrl.u32 %v6561_v37, 16  ;;  %v1631_v3 = vshll.u32 %v6561_v37, 16 }
 0x14b   : > { %3571 = vmatmul.bf16.vlgmr.msra.gmra.mxu2 %v6665_v23  ;;  %v6666_v52 = vld [vmem:[#allocation2 + $0x3c] sm:$0xf0]  ;;  %4397 = vst [vmem:[#allocation2 + $0x1c] sm:$0xf] %v4328_v13  ;;  %v1637_v5 = vshll.u32 %v6562_v20, 16  ;;  %v1641_v6 = vshrl.u32 %v6562_v20, 16 }
 0x14c   : > { %v6669_v55 = vor.u32 %v8109_v57, %v6666_v52  ;;  %4398 = vst [vmem:[#allocation2 + $0x40] sm:$0xf] %v4331_v30  ;;  %v1647_v42 = vshll.u32 %v6563_v1, 16  ;;  %v8345_v61 = vld [vmem:[%s10601_s1 + $0x2f0] sm:$0xff]  ;;  %v8255_v9 = vld [vmem:[#allocation2 + $0x20] sm:$0xf0]  ;;  %v3431_v1 = vadd.f32 %v3430_v8, %v3382_v17 }
 0x14d   : > { %2227 = vst [vmem:[#allocation2 + $0x20] sm:$0xf] %v2004_v50  ;;  %v1630_v14 = vrot.slane %v1628_v40, 4  ;;  %v1633_v0 = vrot.slane %v1631_v3, 5  ;;  %v4466_v13 = vrot.slane %v7332_v33, 6  ;;  %v1639_v18 = vrot.slane %v1637_v5, 5  ;;  %5675 = vmatpush.bf16.msrb.mxu3 %v8345_v61 }
 0x14e   : > { %3620 = vmatmul.bf16.vlgmr.msra.gmra.mxu3 %v6669_v55  ;;  %2228 = vst [vmem:[#allocation2 + $0x44] sm:$0xf] %v2014_v44  ;;  %v1643_v27 = vrot.slane %v1641_v6, 4  ;;  %v8353_v23 = vld [vmem:[%s10601_s1 + $0x330] sm:$0xff]  ;;  %v4465_v30 = vrot.slane %v4463_v36, 4  ;;  %v1649_v57 = vrot.slane %v1647_v42, 5  ;;  %v7509_v4 = vor.u32 %v8255_v9, %v7508_v60 }
 0x14f   : > { %v1634_v37 = vor.u32 %v1633_v0, %v1630_v14  ;;  %v6585_v50 = vld [vmem:[%s8735_s8 + $0x30] sm:$0xe]  ;;  %v6586_v20 = vld [vmem:[%s8735_s8 + $0x34] sm:$0xf]  ;;  %v6587_v44 = vld [vmem:[%s8735_s8 + $0x38] sm:$0x1]  ;;  %5724 = vmatpush.bf16.msrb.mxu0 %v8353_v23  ;;  %v9753_v49 = vadd.f32 %v3479_v24, %v3431_v1  ;;  %v4464_v42 = vsel %vm9113_vm11, %v7354_v41, %v4463_v36  ;;  %v9768_v17 = vpop.f32.mrf.mxu0 }
 0x150   : > { %v1644_v52 = vor.u32 %v1643_v27, %v1639_v18  ;;  %v6607_v33 = vrot.slane %v6585_v50, 9  ;;  %v1884_v40 = vrot.slane %v6586_v20, 5  ;;  %v7301_v3 = vld [vmem:[%s8735_s8 + $0x3c] sm:$0xe]  ;;  %v1887_v5 = vrot.slane %v6587_v44, 5  ;;  %v8361_v9 = vld [vmem:[%s10601_s1 + $0x370] sm:$0xff]  ;;  %v9770_v27 = vpop.f32.mrf.mxu1 }
 0x151   : > { %v1635_v55 = vrot.slane %v1634_v37, 4  ;;  %v7302_v6 = vld [vmem:[%s8735_s8 + $0x40] sm:$0xf]  ;;  %v6617_v8 = vld [vmem:[%s8735_s8 + $0x30] sm:$0xe]  ;;  %v4467_v0 = vsel %vm9113_vm11, %v4465_v30, %v4466_v13  ;;  %v7323_v41 = vrot.slane %v7301_v3, 9  ;;  %5773 = vmatpush.bf16.msrb.mxu1 %v8361_v9 }
 0x152   : > { %v1645_v14 = vrot.slane %v1644_v52, 4  ;;  %v1885_v60 = vsel %vm8749_vm4, %v6607_v33, %v1884_v40  ;;  %v1886_v61 = vrot.slane %v1884_v40, 4  ;;  %v6618_v36 = vld [vmem:[%s8735_s8 + $0x34] sm:$0xf]  ;;  %v7303_v50 = vld [vmem:[%s8735_s8 + $0x44] sm:$0x1]  ;;  %v9778_v40 = vpop.f32.mrf.mxu2 }
 0x153   : > { %v1640_v24 = vsel %vm8765_vm5, %v1635_v55, %v1639_v18  ;;  %1949 = vst [vmem:[#allocation2 + $0x64] sm:$0xf] %v1885_v60  ;;  %v6619_v20 = vld [vmem:[%s8735_s8 + $0x38] sm:$0x3]  ;;  %v4334_v30 = vrot.slane %v7302_v6, 5  ;;  %v2016_v1 = vshrl.u32 %v6617_v8, 16 }
 0x154   : > { %v6672_v23 = vld [vmem:[#allocation2 + $0x20] sm:$0xf]  ;;  %5584 = vmatmul.bf16.vlgmr.msra.gmra.mxu1 %v7509_v4  ;;  %v1650_v37 = vsel %vm8765_vm5, %v1645_v14, %v1649_v57  ;;  %1813 = vst [vmem:[#allocation2 + $0x60] sm:$0xf] %v1640_v24  ;;  %v1888_v18 = vsel %vm8749_vm4, %v1886_v61, %v1887_v5  ;;  %v2019_v44 = vshll.u32 %v6617_v8, 16  ;;  %v2025_v33 = vshrl.u32 %v6618_v36, 16  ;;  %v9780_v57 = vpop.f32.mrf.mxu3 }
 0x155   : > { %v8114_v13 = vld [vmem:[#allocation2 + $0x40] sm:$0xf0]  ;;  %4533 = vst [vmem:[#allocation2 + $0x20] sm:$0xf] %v4464_v42  ;;  %v2028_v4 = vshll.u32 %v6618_v36, 16  ;;  %v8336_v3 = vld [vmem:[%s10601_s1 + $0x2a8] sm:$0xff]  ;;  %v4335_v14 = vsel %vm8749_vm4, %v7323_v41, %v4334_v30 }
 0x156   : > { %v6673_v52 = vor.u32 %v8114_v13, %v6672_v23  ;;  %4534 = vst [vmem:[#allocation2 + $0x44] sm:$0xf] %v4467_v0  ;;  %v7284_v55 = vld [vmem:[%s8735_s8 + $0x3c] sm:$0xf]  ;;  %v2018_v5 = vrot.slane %v2016_v1, 5  ;;  %v2035_v6 = vshrl.u32 %v6619_v20, 16  ;;  %5627 = vmatpush.bf16.msrb.mxu2 %v8336_v3 }
 0x157   : > { %1814 = vst [vmem:[#allocation2 + $0x84] sm:$0xf] %v1650_v37  ;;  %v2038_v42 = vshll.u32 %v6619_v20, 16  ;;  %v2021_v60 = vrot.slane %v2019_v44, 6  ;;  %v2027_v61 = vrot.slane %v2025_v33, 5  ;;  %v2030_v8 = vrot.slane %v2028_v4, 6 }
 0x158   : > { %3669 = vmatmul.bf16.vlgmr.msra.gmra.mxu0 %v6673_v52  ;;  %1950 = vst [vmem:[#allocation2 + $0x88] sm:$0xf] %v1888_v18  ;;  %v4336_v9 = vrot.slane %v4334_v30, 4  ;;  %v4337_v0 = vrot.slane %v7303_v50, 5  ;;  %v2037_v24 = vrot.slane %v2035_v6, 5  ;;  %v3484_v6 = vpop.f32.mrf.mxu0 }
 0x159   : > { %v2040_v36 = vrot.slane %v2038_v42, 6  ;;  %v9789_v23 = vld [vmem:[%s8735_s8 + $0x40] sm:$0xf]  ;;  %v2022_v20 = vor.u32 %v2021_v60, %v2018_v5  ;;  %v2031_v13 = vor.u32 %v2030_v8, %v2027_v61  ;;  %v7333_v30 = vld [vmem:[%s8735_s8 + $0x3c] sm:$0xc]  ;;  %v9800_v60 = vpop.f32.mrf.mxu1 }
 0x15a   : > { %v8118_v37 = vld [vmem:[#allocation2 + $0x64] sm:$0xf]  ;;  %v7285_v1 = vld [vmem:[%s8735_s8 + $0x40] sm:$0xf]  ;;  %v4470_v50 = vrot.slane %v9789_v23, 6  ;;  %v4338_v33 = vsel %vm8749_vm4, %v4336_v9, %v4337_v0 }
 0x15b   : > { %v6700_v18 = vld [vmem:[#allocation2 + $0x60] sm:$0xf]  ;;  %4399 = vst [vmem:[#allocation2 + $0x64] sm:$0xf] %v4335_v14  ;;  %v2041_v41 = vor.u32 %v2040_v36, %v2037_v24  ;;  %v2023_v52 = vrot.slane %v2022_v20, 4  ;;  %v2033_v44 = vrot.slane %v2031_v13, 4 }
 0x15c   : > { %4263 = vst [vmem:[#allocation2 + $0x60] sm:$0xf] %v7284_v55  ;;  %v9797_v4 = vld [vmem:[%s8735_s8 + $0x44] sm:$0x3]  ;;  %v7544_v3 = vld [vmem:[#allocation2 + $0x48] sm:$0xf]  ;;  %v9804_v55 = vadd.f32 %v9664_v62, %v9682_v48  ;;  %v3435_v47 = vpop.f32.mrf.mxu3 }
 0x15d   : > { %v8264_v5 = vld [vmem:[#allocation2 + $0x68] sm:$0xf0]  ;;  %v6564_v42 = vld [vmem:[%s8735_s8 + $0x3c] sm:$0xf]  ;;  %v2032_v61 = vsel %vm9086_vm10, %v2023_v52, %v2031_v13  ;;  %v2042_v8 = vsel %vm9086_vm10, %v2033_v44, %v2041_v41  ;;  %v6565_v9 = vld [vmem:[%s8735_s8 + $0x40] sm:$0xf]  ;;  %v3386_v52 = vpop.f32.mrf.mxu2 }
 0x15e   : > { %v8122_v14 = vld [vmem:[#allocation2 + $0x80] sm:$0xf0]  ;;  %v7545_v23 = vor.u32 %v8264_v5, %v7544_v3  ;;  %v1652_v20 = vshrl.u32 %v6564_v42, 16  ;;  %v1655_v38 = vshll.u32 %v6564_v42, 16  ;;  %v1661_v7 = vshll.u32 %v6565_v9, 16  ;;  %v8344_v13 = vld [vmem:[%s10601_s1 + $0x2e8] sm:$0xff] }
 0x15f   : > { %v6566_v0 = vld [vmem:[%s8735_s8 + $0x44] sm:$0x1]  ;;  %v6701_v24 = vor.u32 %v8122_v14, %v6700_v18  ;;  %4264 = vst [vmem:[#allocation2 + $0x84] sm:$0xf] %v7285_v1  ;;  %v6702_v36 = vld [vmem:[#allocation2 + $0x84] sm:$0xf0]  ;;  %v3387_v44 = vadd.f32 %v3386_v52, %v9502_v35  ;;  %5676 = vmatpush.bf16.msrb.mxu3 %v8344_v13 }
 0x160   : > { %v6705_v63 = vor.u32 %v8118_v37, %v6702_v36  ;;  %4400 = vst [vmem:[#allocation2 + $0x88] sm:$0xf] %v4338_v33  ;;  %v1665_v62 = vshrl.u32 %v6565_v9, 16  ;;  %v1671_v48 = vshll.u32 %v6566_v0, 16  ;;  %v7355_v18 = vrot.slane %v7333_v30, 10  ;;  %v8352_v5 = vld [vmem:[%s10601_s1 + $0x328] sm:$0xff] }
 0x161   : > { %3576 = vmatmul.bf16.gmra.mxu2 %v6701_v24  ;;  %2229 = vst [vmem:[#allocation2 + $0x68] sm:$0xf] %v2032_v61  ;;  %v1654_v1 = vrot.slane %v1652_v20, 4  ;;  %v1657_v41 = vrot.slane %v1655_v38, 5  ;;  %v4473_v37 = vrot.slane %v9797_v4, 6  ;;  %v1663_v33 = vrot.slane %v1661_v7, 5  ;;  %5725 = vmatpush.bf16.msrb.mxu0 %v8352_v5 }
 0x162   : > { %3625 = vmatmul.bf16.gmra.mxu3 %v6705_v63  ;;  %2230 = vst [vmem:[#allocation2 + $0x8c] sm:$0xf] %v2042_v8  ;;  %v1667_v3 = vrot.slane %v1665_v62, 4  ;;  %v4472_v42 = vrot.slane %v4470_v50, 4  ;;  %v1673_v30 = vrot.slane %v1671_v48, 5  ;;  %v3436_v35 = vadd.f32 %v3435_v47, %v3387_v44  ;;  %v9841_v44 = vpop.f32.mrf.mxu0 }
 0x163   : > { %v1658_v14 = vor.u32 %v1657_v41, %v1654_v1  ;;  %v6588_v61 = vld [vmem:[%s8735_s8 + $0x3c] sm:$0xe]  ;;  %v6589_v38 = vld [vmem:[%s8735_s8 + $0x40] sm:$0xf]  ;;  %v6590_v4 = vld [vmem:[%s8735_s8 + $0x44] sm:$0x1]  ;;  %v4471_v62 = vsel %vm9113_vm11, %v7355_v18, %v4470_v50 }
 0x164   : > { %5589 = vmatmul.bf16.gmra.mxu1 %v7545_v23  ;;  %v1668_v63 = vor.u32 %v1667_v3, %v1663_v33  ;;  %v6608_v8 = vrot.slane %v6588_v61, 9  ;;  %v1891_v7 = vrot.slane %v6589_v38, 5  ;;  %v7304_v9 = vld [vmem:[%s8735_s8 + $0x48] sm:$0xe]  ;;  %v1894_v24 = vrot.slane %v6590_v4, 5  ;;  %v9843_v3 = vpop.f32.mrf.mxu1 }
 0x165   : > { %v1659_v0 = vrot.slane %v1658_v14, 4  ;;  %v7305_v36 = vld [vmem:[%s8735_s8 + $0x4c] sm:$0xf]  ;;  %v9825_v20 = vadd.f32 %v3484_v6, %v3436_v35  ;;  %v7306_v13 = vld [vmem:[%s8735_s8 + $0x50] sm:$0x1]  ;;  %v4474_v41 = vsel %vm9113_vm11, %v4472_v42, %v4473_v37  ;;  %v7324_v50 = vrot.slane %v7304_v9, 9  ;;  %v9852_v9 = vpop.f32.mrf.mxu3 }
 0x166   : > { %v1669_v48 = vrot.slane %v1668_v63, 4  ;;  %v1892_v47 = vsel %vm8749_vm4, %v6608_v8, %v1891_v7  ;;  %v1893_v23 = vrot.slane %v1891_v7, 4  ;;  %v6620_v52 = vld [vmem:[%s8735_s8 + $0x3c] sm:$0xe]  ;;  %v8360_v1 = vld [vmem:[%s10601_s1 + $0x368] sm:$0xff]  ;;  %v9850_v7 = vpop.f32.mrf.mxu2 }
 0x167   : > { %v1664_v6 = vsel %vm8765_vm5, %v1659_v0, %v1663_v33  ;;  %1951 = vst [vmem:[#allocation2 + $0xac] sm:$0xf] %v1892_v47  ;;  %v6621_v18 = vld [vmem:[%s8735_s8 + $0x40] sm:$0xf]  ;;  %v6622_v61 = vld [vmem:[%s8735_s8 + $0x44] sm:$0x3]  ;;  %5774 = vmatpush.bf16.msrb.mxu1 %v8360_v1 }
 0x168   : > { %v6708_v5 = vld [vmem:[#allocation2 + $0x68] sm:$0xf]  ;;  %v1674_v14 = vsel %vm8765_vm5, %v1669_v48, %v1673_v30  ;;  %1815 = vst [vmem:[#allocation2 + $0xa8] sm:$0xf] %v1664_v6  ;;  %v1895_v37 = vsel %vm8749_vm4, %v1893_v23, %v1894_v24  ;;  %v4341_v33 = vrot.slane %v7305_v36, 5  ;;  %v2044_v42 = vshrl.u32 %v6620_v52, 16 }
 0x169   : > { %v8123_v38 = vld [vmem:[#allocation2 + $0x88] sm:$0xf0]  ;;  %4535 = vst [vmem:[#allocation2 + $0x68] sm:$0xf] %v4471_v62  ;;  %v2047_v63 = vshll.u32 %v6620_v52, 16  ;;  %v2053_v4 = vshrl.u32 %v6621_v18, 16 }
 0x16a   : > { %v6709_v35 = vor.u32 %v8123_v38, %v6708_v5  ;;  %4536 = vst [vmem:[#allocation2 + $0x8c] sm:$0xf] %v4474_v41  ;;  %v2056_v8 = vshll.u32 %v6621_v18, 16  ;;  %v8335_v30 = vld [vmem:[%s10601_s1 + $0x2a0] sm:$0xff]  ;;  %v7286_v0 = vld [vmem:[%s8735_s8 + $0x48] sm:$0xf]  ;;  %v4342_v47 = vsel %vm8749_vm4, %v7324_v50, %v4341_v33 }
 0x16b   : > { %1816 = vst [vmem:[#allocation2 + $0xcc] sm:$0xf] %v1674_v14  ;;  %v4344_v62 = vrot.slane %v7306_v13, 5  ;;  %v2046_v24 = vrot.slane %v2044_v42, 5  ;;  %v2063_v36 = vshrl.u32 %v6622_v61, 16  ;;  %v2066_v48 = vshll.u32 %v6622_v61, 16  ;;  %5628 = vmatpush.bf16.msrb.mxu2 %v8335_v30 }
 0x16c   : > { %3674 = vmatmul.bf16.gmra.mxu0 %v6709_v35  ;;  %1952 = vst [vmem:[#allocation2 + $0xd0] sm:$0xf] %v1895_v37  ;;  %v2049_v23 = vrot.slane %v2047_v63, 6  ;;  %v2055_v52 = vrot.slane %v2053_v4, 5  ;;  %v2058_v1 = vrot.slane %v2056_v8, 6  ;;  %v4343_v41 = vrot.slane %v4341_v33, 4 }
 0x16d   : > { %v2065_v6 = vrot.slane %v2063_v36, 5  ;;  %v2068_v18 = vrot.slane %v2066_v48, 6  ;;  %v9861_v5 = vld [vmem:[%s8735_s8 + $0x4c] sm:$0xf]  ;;  %v9865_v13 = vadd.f32 %v9733_v56, %v9753_v49  ;;  %v7336_v63 = vld [vmem:[%s8735_s8 + $0x48] sm:$0xc]  ;;  %v9876_v48 = vpop.f32.mrf.mxu1 }
 0x16e   : > { %v8127_v14 = vld [vmem:[#allocation2 + $0xac] sm:$0xf]  ;;  %v2050_v61 = vor.u32 %v2049_v23, %v2046_v24  ;;  %v2059_v38 = vor.u32 %v2058_v1, %v2055_v52  ;;  %v4477_v4 = vrot.slane %v9861_v5, 6  ;;  %v4345_v56 = vsel %vm8749_vm4, %v4343_v41, %v4344_v62  ;;  %v9873_v49 = vld [vmem:[%s8735_s8 + $0x50] sm:$0x3]  ;;  %v3489_v24 = vpop.f32.mrf.mxu0 }
 0x16f   : > { %v6736_v50 = vld [vmem:[#allocation2 + $0xa8] sm:$0xf]  ;;  %v7287_v37 = vld [vmem:[%s8735_s8 + $0x4c] sm:$0xf]  ;;  %4401 = vst [vmem:[#allocation2 + $0xac] sm:$0xf] %v4342_v47  ;;  %v2069_v42 = vor.u32 %v2068_v18, %v2065_v6 }
 0x170   : > { %4265 = vst [vmem:[#allocation2 + $0xa8] sm:$0xf] %v7286_v0  ;;  %v2051_v33 = vrot.slane %v2050_v61, 4  ;;  %v2061_v35 = vrot.slane %v2059_v38, 4  ;;  %v7580_v8 = vld [vmem:[#allocation2 + $0x90] sm:$0xf] }
 0x171   : > { %v8273_v30 = vld [vmem:[#allocation2 + $0xb0] sm:$0xf0]  ;;  %v6567_v36 = vld [vmem:[%s8735_s8 + $0x48] sm:$0xf]  ;;  %v6568_v52 = vld [vmem:[%s8735_s8 + $0x4c] sm:$0xf] }
 0x172   : > { %v8131_v47 = vld [vmem:[#allocation2 + $0xc8] sm:$0xf0]  ;;  %v2060_v0 = vsel %vm9086_vm10, %v2051_v33, %v2059_v38  ;;  %v7581_v23 = vor.u32 %v8273_v30, %v7580_v8  ;;  %v6569_v1 = vld [vmem:[%s8735_s8 + $0x50] sm:$0x1]  ;;  %v2070_v62 = vsel %vm9086_vm10, %v2061_v35, %v2069_v42  ;;  %v1676_v41 = vshrl.u32 %v6567_v36, 16  ;;  %v8343_v38 = vld [vmem:[%s10601_s1 + $0x2e0] sm:$0xff]  ;;  %v3391_v33 = vpop.f32.mrf.mxu2  ;;  %v3440_v8 = vpop.f32.mrf.mxu3 }
 0x173   : > { %v6737_v6 = vor.u32 %v8131_v47, %v6736_v50  ;;  %4266 = vst [vmem:[#allocation2 + $0xcc] sm:$0xf] %v7287_v37  ;;  %v6738_v18 = vld [vmem:[#allocation2 + $0xcc] sm:$0xf0]  ;;  %v1679_v5 = vshll.u32 %v6567_v36, 16  ;;  %v1685_v43 = vshll.u32 %v6568_v52, 16  ;;  %5677 = vmatpush.bf16.msrb.mxu3 %v8343_v38 }
 0x174   : > { %v6741_v61 = vor.u32 %v8127_v14, %v6738_v18  ;;  %4402 = vst [vmem:[#allocation2 + $0xd0] sm:$0xf] %v4345_v56  ;;  %5594 = vmatmul.bf16.gmra.mxu1 %v7581_v23  ;;  %v1689_v12 = vshrl.u32 %v6568_v52, 16  ;;  %v1695_v15 = vshll.u32 %v6569_v1, 16  ;;  %v7356_v50 = vrot.slane %v7336_v63, 10  ;;  %v8351_v36 = vld [vmem:[%s10601_s1 + $0x320] sm:$0xff] }
 0x175   : > { %3581 = vmatmul.bf16.gmra.mxu2 %v6737_v6  ;;  %2231 = vst [vmem:[#allocation2 + $0xb0] sm:$0xf] %v2060_v0  ;;  %v1678_v37 = vrot.slane %v1676_v41, 4  ;;  %v1681_v42 = vrot.slane %v1679_v5, 5  ;;  %v3392_v14 = vadd.f32 %v3391_v33, %v9584_v46  ;;  %v4480_v35 = vrot.slane %v9873_v49, 6  ;;  %5726 = vmatpush.bf16.msrb.mxu0 %v8351_v36 }
 0x176   : > { %3630 = vmatmul.bf16.gmra.mxu3 %v6741_v61  ;;  %2232 = vst [vmem:[#allocation2 + $0xd4] sm:$0xf] %v2070_v62  ;;  %v1687_v56 = vrot.slane %v1685_v43, 5  ;;  %v1691_v30 = vrot.slane %v1689_v12, 4  ;;  %v4479_v47 = vrot.slane %v4477_v4, 4  ;;  %v1697_v63 = vrot.slane %v1695_v15, 5 }
 0x177   : > { %v1682_v0 = vor.u32 %v1681_v42, %v1678_v37  ;;  %v6591_v23 = vld [vmem:[%s8735_s8 + $0x48] sm:$0xe]  ;;  %v6592_v52 = vld [vmem:[%s8735_s8 + $0x4c] sm:$0xf]  ;;  %v3441_v46 = vadd.f32 %v3440_v8, %v3392_v14  ;;  %v6593_v6 = vld [vmem:[%s8735_s8 + $0x50] sm:$0x1]  ;;  %v4478_v15 = vsel %vm9113_vm11, %v7356_v50, %v4477_v4  ;;  %v9912_v14 = vpop.f32.mrf.mxu0 }
 0x178   : > { %v1692_v1 = vor.u32 %v1691_v30, %v1687_v56  ;;  %v6609_v18 = vrot.slane %v6591_v23, 9  ;;  %v1898_v62 = vrot.slane %v6592_v52, 5  ;;  %v7307_v49 = vld [vmem:[%s8735_s8 + $0x54] sm:$0xe]  ;;  %v1901_v43 = vrot.slane %v6593_v6, 5  ;;  %v8359_v37 = vld [vmem:[%s10601_s1 + $0x360] sm:$0xff]  ;;  %v9914_v30 = vpop.f32.mrf.mxu1 }
 0x179   : > { %v1683_v12 = vrot.slane %v1682_v0, 4  ;;  %v7308_v41 = vld [vmem:[%s8735_s8 + $0x58] sm:$0xf]  ;;  %v9897_v5 = vadd.f32 %v3489_v24, %v3441_v46  ;;  %v6623_v8 = vld [vmem:[%s8735_s8 + $0x48] sm:$0xe]  ;;  %v4481_v42 = vsel %vm9113_vm11, %v4479_v47, %v4480_v35  ;;  %v7325_v4 = vrot.slane %v7307_v49, 9  ;;  %5775 = vmatpush.bf16.msrb.mxu1 %v8359_v37 }
 0x17a   : > { %v1693_v61 = vrot.slane %v1692_v1, 4  ;;  %v1899_v38 = vsel %vm8749_vm4, %v6609_v18, %v1898_v62  ;;  %v1900_v33 = vrot.slane %v1898_v62, 4  ;;  %v6624_v50 = vld [vmem:[%s8735_s8 + $0x4c] sm:$0xf]  ;;  %10622 = vst [vmem:[#allocation12_spill] sm:$0xff] %v9912_v14  ;;  %v9922_v35 = vadd.f32 %v9800_v60, %v9825_v20  ;;  %v9926_v49 = vpop.f32.mrf.mxu2  ;;  %v8334_v60 = vld [vmem:[%s10601_s1 + $0x298] sm:$0xff] }
 0x17b   : > { %v1688_v24 = vsel %vm8765_vm5, %v1683_v12, %v1687_v56  ;;  %1953 = vst [vmem:[#allocation2 + $0xf4] sm:$0xf] %v1899_v38  ;;  %v7309_v23 = vld [vmem:[%s8735_s8 + $0x5c] sm:$0x1]  ;;  %v6625_v52 = vld [vmem:[%s8735_s8 + $0x50] sm:$0x3]  ;;  %v9928_v12 = vpop.f32.mrf.mxu3  ;;  %5629 = vmatpush.bf16.msrb.mxu2 %v8334_v60 }
 0x17c   : > { %10623 = vst [vmem:[#allocation13_spill] sm:$0xff] %v9914_v30  ;;  %v6744_v36 = vld [vmem:[#allocation2 + $0xb0] sm:$0xf]  ;;  %v1698_v0 = vsel %vm8765_vm5, %v1693_v61, %v1697_v63  ;;  %v1902_v47 = vsel %vm8749_vm4, %v1900_v33, %v1901_v43  ;;  %v4348_v46 = vrot.slane %v7308_v41, 5  ;;  %v2072_v1 = vshrl.u32 %v6623_v8, 16 }
 0x17d   : > { %1817 = vst [vmem:[#allocation2 + $0xf0] sm:$0xf] %v1688_v24  ;;  %v8132_v56 = vld [vmem:[#allocation2 + $0xd0] sm:$0xf0]  ;;  %v2075_v18 = vshll.u32 %v6623_v8, 16  ;;  %v2081_v63 = vshrl.u32 %v6624_v50, 16 }
 0x17e   : > { %4537 = vst [vmem:[#allocation2 + $0xb0] sm:$0xf] %v4478_v15  ;;  %v6745_v6 = vor.u32 %v8132_v56, %v6744_v36  ;;  %v2084_v62 = vshll.u32 %v6624_v50, 16  ;;  %v7288_v20 = vld [vmem:[%s8735_s8 + $0x54] sm:$0xf]  ;;  %v2074_v15 = vrot.slane %v2072_v1, 5  ;;  %v4349_v61 = vsel %vm8749_vm4, %v7325_v4, %v4348_v46 }
 0x17f   : > { %4538 = vst [vmem:[#allocation2 + $0xd4] sm:$0xf] %v4481_v42  ;;  %v2091_v43 = vshrl.u32 %v6625_v52, 16  ;;  %v2094_v41 = vshll.u32 %v6625_v52, 16  ;;  %v2077_v38 = vrot.slane %v2075_v18, 6  ;;  %v2083_v33 = vrot.slane %v2081_v63, 5 }
 0x180   : > { %10624 = vst [vmem:[#allocation14_spill] sm:$0xff] %v9928_v12  ;;  %3679 = vmatmul.bf16.gmra.mxu0 %v6745_v6  ;;  %v2086_v8 = vrot.slane %v2084_v62, 6  ;;  %v4350_v37 = vrot.slane %v4348_v46, 4  ;;  %v4351_v42 = vrot.slane %v7309_v23, 5  ;;  %v9937_v36 = vld [vmem:[%s8735_s8 + $0x58] sm:$0xf] }
 0x181   : > { %1818 = vst [vmem:[#allocation2 + $0x114] sm:$0xf] %v1698_v0  ;;  %v2093_v24 = vrot.slane %v2091_v43, 5  ;;  %v2096_v50 = vrot.slane %v2094_v41, 6  ;;  %v2078_v52 = vor.u32 %v2077_v38, %v2074_v15  ;;  %v7289_v1 = vld [vmem:[%s8735_s8 + $0x58] sm:$0xf]  ;;  %v3494_v43 = vpop.f32.mrf.mxu0  ;;  %v9948_v38 = vpop.f32.mrf.mxu1 }
 0x182   : > { %1954 = vst [vmem:[#allocation2 + $0x118] sm:$0xf] %v1902_v47  ;;  %v8136_v0 = vld [vmem:[#allocation2 + $0xf4] sm:$0xf]  ;;  %v2087_v56 = vor.u32 %v2086_v8, %v2083_v33  ;;  %v4484_v23 = vrot.slane %v9937_v36, 6  ;;  %v4352_v63 = vsel %vm8749_vm4, %v4350_v37, %v4351_v42 }
 0x183   : > { %4403 = vst [vmem:[#allocation2 + $0xf4] sm:$0xf] %v4349_v61  ;;  %v2097_v4 = vor.u32 %v2096_v50, %v2093_v24  ;;  %v2079_v6 = vrot.slane %v2078_v52, 4  ;;  %v7339_v46 = vld [vmem:[%s8735_s8 + $0x54] sm:$0xc] }
 0x184   : > { %v6772_v47 = vld [vmem:[#allocation2 + $0xf0] sm:$0xf]  ;;  %v2089_v18 = vrot.slane %v2087_v56, 4  ;;  %v9945_v62 = vld [vmem:[%s8735_s8 + $0x5c] sm:$0x3] }
 0x185   : > { %4267 = vst [vmem:[#allocation2 + $0xf0] sm:$0xf] %v7288_v20  ;;  %v7616_v60 = vld [vmem:[#allocation2 + $0xd8] sm:$0xf]  ;;  %v8282_v15 = vld [vmem:[#allocation2 + $0xf8] sm:$0xf0]  ;;  %v2088_v20 = vsel %vm9086_vm10, %v2079_v6, %v2087_v56  ;;  %v3396_v6 = vpop.f32.mrf.mxu2 }
 0x186   : > { %v6570_v41 = vld [vmem:[%s8735_s8 + $0x54] sm:$0xf]  ;;  %v7617_v33 = vor.u32 %v8282_v15, %v7616_v60  ;;  %v6571_v8 = vld [vmem:[%s8735_s8 + $0x58] sm:$0xf]  ;;  %v6572_v24 = vld [vmem:[%s8735_s8 + $0x5c] sm:$0x1]  ;;  %v2098_v37 = vsel %vm9086_vm10, %v2089_v18, %v2097_v4  ;;  %v3445_v60 = vpop.f32.mrf.mxu3 }
 0x187   : > { %v1700_v42 = vshrl.u32 %v6570_v41, 16  ;;  %v1703_v52 = vshll.u32 %v6570_v41, 16  ;;  %v1709_v30 = vshll.u32 %v6571_v8, 16  ;;  %v1713_v14 = vshrl.u32 %v6571_v8, 16  ;;  %v8342_v56 = vld [vmem:[%s10601_s1 + $0x2d8] sm:$0xff] }
 0x188   : > { %v8140_v61 = vld [vmem:[#allocation2 + $0x110] sm:$0xf0]  ;;  %5599 = vmatmul.bf16.gmra.mxu1 %v7617_v33  ;;  %v1719_v12 = vshll.u32 %v6572_v24, 16  ;;  %2233 = vst [vmem:[#allocation2 + $0xf8] sm:$0xf] %v2088_v20  ;;  %v4487_v18 = vrot.slane %v9945_v62, 6  ;;  %5678 = vmatpush.bf16.msrb.mxu3 %v8342_v56 }
 0x189   : > { %v6773_v50 = vor.u32 %v8140_v61, %v6772_v47  ;;  %4268 = vst [vmem:[#allocation2 + $0x114] sm:$0xf] %v7289_v1  ;;  %v6774_v36 = vld [vmem:[#allocation2 + $0x114] sm:$0xf0]  ;;  %v7357_v47 = vrot.slane %v7339_v46, 10  ;;  %v1702_v1 = vrot.slane %v1700_v42, 4 }
 0x18a   : > { %v6777_v59 = vor.u32 %v8136_v0, %v6774_v36  ;;  %4404 = vst [vmem:[#allocation2 + $0x118] sm:$0xf] %v4352_v63  ;;  %v1705_v4 = vrot.slane %v1703_v52, 5  ;;  %v3397_v0 = vadd.f32 %v3396_v6, %v9370_v22  ;;  %v1711_v63 = vrot.slane %v1709_v30, 5  ;;  %v8350_v41 = vld [vmem:[%s10601_s1 + $0x318] sm:$0xff] }
 0x18b   : > { %3586 = vmatmul.bf16.gmra.mxu2 %v6773_v50  ;;  %2234 = vst [vmem:[#allocation2 + $0x11c] sm:$0xf] %v2098_v37  ;;  %v1715_v15 = vrot.slane %v1713_v14, 4  ;;  %v4486_v61 = vrot.slane %v4484_v23, 4  ;;  %v1721_v46 = vrot.slane %v1719_v12, 5  ;;  %5727 = vmatpush.bf16.msrb.mxu0 %v8350_v41  ;;  %v9970_v14 = vadd.f32 %v9876_v48, %v9897_v5  ;;  %v8358_v48 = vld [vmem:[%s10601_s1 + $0x358] sm:$0xff]  ;;  %v9993_v41 = vpop.f32.mrf.mxu1 }
 0x18c   : > { %3635 = vmatmul.bf16.gmra.mxu3 %v6777_v59  ;;  %v1706_v20 = vor.u32 %v1705_v4, %v1702_v1  ;;  %v6594_v33 = vld [vmem:[%s8735_s8 + $0x54] sm:$0xe]  ;;  %v6595_v8 = vld [vmem:[%s8735_s8 + $0x58] sm:$0xf]  ;;  %v3446_v22 = vadd.f32 %v3445_v60, %v3397_v0  ;;  %v6596_v24 = vld [vmem:[%s8735_s8 + $0x5c] sm:$0x1]  ;;  %v4485_v56 = vsel %vm9113_vm11, %v7357_v47, %v4484_v23  ;;  %5776 = vmatpush.bf16.msrb.mxu1 %v8358_v48 }
 0x18d   : > { %v1716_v59 = vor.u32 %v1715_v15, %v1711_v63  ;;  %v6610_v50 = vrot.slane %v6594_v33, 9  ;;  %v1905_v62 = vrot.slane %v6595_v8, 5  ;;  %v7310_v30 = vld [vmem:[%s8735_s8 + $0x60] sm:$0xe]  ;;  %v1908_v37 = vrot.slane %v6596_v24, 5  ;;  %v9991_v15 = vpop.f32.mrf.mxu0  ;;  %10626 = vst [vmem:[#allocation16_spill] sm:$0xff] %v9993_v41 }
 0x18e   : > { %v1707_v36 = vrot.slane %v1706_v20, 4  ;;  %v7311_v42 = vld [vmem:[%s8735_s8 + $0x64] sm:$0xf]  ;;  %v9974_v12 = vld [vmem:[%s8735_s8 + $0x68] sm:$0x1]  ;;  %v9976_v52 = vadd.f32 %v3494_v43, %v3446_v22  ;;  %v4488_v5 = vsel %vm9113_vm11, %v4486_v61, %v4487_v18  ;;  %v7326_v0 = vrot.slane %v7310_v30, 9  ;;  %v10001_v30 = vpop.f32.mrf.mxu2 }
 0x18f   : > { %v1717_v6 = vrot.slane %v1716_v59, 4  ;;  %v1906_v60 = vsel %vm8749_vm4, %v6610_v50, %v1905_v62  ;;  %v1907_v1 = vrot.slane %v1905_v62, 4  ;;  %v6626_v4 = vld [vmem:[%s8735_s8 + $0x54] sm:$0xe]  ;;  %v4355_v23 = vrot.slane %v7311_v42, 5  ;;  %10625 = vst [vmem:[#allocation15_spill] sm:$0xff] %v9991_v15 }
 0x190   : > { %v1712_v43 = vsel %vm8765_vm5, %v1707_v36, %v1711_v63  ;;  %1955 = vst [vmem:[#allocation2 + $0x13c] sm:$0xf] %v1906_v60  ;;  %v6627_v47 = vld [vmem:[%s8735_s8 + $0x58] sm:$0xf]  ;;  %v6628_v8 = vld [vmem:[%s8735_s8 + $0x5c] sm:$0x3] }
 0x191   : > { %v6780_v20 = vld [vmem:[#allocation2 + $0xf8] sm:$0xf]  ;;  %v1722_v33 = vsel %vm8765_vm5, %v1717_v6, %v1721_v46  ;;  %1819 = vst [vmem:[#allocation2 + $0x138] sm:$0xf] %v1712_v43  ;;  %v1909_v63 = vsel %vm8749_vm4, %v1907_v1, %v1908_v37  ;;  %v4358_v61 = vrot.slane %v9974_v12, 5  ;;  %v2100_v22 = vshrl.u32 %v6626_v4, 16  ;;  %v10003_v46 = vpop.f32.mrf.mxu3 }
 0x192   : > { %v8141_v18 = vld [vmem:[#allocation2 + $0x118] sm:$0xf0]  ;;  %4539 = vst [vmem:[#allocation2 + $0xf8] sm:$0xf] %v4485_v56  ;;  %v2103_v24 = vshll.u32 %v6626_v4, 16  ;;  %v2109_v50 = vshrl.u32 %v6627_v47, 16  ;;  %v4356_v42 = vsel %vm8749_vm4, %v7326_v0, %v4355_v23 }
 0x193   : > { %v6781_v59 = vor.u32 %v8141_v18, %v6780_v20  ;;  %4540 = vst [vmem:[#allocation2 + $0x11c] sm:$0xf] %v4488_v5  ;;  %v2112_v62 = vshll.u32 %v6627_v47, 16  ;;  %v8333_v36 = vld [vmem:[%s10601_s1 + $0x290] sm:$0xff]  ;;  %v7290_v37 = vld [vmem:[%s8735_s8 + $0x60] sm:$0xf] }
 0x194   : > { %10627 = vst [vmem:[#allocation17_spill] sm:$0xff] %v10001_v30  ;;  %v2102_v12 = vrot.slane %v2100_v22, 5  ;;  %v2119_v56 = vshrl.u32 %v6628_v8, 16  ;;  %v2122_v6 = vshll.u32 %v6628_v8, 16  ;;  %v4357_v60 = vrot.slane %v4355_v23, 4  ;;  %5630 = vmatpush.bf16.msrb.mxu2 %v8333_v36 }
 0x195   : > { %10628 = vst [vmem:[#allocation18_spill] sm:$0xff] %v10003_v46  ;;  %3684 = vmatmul.bf16.gmra.mxu0 %v6781_v59  ;;  %v2105_v1 = vrot.slane %v2103_v24, 6  ;;  %v2111_v4 = vrot.slane %v2109_v50, 5  ;;  %v2114_v48 = vrot.slane %v2112_v62, 6  ;;  %v10012_v47 = vld [vmem:[%s8735_s8 + $0x60] sm:$0xc] }
 0x196   : > { %1820 = vst [vmem:[#allocation2 + $0x15c] sm:$0xf] %v1722_v33  ;;  %v2121_v5 = vrot.slane %v2119_v56, 5  ;;  %v2124_v43 = vrot.slane %v2122_v6, 6  ;;  %v10015_v20 = vld [vmem:[%s8735_s8 + $0x64] sm:$0xf]  ;;  %v4359_v62 = vsel %vm8749_vm4, %v4357_v60, %v4358_v61  ;;  %v3499_v6 = vpop.f32.mrf.mxu0 }
 0x197   : > { %1956 = vst [vmem:[#allocation2 + $0x160] sm:$0xf] %v1909_v63  ;;  %v8145_v33 = vld [vmem:[#allocation2 + $0x13c] sm:$0xf]  ;;  %v2106_v0 = vor.u32 %v2105_v1, %v2102_v12  ;;  %v2115_v18 = vor.u32 %v2114_v48, %v2111_v4  ;;  %v7291_v22 = vld [vmem:[%s8735_s8 + $0x64] sm:$0xf] }
 0x198   : > { %v6808_v8 = vld [vmem:[#allocation2 + $0x138] sm:$0xf]  ;;  %4405 = vst [vmem:[#allocation2 + $0x13c] sm:$0xf] %v4356_v42  ;;  %v2125_v63 = vor.u32 %v2124_v43, %v2121_v5  ;;  %v7358_v24 = vrot.slane %v10012_v47, 10  ;;  %v4491_v50 = vrot.slane %v10015_v20, 6  ;;  %v10026_v42 = vpop.f32.mrf.mxu1 }
 0x199   : > { %4269 = vst [vmem:[#allocation2 + $0x138] sm:$0xf] %v7290_v37  ;;  %v2107_v23 = vrot.slane %v2106_v0, 4  ;;  %v2117_v59 = vrot.slane %v2115_v18, 4  ;;  %v10023_v36 = vld [vmem:[%s8735_s8 + $0x68] sm:$0x3] }
 0x19a   : > { %v7652_v12 = vld [vmem:[#allocation2 + $0x120] sm:$0xf]  ;;  %v8291_v56 = vld [vmem:[#allocation2 + $0x140] sm:$0xf0]  ;;  %v6575_v43 = vld [vmem:[%s8735_s8 + $0x68] sm:$0x1] }
 0x19b   : > { %v6573_v1 = vld [vmem:[%s8735_s8 + $0x60] sm:$0xf]  ;;  %v2116_v37 = vsel %vm9086_vm10, %v2107_v23, %v2115_v18  ;;  %v7653_v48 = vor.u32 %v8291_v56, %v7652_v12  ;;  %v6574_v5 = vld [vmem:[%s8735_s8 + $0x64] sm:$0xf]  ;;  %v2126_v61 = vsel %vm9086_vm10, %v2117_v59, %v2125_v63  ;;  %v1743_v30 = vshll.u32 %v6575_v43, 16  ;;  %v8341_v18 = vld [vmem:[%s10601_s1 + $0x2d0] sm:$0xff]  ;;  %v3401_v23 = vpop.f32.mrf.mxu2  ;;  %v3450_v12 = vpop.f32.mrf.mxu3 }
 0x19c   : > { %v1724_v60 = vshrl.u32 %v6573_v1, 16  ;;  %v1727_v0 = vshll.u32 %v6573_v1, 16  ;;  %v1733_v15 = vshll.u32 %v6574_v5, 16  ;;  %v1737_v46 = vshrl.u32 %v6574_v5, 16  ;;  %2235 = vst [vmem:[#allocation2 + $0x140] sm:$0xf] %v2116_v37  ;;  %5679 = vmatpush.bf16.msrb.mxu3 %v8341_v18 }
 0x19d   : > { %v8149_v4 = vld [vmem:[#allocation2 + $0x158] sm:$0xf0]  ;;  %5604 = vmatmul.bf16.gmra.mxu1 %v7653_v48  ;;  %v3402_v63 = vadd.f32 %v3401_v23, %v9439_v16  ;;  %2236 = vst [vmem:[#allocation2 + $0x164] sm:$0xf] %v2126_v61  ;;  %v4494_v59 = vrot.slane %v10023_v36, 6  ;;  %v8349_v1 = vld [vmem:[%s10601_s1 + $0x310] sm:$0xff] }
 0x19e   : > { %v6809_v47 = vor.u32 %v8149_v4, %v6808_v8  ;;  %4270 = vst [vmem:[#allocation2 + $0x15c] sm:$0xf] %v7291_v22  ;;  %v6810_v20 = vld [vmem:[#allocation2 + $0x15c] sm:$0xf0]  ;;  %v1726_v8 = vrot.slane %v1724_v60, 4  ;;  %v1729_v22 = vrot.slane %v1727_v0, 5  ;;  %5728 = vmatpush.bf16.msrb.mxu0 %v8349_v1 }
 0x19f   : > { %v6813_v41 = vor.u32 %v8145_v33, %v6810_v20  ;;  %4406 = vst [vmem:[#allocation2 + $0x160] sm:$0xf] %v4359_v62  ;;  %v10040_v33 = vadd.f32 %v9948_v38, %v9976_v52  ;;  %v1735_v62 = vrot.slane %v1733_v15, 5  ;;  %v1739_v56 = vrot.slane %v1737_v46, 4  ;;  %v6597_v48 = vld [vmem:[%s8735_s8 + $0x60] sm:$0xe] }
 0x1a0   : > { %3591 = vmatmul.bf16.gmra.mxu2 %v6809_v47  ;;  %v4493_v4 = vrot.slane %v4491_v50, 4  ;;  %v1730_v37 = vor.u32 %v1729_v22, %v1726_v8  ;;  %v1745_v16 = vrot.slane %v1743_v30, 5  ;;  %v6598_v5 = vld [vmem:[%s8735_s8 + $0x64] sm:$0xf]  ;;  %v3451_v38 = vadd.f32 %v3450_v12, %v3402_v63  ;;  %v7313_v36 = vld [vmem:[%s8735_s8 + $0x6c] sm:$0xe]  ;;  %v10066_v22 = vpop.f32.mrf.mxu0  ;;  %v10068_v63 = vpop.f32.mrf.mxu1 }
 0x1a1   : > { %3640 = vmatmul.bf16.gmra.mxu3 %v6813_v41  ;;  %v1740_v52 = vor.u32 %v1739_v56, %v1735_v62  ;;  %v6599_v41 = vld [vmem:[%s8735_s8 + $0x68] sm:$0x1]  ;;  %v6611_v43 = vrot.slane %v6597_v48, 9  ;;  %v1912_v47 = vrot.slane %v6598_v5, 5  ;;  %v7314_v20 = vld [vmem:[%s8735_s8 + $0x70] sm:$0xf]  ;;  %v4492_v30 = vsel %vm9113_vm11, %v7358_v24, %v4491_v50 }
 0x1a2   : > { %v1731_v15 = vrot.slane %v1730_v37, 4  ;;  %v1915_v46 = vrot.slane %v6599_v41, 5  ;;  %v10051_v61 = vadd.f32 %v3499_v6, %v3451_v38  ;;  %v6629_v23 = vld [vmem:[%s8735_s8 + $0x60] sm:$0xe]  ;;  %v8357_v12 = vld [vmem:[%s10601_s1 + $0x350] sm:$0xff]  ;;  %v4495_v8 = vsel %vm9113_vm11, %v4493_v4, %v4494_v59  ;;  %10629 = vst [vmem:[#allocation19_spill] sm:$0xff] %v10066_v22 }
 0x1a3   : > { %v1741_v60 = vrot.slane %v1740_v52, 4  ;;  %v1913_v0 = vsel %vm8749_vm4, %v6611_v43, %v1912_v47  ;;  %v1914_v18 = vrot.slane %v1912_v47, 4  ;;  %v7327_v24 = vrot.slane %v7313_v36, 9  ;;  %v6630_v50 = vld [vmem:[%s8735_s8 + $0x64] sm:$0xf]  ;;  %10630 = vst [vmem:[#allocation20_spill] sm:$0xff] %v10068_v63  ;;  %5777 = vmatpush.bf16.msrb.mxu1 %v8357_v12  ;;  %v10076_v47 = vpop.f32.mrf.mxu2 }
 0x1a4   : > { %v1736_v6 = vsel %vm8765_vm5, %v1731_v15, %v1735_v62  ;;  %1957 = vst [vmem:[#allocation2 + $0x184] sm:$0xf] %v1913_v0  ;;  %v6816_v56 = vld [vmem:[#allocation2 + $0x140] sm:$0xf]  ;;  %v7315_v37 = vld [vmem:[%s8735_s8 + $0x74] sm:$0x1] }
 0x1a5   : > { %v1746_v1 = vsel %vm8765_vm5, %v1741_v60, %v1745_v16  ;;  %1821 = vst [vmem:[#allocation2 + $0x180] sm:$0xf] %v1736_v6  ;;  %v6631_v48 = vld [vmem:[%s8735_s8 + $0x68] sm:$0x3]  ;;  %v8150_v59 = vld [vmem:[#allocation2 + $0x160] sm:$0xf0]  ;;  %v1916_v62 = vsel %vm8749_vm4, %v1914_v18, %v1915_v46  ;;  %v10078_v16 = vpop.f32.mrf.mxu3 }
 0x1a6   : > { %4541 = vst [vmem:[#allocation2 + $0x140] sm:$0xf] %v4492_v30  ;;  %v4362_v4 = vrot.slane %v7314_v20, 5  ;;  %v2128_v5 = vshrl.u32 %v6629_v23, 16  ;;  %v6817_v38 = vor.u32 %v8150_v59, %v6816_v56  ;;  %v2131_v52 = vshll.u32 %v6629_v23, 16  ;;  %v8332_v36 = vld [vmem:[%s10601_s1 + $0x288] sm:$0xff] }
 0x1a7   : > { %4542 = vst [vmem:[#allocation2 + $0x164] sm:$0xf] %v4495_v8  ;;  %v2137_v41 = vshrl.u32 %v6630_v50, 16  ;;  %v2140_v43 = vshll.u32 %v6630_v50, 16  ;;  %v7292_v15 = vld [vmem:[%s8735_s8 + $0x6c] sm:$0xf]  ;;  %5631 = vmatpush.bf16.msrb.mxu2 %v8332_v36 }
 0x1a8   : > { %1822 = vst [vmem:[#allocation2 + $0x1a4] sm:$0xf] %v1746_v1  ;;  %v2130_v30 = vrot.slane %v2128_v5, 5  ;;  %v2147_v46 = vshrl.u32 %v6631_v48, 16  ;;  %v2150_v20 = vshll.u32 %v6631_v48, 16  ;;  %3689 = vmatmul.bf16.gmra.mxu0 %v6817_v38  ;;  %v4363_v60 = vsel %vm8749_vm4, %v7327_v24, %v4362_v4 }
 0x1a9   : > { %1958 = vst [vmem:[#allocation2 + $0x1a8] sm:$0xf] %v1916_v62  ;;  %v2133_v0 = vrot.slane %v2131_v52, 6  ;;  %v2139_v18 = vrot.slane %v2137_v41, 5  ;;  %v2142_v23 = vrot.slane %v2140_v43, 6  ;;  %v4364_v12 = vrot.slane %v4362_v4, 4 }
 0x1aa   : > { %v4365_v8 = vrot.slane %v7315_v37, 5  ;;  %v2149_v6 = vrot.slane %v2147_v46, 5  ;;  %v2152_v50 = vrot.slane %v2150_v20, 6  ;;  %v10087_v56 = vld [vmem:[%s8735_s8 + $0x70] sm:$0xf]  ;;  %v3504_v46 = vpop.f32.mrf.mxu0 }
 0x1ab   : > { %v8154_v1 = vld [vmem:[#allocation2 + $0x184] sm:$0xf]  ;;  %v2134_v48 = vor.u32 %v2133_v0, %v2130_v30  ;;  %v2143_v59 = vor.u32 %v2142_v23, %v2139_v18  ;;  %v7293_v5 = vld [vmem:[%s8735_s8 + $0x70] sm:$0xf]  ;;  %v7345_v4 = vld [vmem:[%s8735_s8 + $0x6c] sm:$0xc]  ;;  %v10098_v0 = vpop.f32.mrf.mxu1 }
 0x1ac   : > { %v6844_v62 = vld [vmem:[#allocation2 + $0x180] sm:$0xf]  ;;  %4407 = vst [vmem:[#allocation2 + $0x184] sm:$0xf] %v4363_v60  ;;  %v2153_v24 = vor.u32 %v2152_v50, %v2149_v6  ;;  %v4498_v37 = vrot.slane %v10087_v56, 6  ;;  %v4366_v41 = vsel %vm8749_vm4, %v4364_v12, %v4365_v8 }
 0x1ad   : > { %4271 = vst [vmem:[#allocation2 + $0x180] sm:$0xf] %v7292_v15  ;;  %v2135_v38 = vrot.slane %v2134_v48, 4  ;;  %v2145_v52 = vrot.slane %v2143_v59, 4  ;;  %v10095_v43 = vld [vmem:[%s8735_s8 + $0x74] sm:$0x3]  ;;  %v10102_v15 = vadd.f32 %v10026_v42, %v10051_v61 }
 0x1ae   : > { %v7688_v36 = vld [vmem:[#allocation2 + $0x168] sm:$0xf]  ;;  %v8300_v30 = vld [vmem:[#allocation2 + $0x188] sm:$0xf0]  ;;  %v6577_v6 = vld [vmem:[%s8735_s8 + $0x70] sm:$0xf] }
 0x1af   : > { %v6576_v20 = vld [vmem:[%s8735_s8 + $0x6c] sm:$0xf]  ;;  %10631 = vst [vmem:[#allocation21_spill] sm:$0xff] %v10102_v15  ;;  %v8158_v60 = vld [vmem:[#allocation2 + $0x1a0] sm:$0xf0]  ;;  %v2144_v18 = vsel %vm9086_vm10, %v2135_v38, %v2143_v59  ;;  %v7689_v23 = vor.u32 %v8300_v30, %v7688_v36  ;;  %v2154_v56 = vsel %vm9086_vm10, %v2145_v52, %v2153_v24  ;;  %v1757_v42 = vshll.u32 %v6577_v6, 16  ;;  %v3406_v38 = vpop.f32.mrf.mxu2  ;;  %v3455_v36 = vpop.f32.mrf.mxu3 }
 0x1b0   : > { %v6578_v50 = vld [vmem:[%s8735_s8 + $0x74] sm:$0x1]  ;;  %v6845_v12 = vor.u32 %v8158_v60, %v6844_v62  ;;  %4272 = vst [vmem:[#allocation2 + $0x1a4] sm:$0xf] %v7293_v5  ;;  %v6846_v8 = vld [vmem:[#allocation2 + $0x1a4] sm:$0xf0] }
 0x1b1   : > { %v1748_v48 = vshrl.u32 %v6576_v20, 16  ;;  %v1751_v63 = vshll.u32 %v6576_v20, 16  ;;  %v6849_v22 = vor.u32 %v8154_v1, %v6846_v8  ;;  %4408 = vst [vmem:[#allocation2 + $0x1a8] sm:$0xf] %v4366_v41  ;;  %5609 = vmatmul.bf16.gmra.mxu1 %v7689_v23  ;;  %v1761_v61 = vshrl.u32 %v6577_v6, 16  ;;  %v8340_v59 = vld [vmem:[%s10601_s1 + $0x2c8] sm:$0xff] }
 0x1b2   : > { %v1767_v15 = vshll.u32 %v6578_v50, 16  ;;  %3596 = vmatmul.bf16.gmra.mxu2 %v6845_v12  ;;  %2237 = vst [vmem:[#allocation2 + $0x188] sm:$0xf] %v2144_v18  ;;  %v7359_v62 = vrot.slane %v7345_v4, 10  ;;  %v3407_v1 = vadd.f32 %v3406_v38, %v9527_v45  ;;  %v4501_v52 = vrot.slane %v10095_v43, 6  ;;  %v8348_v20 = vld [vmem:[%s10601_s1 + $0x308] sm:$0xff]  ;;  %5680 = vmatpush.bf16.msrb.mxu3 %v8340_v59 }
 0x1b3   : > { %v1750_v5 = vrot.slane %v1748_v48, 4  ;;  %v1753_v24 = vrot.slane %v1751_v63, 5  ;;  %3645 = vmatmul.bf16.gmra.mxu3 %v6849_v22  ;;  %2238 = vst [vmem:[#allocation2 + $0x1ac] sm:$0xf] %v2154_v56  ;;  %v1759_v41 = vrot.slane %v1757_v42, 5  ;;  %v1763_v30 = vrot.slane %v1761_v61, 4  ;;  %5729 = vmatpush.bf16.msrb.mxu0 %v8348_v20  ;;  %v10139_v20 = vpop.f32.mrf.mxu1 }
 0x1b4   : > { %v4500_v60 = vrot.slane %v4498_v37, 4  ;;  %v1769_v4 = vrot.slane %v1767_v15, 5  ;;  %v6600_v23 = vld [vmem:[%s8735_s8 + $0x6c] sm:$0xe]  ;;  %v6601_v63 = vld [vmem:[%s8735_s8 + $0x70] sm:$0xf]  ;;  %v3456_v45 = vadd.f32 %v3455_v36, %v3407_v1  ;;  %v4499_v15 = vsel %vm9113_vm11, %v7359_v62, %v4498_v37 }
 0x1b5   : > { %v1754_v18 = vor.u32 %v1753_v24, %v1750_v5  ;;  %v1764_v22 = vor.u32 %v1763_v30, %v1759_v41  ;;  %v6602_v6 = vld [vmem:[%s8735_s8 + $0x74] sm:$0x1]  ;;  %v6612_v50 = vrot.slane %v6600_v23, 9  ;;  %v1919_v43 = vrot.slane %v6601_v63, 5  ;;  %v7316_v12 = vld [vmem:[%s8735_s8 + $0x78] sm:$0xe]  ;;  %v10137_v30 = vpop.f32.mrf.mxu0 }
 0x1b6   : > { %v1922_v56 = vrot.slane %v6602_v6, 5  ;;  %v7317_v48 = vld [vmem:[%s8735_s8 + $0x7c] sm:$0xf]  ;;  %v3505_v42 = vadd.f32 %v3504_v46, %v3456_v45  ;;  %v7318_v36 = vld [vmem:[%s8735_s8 + $0x80] sm:$0x1]  ;;  %v8356_v24 = vld [vmem:[%s10601_s1 + $0x348] sm:$0xff]  ;;  %v4502_v1 = vsel %vm9113_vm11, %v4500_v60, %v4501_v52 }
 0x1b7   : > { %v1755_v8 = vrot.slane %v1754_v18, 4  ;;  %v1765_v61 = vrot.slane %v1764_v22, 4  ;;  %v1920_v59 = vsel %vm8749_vm4, %v6612_v50, %v1919_v43  ;;  %v1921_v38 = vrot.slane %v1919_v43, 4  ;;  %v6632_v5 = vld [vmem:[%s8735_s8 + $0x6c] sm:$0xe]  ;;  %10632 = vst [vmem:[#allocation22_spill] sm:$0xff] %v10137_v30  ;;  %5778 = vmatpush.bf16.msrb.mxu1 %v8356_v24 }
 0x1b8   : > { %1959 = vst [vmem:[#allocation2 + $0x1cc] sm:$0xf] %v1920_v59  ;;  %v7328_v37 = vrot.slane %v7316_v12, 9  ;;  %v6633_v62 = vld [vmem:[%s8735_s8 + $0x70] sm:$0xf]  ;;  %v2156_v60 = vshrl.u32 %v6632_v5, 16  ;;  %v10146_v12 = vpop.f32.mrf.mxu2 }
 0x1b9   : > { %v1760_v46 = vsel %vm8765_vm5, %v1755_v8, %v1759_v41  ;;  %10633 = vst [vmem:[#allocation23_spill] sm:$0xff] %v10139_v20  ;;  %v6852_v18 = vld [vmem:[#allocation2 + $0x188] sm:$0xf]  ;;  %v1770_v23 = vsel %vm8765_vm5, %v1765_v61, %v1769_v4  ;;  %v6634_v63 = vld [vmem:[%s8735_s8 + $0x74] sm:$0x3]  ;;  %v1923_v52 = vsel %vm8749_vm4, %v1921_v38, %v1922_v56  ;;  %v4369_v41 = vrot.slane %v7317_v48, 5  ;;  %v10148_v8 = vpop.f32.mrf.mxu3 }
 0x1ba   : > { %1823 = vst [vmem:[#allocation2 + $0x1c8] sm:$0xf] %v1760_v46  ;;  %v8159_v45 = vld [vmem:[#allocation2 + $0x1a8] sm:$0xf0]  ;;  %v2159_v6 = vshll.u32 %v6632_v5, 16  ;;  %v2165_v50 = vshrl.u32 %v6633_v62, 16 }
 0x1bb   : > { %4543 = vst [vmem:[#allocation2 + $0x188] sm:$0xf] %v4499_v15  ;;  %v6853_v22 = vor.u32 %v8159_v45, %v6852_v18  ;;  %v2168_v43 = vshll.u32 %v6633_v62, 16  ;;  %v8331_v4 = vld [vmem:[%s10601_s1 + $0x280] sm:$0xff]  ;;  %v7294_v15 = vld [vmem:[%s8735_s8 + $0x78] sm:$0xf]  ;;  %v4370_v38 = vsel %vm8749_vm4, %v7328_v37, %v4369_v41 }
 0x1bc   : > { %4544 = vst [vmem:[#allocation2 + $0x1ac] sm:$0xf] %v4502_v1  ;;  %v4372_v61 = vrot.slane %v7318_v36, 5  ;;  %v2158_v56 = vrot.slane %v2156_v60, 5  ;;  %v2175_v48 = vshrl.u32 %v6634_v63, 16  ;;  %v2178_v59 = vshll.u32 %v6634_v63, 16  ;;  %5632 = vmatpush.bf16.msrb.mxu2 %v8331_v4 }
 0x1bd   : > { %10634 = vst [vmem:[#allocation24_spill] sm:$0xff] %v10148_v8  ;;  %3694 = vmatmul.bf16.gmra.mxu0 %v6853_v22  ;;  %v2161_v5 = vrot.slane %v2159_v6, 6  ;;  %v2167_v24 = vrot.slane %v2165_v50, 5  ;;  %v2170_v1 = vrot.slane %v2168_v43, 6  ;;  %v4371_v46 = vrot.slane %v4369_v41, 4 }
 0x1be   : > { %1824 = vst [vmem:[#allocation2 + $0x1ec] sm:$0xf] %v1770_v23  ;;  %v2177_v62 = vrot.slane %v2175_v48, 5  ;;  %v2180_v18 = vrot.slane %v2178_v59, 6  ;;  %v10157_v23 = vld [vmem:[%s8735_s8 + $0x7c] sm:$0xf]  ;;  %v10160_v36 = vadd.f32 %v10098_v0, %v3505_v42  ;;  %v3509_v48 = vpop.f32.mrf.mxu0 }
 0x1bf   : > { %1960 = vst [vmem:[#allocation2 + $0x1f0] sm:$0xf] %v1923_v52  ;;  %v8163_v63 = vld [vmem:[#allocation2 + $0x1cc] sm:$0xf]  ;;  %v2162_v45 = vor.u32 %v2161_v5, %v2158_v56  ;;  %v2171_v52 = vor.u32 %v2170_v1, %v2167_v24  ;;  %v7295_v37 = vld [vmem:[%s8735_s8 + $0x7c] sm:$0xf]  ;;  %v4373_v0 = vsel %vm8749_vm4, %v4371_v46, %v4372_v61 }
 0x1c0   : > { %10635 = vst [vmem:[#allocation25_spill] sm:$0xff] %v10160_v36  ;;  %v2181_v22 = vor.u32 %v2180_v18, %v2177_v62  ;;  %v10164_v50 = vld [vmem:[%s8735_s8 + $0x78] sm:$0xc]  ;;  %v4505_v43 = vrot.slane %v10157_v23, 6  ;;  %v10170_v42 = vld [vmem:[%s8735_s8 + $0x80] sm:$0x3] }
 0x1c1   : > { %v6880_v60 = vld [vmem:[#allocation2 + $0x1c8] sm:$0xf]  ;;  %4409 = vst [vmem:[#allocation2 + $0x1cc] sm:$0xf] %v4370_v38  ;;  %v2163_v41 = vrot.slane %v2162_v45, 4  ;;  %v2173_v6 = vrot.slane %v2171_v52, 4  ;;  %v10173_v38 = vpop.f32.mrf.mxu1 }
 0x1c2   : > { %4273 = vst [vmem:[#allocation2 + $0x1c8] sm:$0xf] %v7294_v15  ;;  %v7724_v4 = vld [vmem:[#allocation2 + $0x1b0] sm:$0xf]  ;;  %v8309_v56 = vld [vmem:[#allocation2 + $0x1d0] sm:$0xf0] }
 0x1c3   : > { %v6579_v59 = vld [vmem:[%s8735_s8 + $0x78] sm:$0xf]  ;;  %v2172_v15 = vsel %vm9086_vm10, %v2163_v41, %v2171_v52  ;;  %v7725_v24 = vor.u32 %v8309_v56, %v7724_v4  ;;  %v6580_v1 = vld [vmem:[%s8735_s8 + $0x7c] sm:$0xf]  ;;  %v6581_v62 = vld [vmem:[%s8735_s8 + $0x80] sm:$0x1]  ;;  %v2182_v61 = vsel %vm9086_vm10, %v2173_v6, %v2181_v22  ;;  %v3411_v41 = vpop.f32.mrf.mxu2  ;;  %v3460_v4 = vpop.f32.mrf.mxu3 }
 0x1c4   : > { %v1772_v46 = vshrl.u32 %v6579_v59, 16  ;;  %v1775_v45 = vshll.u32 %v6579_v59, 16  ;;  %v1781_v30 = vshll.u32 %v6580_v1, 16  ;;  %v1785_v36 = vshrl.u32 %v6580_v1, 16  ;;  %v8339_v52 = vld [vmem:[%s10601_s1 + $0x2c0] sm:$0xff] }
 0x1c5   : > { %v8167_v5 = vld [vmem:[#allocation2 + $0x1e8] sm:$0xf0]  ;;  %5614 = vmatmul.bf16.gmra.mxu1 %v7725_v24  ;;  %v1791_v8 = vshll.u32 %v6581_v62, 16  ;;  %2239 = vst [vmem:[#allocation2 + $0x1d0] sm:$0xf] %v2172_v15  ;;  %v4508_v6 = vrot.slane %v10170_v42, 6  ;;  %5681 = vmatpush.bf16.msrb.mxu3 %v8339_v52 }
 0x1c6   : > { %v6881_v18 = vor.u32 %v8167_v5, %v6880_v60  ;;  %4274 = vst [vmem:[#allocation2 + $0x1ec] sm:$0xf] %v7295_v37  ;;  %v6882_v23 = vld [vmem:[#allocation2 + $0x1ec] sm:$0xf0]  ;;  %v7360_v60 = vrot.slane %v10164_v50, 10  ;;  %v1774_v37 = vrot.slane %v1772_v46, 4 }
 0x1c7   : > { %v6885_v20 = vor.u32 %v8163_v63, %v6882_v23  ;;  %4410 = vst [vmem:[#allocation2 + $0x1f0] sm:$0xf] %v4373_v0  ;;  %v1777_v22 = vrot.slane %v1775_v45, 5  ;;  %v3412_v63 = vadd.f32 %v3411_v41, %v9601_v28  ;;  %v1783_v0 = vrot.slane %v1781_v30, 5  ;;  %v8347_v59 = vld [vmem:[%s10601_s1 + $0x300] sm:$0xff] }
 0x1c8   : > { %3601 = vmatmul.bf16.gmra.mxu2 %v6881_v18  ;;  %2240 = vst [vmem:[#allocation2 + $0x1f4] sm:$0xf] %v2182_v61  ;;  %v1787_v56 = vrot.slane %v1785_v36, 4  ;;  %v4507_v5 = vrot.slane %v4505_v43, 4  ;;  %v1793_v50 = vrot.slane %v1791_v8, 5  ;;  %5730 = vmatpush.bf16.msrb.mxu0 %v8347_v59  ;;  %v4506_v41 = vsel %vm9113_vm11, %v7360_v60, %v4505_v43  ;;  %v10217_v60 = vpop.f32.mrf.mxu0 }
 0x1c9   : > { %3650 = vmatmul.bf16.gmra.mxu3 %v6885_v20  ;;  %v1778_v15 = vor.u32 %v1777_v22, %v1774_v37  ;;  %v6603_v24 = vld [vmem:[%s8735_s8 + $0x78] sm:$0xe]  ;;  %v6604_v1 = vld [vmem:[%s8735_s8 + $0x7c] sm:$0xf]  ;;  %v3461_v62 = vadd.f32 %v3460_v4, %v3412_v63  ;;  %v6605_v20 = vld [vmem:[%s8735_s8 + $0x80] sm:$0x1]  ;;  %v10202_v52 = vpop.f32.mrf.mxu1 }
 0x1ca   : > { %v1788_v28 = vor.u32 %v1787_v56, %v1783_v0  ;;  %v6613_v18 = vrot.slane %v6603_v24, 9  ;;  %v1926_v23 = vrot.slane %v6604_v1, 5  ;;  %v7319_v42 = vld [vmem:[%s8735_s8 + $0x84] sm:$0xe]  ;;  %v10197_v30 = vld [vmem:[%s10602_s2] ss:$0 sm:$0xff] }
 0x1cb   : > { %v3281_v36 = vadd.f32 %v10197_v30, %v9382_v39  ;;  %v1779_v8 = vrot.slane %v1778_v15, 4  ;;  %v1929_v61 = vrot.slane %v6605_v20, 5  ;;  %v7320_v46 = vld [vmem:[%s8735_s8 + $0x88] sm:$0xf]  ;;  %v3510_v45 = vadd.f32 %v3509_v48, %v3461_v62  ;;  %v6635_v63 = vld [vmem:[%s8735_s8 + $0x78] sm:$0xe]  ;;  %v10225_v20 = vpop.f32.mrf.mxu3 }
 0x1cc   : > { %v1789_v4 = vrot.slane %v1788_v28, 4  ;;  %v1927_v37 = vsel %vm8749_vm4, %v6613_v18, %v1926_v23  ;;  %v1928_v22 = vrot.slane %v1926_v23, 4  ;;  %v8355_v39 = vld [vmem:[%s10601_s1 + $0x340] sm:$0xff]  ;;  %v4509_v48 = vsel %vm9113_vm11, %v4507_v5, %v4508_v6  ;;  %v6636_v43 = vld [vmem:[%s8735_s8 + $0x7c] sm:$0xf]  ;;  %v10223_v28 = vpop.f32.mrf.mxu2  ;;  %5919 = vmatpush.bf16.msra.mxu0 %v8386_v51 }
 0x1cd   : > { %v1784_v56 = vsel %vm8765_vm5, %v1779_v8, %v1783_v0  ;;  %1961 = vst [vmem:[#allocation2 + $0x214] sm:$0xf] %v1927_v37  ;;  %v7329_v59 = vrot.slane %v7319_v42, 9  ;;  %v6888_v15 = vld [vmem:[#allocation2 + $0x1d0] sm:$0xf]  ;;  %5779 = vmatpush.bf16.msrb.mxu1 %v8355_v39  ;;  %v10228_v6 = vadd.f32 %v10173_v38, %v3510_v45  ;;  %v3330_v0 = vadd.f32 %v9392_v58, %v3281_v36  ;;  %v8370_v38 = vld [vmem:[%s10601_s1 + $0x3b8] sm:$0xff] }
 0x1ce   : > { %v1794_v24 = vsel %vm8765_vm5, %v1789_v4, %v1793_v50  ;;  %1825 = vst [vmem:[#allocation2 + $0x210] sm:$0xf] %v1784_v56  ;;  %v7321_v1 = vld [vmem:[%s8735_s8 + $0x8c] sm:$0x1]  ;;  %v6637_v62 = vld [vmem:[%s8735_s8 + $0x80] sm:$0x3]  ;;  %v1930_v18 = vsel %vm8749_vm4, %v1928_v22, %v1929_v61  ;;  %5821 = vmatpush.bf16.msra.mxu2 %v8370_v38 }
 0x1cf   : > { %v8168_v5 = vld [vmem:[#allocation2 + $0x1f0] sm:$0xf0]  ;;  %4545 = vst [vmem:[#allocation2 + $0x1d0] sm:$0xf] %v4506_v41  ;;  %v4376_v34 = vrot.slane %v7320_v46, 5  ;;  %v2184_v50 = vshrl.u32 %v6635_v63, 16  ;;  %v3379_v45 = vadd.f32 %v9708_v54, %v3330_v0 }
 0x1d0   : > { %v6889_v23 = vor.u32 %v8168_v5, %v6888_v15  ;;  %4546 = vst [vmem:[#allocation2 + $0x1f4] sm:$0xf] %v4509_v48  ;;  %v2187_v42 = vshll.u32 %v6635_v63, 16  ;;  %v2193_v8 = vshrl.u32 %v6636_v43, 16  ;;  %v2196_v4 = vshll.u32 %v6636_v43, 16 }
 0x1d1   : > { %1826 = vst [vmem:[#allocation2 + $0x234] sm:$0xf] %v1794_v24  ;;  %v2186_v58 = vrot.slane %v2184_v50, 5  ;;  %v2203_v36 = vshrl.u32 %v6637_v62, 16  ;;  %v2206_v41 = vshll.u32 %v6637_v62, 16  ;;  %v4377_v61 = vsel %vm8749_vm4, %v7329_v59, %v4376_v34  ;;  %v10240_v43 = vpop.f32.mrf.mxu1 }
 0x1d2   : > { %3699 = vmatmul.bf16.gmra.mxu0 %v6889_v23  ;;  %1962 = vst [vmem:[#allocation2 + $0x238] sm:$0xf] %v1930_v18  ;;  %v2189_v46 = vrot.slane %v2187_v42, 6  ;;  %v2195_v37 = vrot.slane %v2193_v8, 5  ;;  %v2198_v22 = vrot.slane %v2196_v4, 6  ;;  %v4378_v39 = vrot.slane %v4376_v34, 4 }
 0x1d3   : > { %v7296_v63 = vld [vmem:[%s8735_s8 + $0x84] sm:$0xf]  ;;  %v4379_v48 = vrot.slane %v7321_v1, 5  ;;  %v2205_v56 = vrot.slane %v2203_v36, 5  ;;  %v2208_v54 = vrot.slane %v2206_v41, 6  ;;  %v3428_v5 = vadd.f32 %v9710_v25, %v3379_v45  ;;  %v8378_v1 = vld [vmem:[%s10601_s1 + $0x3f8] sm:$0xff]  ;;  %v3621_v8 = vpop.f32.mrf.mxu3 }
 0x1d4   : > { %v7297_v15 = vld [vmem:[%s8735_s8 + $0x88] sm:$0xf]  ;;  %v8172_v24 = vld [vmem:[#allocation2 + $0x214] sm:$0xf]  ;;  %v2190_v62 = vor.u32 %v2189_v46, %v2186_v58  ;;  %v2199_v0 = vor.u32 %v2198_v22, %v2195_v37  ;;  %v3572_v34 = vpop.f32.mrf.mxu2  ;;  %v7760_v38 = vld [vmem:[#allocation2 + $0x1f8] sm:$0xf]  ;;  %5870 = vmatpush.bf16.msra.mxu3 %v8378_v1 }
 0x1d5   : > { %v6916_v18 = vld [vmem:[#allocation2 + $0x210] sm:$0xf]  ;;  %4411 = vst [vmem:[#allocation2 + $0x214] sm:$0xf] %v4377_v61  ;;  %v2209_v59 = vor.u32 %v2208_v54, %v2205_v56  ;;  %v7352_v50 = vld [vmem:[%s8735_s8 + $0x88] sm:$0xf]  ;;  %v4380_v4 = vsel %vm8749_vm4, %v4378_v39, %v4379_v48  ;;  %v3670_v45 = vpop.f32.mrf.mxu0  ;;  %v3477_v46 = vadd.f32 %v9693_v10, %v3428_v5  ;;  %v3286_v56 = vadd.f32 %v10197_v30, %v9448_v26 }
 0x1d6   : > { %4275 = vst [vmem:[#allocation2 + $0x210] sm:$0xf] %v7296_v63  ;;  %v2191_v23 = vrot.slane %v2190_v62, 4  ;;  %v2201_v42 = vrot.slane %v2199_v0, 4  ;;  %v8318_v25 = vld [vmem:[#allocation2 + $0x218] sm:$0xf0]  ;;  %v3573_v54 = vadd.f32 %v3572_v34, %v9804_v55 }
 0x1d7   : > { %v7351_v41 = vld [vmem:[%s8735_s8 + $0x84] sm:$0xc]  ;;  %v7761_v61 = vor.u32 %v8318_v25, %v7760_v38  ;;  %v4512_v63 = vrot.slane %v7352_v50, 6  ;;  %v7353_v48 = vld [vmem:[%s8735_s8 + $0x8c] sm:$0x3] }
 0x1d8   : > { %v8176_v58 = vld [vmem:[#allocation2 + $0x230] sm:$0xf0]  ;;  %v2200_v36 = vsel %vm9086_vm10, %v2191_v23, %v2199_v0  ;;  %v2210_v21 = vsel %vm9086_vm10, %v2201_v42, %v2209_v59  ;;  %v4515_v26 = vrot.slane %v7353_v48, 6  ;;  %v3526_v0 = vadd.f32 %v9695_v11, %v3477_v46  ;;  %v7524_v25 = vld [vmem:[#allocation2 + $0x10] sm:$0xf] }
 0x1d9   : > { %v6917_v37 = vor.u32 %v8176_v58, %v6916_v18  ;;  %4276 = vst [vmem:[#allocation2 + $0x234] sm:$0xf] %v7297_v15  ;;  %v6918_v22 = vld [vmem:[#allocation2 + $0x234] sm:$0xf0]  ;;  %5619 = vmatmul.bf16.gmra.mxu1 %v7761_v61  ;;  %v10260_v10 = vpop.f32.mrf.mxu1  ;;  %v7361_v15 = vrot.slane %v7351_v41, 10  ;;  %v4514_v62 = vrot.slane %v4512_v63, 4  ;;  %v3335_v59 = vadd.f32 %v9463_v53, %v3286_v56 }
 0x1da   : > { %v6921_v39 = vor.u32 %v8172_v24, %v6918_v22  ;;  %4412 = vst [vmem:[#allocation2 + $0x238] sm:$0xf] %v4380_v4  ;;  %v8394_v24 = vld [vmem:[%s10601_s1 + $0x478] sm:$0xff]  ;;  %v8369_v18 = vld [vmem:[%s10601_s1 + $0x3b0] sm:$0xff]  ;;  %v3622_v50 = vadd.f32 %v3621_v8, %v3573_v54  ;;  %v8251_v46 = vld [vmem:[#allocation2 + $0x4] sm:$0xf] }
 0x1db   : > { %3606 = vmatmul.bf16.gmra.mxu2 %v6917_v37  ;;  %2241 = vst [vmem:[#allocation2 + $0x218] sm:$0xf] %v2200_v36  ;;  %v3623_v5 = vpop.f32.mrf.mxu3  ;;  %5968 = vmatpush.bf16.msra.mxu1 %v8394_v24  ;;  %v4513_v42 = vsel %vm9113_vm11, %v7361_v15, %v4512_v63  ;;  %v3384_v11 = vadd.f32 %v9778_v40, %v3335_v59  ;;  %v8257_v8 = vld [vmem:[#allocation2 + $0x30] sm:$0xf0]  ;;  %v7510_v37 = vld [vmem:[#allocation2 + $0x24] sm:$0xf0] }
 0x1dc   : > { %3655 = vmatmul.bf16.gmra.mxu3 %v6921_v39  ;;  %2242 = vst [vmem:[#allocation2 + $0x23c] sm:$0xf] %v2210_v21  ;;  %v3574_v55 = vpop.f32.mrf.mxu2  ;;  %5822 = vmatpush.bf16.msra.mxu2 %v8369_v18  ;;  %v4516_v1 = vsel %vm9113_vm11, %v4514_v62, %v4515_v26  ;;  %v3671_v53 = vadd.f32 %v3670_v45, %v3622_v50  ;;  %v7516_v19 = vld [vmem:[#allocation2 + $0x8] sm:$0xf]  ;;  %v8256_v22 = vld [vmem:[#allocation2 + $0x28] sm:$0xf0] }
 0x1dd   : > { %v3575_v23 = vadd.f32 %v3574_v55, %v3526_v0  ;;  %v3672_v34 = vpop.f32.mrf.mxu0  ;;  %v3433_v40 = vadd.f32 %v9780_v57, %v3384_v11  ;;  %v7525_v39 = vor.u32 %v8257_v8, %v7524_v25  ;;  %v8377_v45 = vld [vmem:[%s10601_s1 + $0x3f0] sm:$0xff]  ;;  %v7513_v57 = vor.u32 %v8251_v46, %v7510_v37  ;;  %v8368_v18 = vld [vmem:[%s10601_s1 + $0x3a8] sm:$0xff]  ;;  %v7560_v25 = vld [vmem:[#allocation2 + $0x58] sm:$0xf] }
 0x1de   : > { %v8385_v56 = vld [vmem:[%s10601_s1 + $0x430] sm:$0xff]  ;;  %v7517_v24 = vor.u32 %v8256_v22, %v7516_v19  ;;  %5871 = vmatpush.bf16.msra.mxu3 %v8377_v45 }
 0x1df   : > { %v3624_v4 = vadd.f32 %v3623_v5, %v3575_v23  ;;  %v8393_v54 = vld [vmem:[%s10601_s1 + $0x470] sm:$0xff]  ;;  %5920 = vmatpush.bf16.msra.mxu0 %v8385_v56  ;;  %v3482_v62 = vadd.f32 %v9768_v17, %v3433_v40  ;;  %v3291_v17 = vadd.f32 %v10197_v30, %v9531_v2  ;;  %v8252_v23 = vld [vmem:[#allocation2 + $0xc] sm:$0xf] }
 0x1e0   : > { %5969 = vmatpush.bf16.msra.mxu1 %v8393_v54  ;;  %5823 = vmatpush.bf16.msra.mxu2 %v8368_v18  ;;  %v7552_v2 = vld [vmem:[#allocation2 + $0x50] sm:$0xf]  ;;  %v8265_v37 = vld [vmem:[#allocation2 + $0x70] sm:$0xf0] }
 0x1e1   : > { %v3673_v36 = vadd.f32 %v3672_v34, %v3624_v4  ;;  %v10281_v41 = vpop.f32.mrf.mxu1 }
 0x1e2   : > { %v6924_v38 = vld [vmem:[#allocation2 + $0x218] sm:$0xf] }
 0x1e3   : > { %v8177_v58 = vld [vmem:[#allocation2 + $0x238] sm:$0xf0]  ;;  %4547 = vst [vmem:[#allocation2 + $0x218] sm:$0xf] %v4513_v42  ;;  %v8400_v21 = vpack.c.bf16 %v3673_v36, %v3671_v53  ;;  %v3742_v63 = vadd.f32 %v3673_v36, %v3671_v53  ;;  %v7518_v42 = vld [vmem:[#allocation2 + $0x2c] sm:$0xf0] }
 0x1e4   : > { %v6925_v61 = vor.u32 %v8177_v58, %v6924_v38  ;;  %4548 = vst [vmem:[#allocation2 + $0x23c] sm:$0xf] %v4516_v1  ;;  %v3577_v48 = vpop.f32.mrf.mxu2  ;;  %v7521_v4 = vor.u32 %v8252_v23, %v7518_v42  ;;  %v3340_v38 = vadd.f32 %v9541_v29, %v3291_v17  ;;  %v8266_v58 = vld [vmem:[#allocation2 + $0x78] sm:$0xf0]  ;;  %v7546_v36 = vld [vmem:[#allocation2 + $0x6c] sm:$0xf0] }
 0x1e5   : > { %8401 = vst [vmem:[%s10294_s6] sm:$0xff] %v8400_v21   ;;  %v3578_v15 = vadd.f32 %v3577_v48, %v9865_v13  ;;  %v3626_v51 = vpop.f32.mrf.mxu3  ;;  %v3531_v13 = vadd.f32 %v9770_v27, %v3482_v62  ;;  %v8260_v27 = vld [vmem:[#allocation2 + $0x4c] sm:$0xf]  ;;  %v7561_v40 = vor.u32 %v8266_v58, %v7560_v25  ;;  %v8261_v62 = vld [vmem:[#allocation2 + $0x54] sm:$0xf]  ;;  %v8275_v17 = vld [vmem:[#allocation2 + $0xc0] sm:$0xf0] }
 0x1e6   : > { %3704 = vmatmul.bf16.gmra.mxu0 %v6925_v61  ;;  %v3389_v46 = vadd.f32 %v9850_v7, %v3340_v38  ;;  %v8376_v29 = vld [vmem:[%s10601_s1 + $0x3e8] sm:$0xff]  ;;  %v7553_v7 = vor.u32 %v8265_v37, %v7552_v2  ;;  %v7582_v42 = vld [vmem:[#allocation2 + $0xb4] sm:$0xf0]  ;;  %v8383_v25 = vld [vmem:[%s10601_s1 + $0x420] sm:$0xff] }
 0x1e7   : > { %v3627_v26 = vadd.f32 %v3626_v51, %v3578_v15  ;;  %v8384_v21 = vld [vmem:[%s10601_s1 + $0x428] sm:$0xff]  ;;  %5872 = vmatpush.bf16.msra.mxu3 %v8376_v29 }
 0x1e8   : > { %5921 = vmatpush.bf16.msra.mxu0 %v8384_v21  ;;  %v3438_v45 = vadd.f32 %v9852_v9, %v3389_v46  ;;  %v7554_v9 = vld [vmem:[#allocation2 + $0x74] sm:$0xf0]  ;;  %v8270_v21 = vld [vmem:[#allocation2 + $0x9c] sm:$0xf] }
 0x1e9   : > { %5780 = vmatmul.bf16.vlgmr.msrb.gmra.mxu1 %v7525_v39  ;;  %v3675_v0 = vpop.f32.mrf.mxu0  ;;  %v10299_v55 = vpop.f32.mrf.mxu1  ;;  %v7549_v39 = vor.u32 %v8260_v27, %v7546_v36  ;;  %v7557_v18 = vor.u32 %v8261_v62, %v7554_v9  ;;  %v8278_v62 = vld [vmem:[#allocation2 + $0xdc] sm:$0xf]  ;;  %v7618_v9 = vld [vmem:[#allocation2 + $0xfc] sm:$0xf0] }
 0x1ea   : > { %v3676_v5 = vadd.f32 %v3675_v0, %v3627_v26  ;;  %v3487_v15 = vadd.f32 %v9841_v44, %v3438_v45  ;;  %v8269_v44 = vld [vmem:[#allocation2 + $0x94] sm:$0xf] }
 0x1eb   : > { %5633 = vmatmul.bf16.vlgmr.msrb.gmra.mxu2 %v7513_v57  ;;  %v8367_v57 = vld [vmem:[%s10601_s1 + $0x3a0] sm:$0xff] }
 0x1ec   : > { %5682 = vmatmul.bf16.vlgmr.msrb.gmra.mxu3 %v7517_v24  ;;  %v3743_v59 = vadd.f32 %v3742_v63, %v3676_v5  ;;  %v3579_v50 = vpop.f32.mrf.mxu2  ;;  %v8392_v63 = vld [vmem:[%s10601_s1 + $0x468] sm:$0xff]  ;;  %5824 = vmatpush.bf16.msra.mxu2 %v8367_v57 }
 0x1ed   : > { %v3580_v11 = vadd.f32 %v3579_v50, %v3531_v13  ;;  %v3628_v1 = vpop.f32.mrf.mxu3  ;;  %5970 = vmatpush.bf16.msra.mxu1 %v8392_v63  ;;  %v7596_v50 = vld [vmem:[#allocation2 + $0xa0] sm:$0xf]  ;;  %5922 = vmatpush.bf16.msra.mxu0 %v8383_v25 }
 0x1ee   : > { %v7597_v38 = vor.u32 %v8275_v17, %v7596_v50  ;;  %v7590_v63 = vld [vmem:[#allocation2 + $0xbc] sm:$0xf0]  ;;  %v8374_v50 = vld [vmem:[%s10601_s1 + $0x3d8] sm:$0xff] }
 0x1ef   : > { %v3629_v34 = vadd.f32 %v3628_v1, %v3580_v11  ;;  %v7588_v1 = vld [vmem:[#allocation2 + $0x98] sm:$0xf] }
 0x1f0   : > { %v8382_v17 = vld [vmem:[%s10601_s1 + $0x418] sm:$0xff] }
 0x1f1   : > { %v3677_v53 = vpop.f32.mrf.mxu0  ;;  %v10308_v8 = vpop.f32.mrf.mxu1  ;;  %5923 = vmatpush.bf16.msra.mxu0 %v8382_v17 }
 0x1f2   : > { %v3678_v61 = vadd.f32 %v3677_v53, %v3629_v34  ;;  %v8274_v34 = vld [vmem:[#allocation2 + $0xb8] sm:$0xf0]  ;;  %v7585_v53 = vor.u32 %v8269_v44, %v7582_v42  ;;  %v10639_v44 = vld [vmem:[#allocation4_spill] sm:$0xff] }
 0x1f3   : > { %v3301_v42 = vadd.f32 %v10197_v30, %v10639_v44  ;;  %v10645_v44 = vld [vmem:[#allocation6_spill] sm:$0xff] }
 0x1f4   : > { %v8405_v19 = vpack.c.bf16 %v3678_v61, %v3676_v5  ;;  %v3744_v22 = vadd.f32 %v3743_v59, %v3678_v61  ;;  %v3536_v5 = vadd.f32 %v9843_v3, %v3487_v15  ;;  %v3296_v59 = vadd.f32 %v10197_v30, %v9627_v31  ;;  %v8375_v3 = vld [vmem:[%s10601_s1 + $0x3e0] sm:$0xff]  ;;  %v7632_v15 = vld [vmem:[#allocation2 + $0xe8] sm:$0xf] }
 0x1f5   : > { %v8391_v31 = vld [vmem:[%s10601_s1 + $0x460] sm:$0xff]  ;;  %v7589_v61 = vor.u32 %v8274_v34, %v7588_v1  ;;  %5873 = vmatpush.bf16.msra.mxu3 %v8375_v3  ;;  %v10640_v3 = vld [vmem:[#allocation5_spill] sm:$0xff] }
 0x1f6   : > { %5731 = vmatmul.bf16.vlgmr.msrb.gmra.mxu0 %v7521_v4  ;;  %8477 = vst [vmem:[%s10294_s6 + $0x8] sm:$0xff] %v8405_v19   ;;  %v3345_v58 = vadd.f32 %v9629_v32, %v3296_v59  ;;  %5971 = vmatpush.bf16.msra.mxu1 %v8391_v31  ;;  %v8366_v32 = vld [vmem:[%s10601_s1 + $0x398] sm:$0xff]  ;;  %v10636_v19 = vld [vmem:[#allocation14_spill] sm:$0xff]  ;;  %v3350_v25 = vadd.f32 %v10640_v3, %v3301_v42  ;;  %v8288_v3 = vld [vmem:[#allocation2 + $0x12c] sm:$0xf] }
 0x1f7   : > { %5825 = vmatpush.bf16.msra.mxu2 %v8366_v32  ;;  %v7626_v32 = vld [vmem:[#allocation2 + $0x104] sm:$0xf0]  ;;  %v3306_v42 = vadd.f32 %v10197_v30, %v10645_v44  ;;  %v7698_v44 = vld [vmem:[#allocation2 + $0x194] sm:$0xf0] }
 0x1f8   : > { %v3582_v48 = vpop.f32.mrf.mxu2  ;;  %v3394_v2 = vadd.f32 %v9926_v49, %v3345_v58 }
 0x1f9   : > { %5785 = vmatmul.bf16.gmra.mxu1 %v7561_v40  ;;  %v3583_v56 = vadd.f32 %v3582_v48, %v9922_v35  ;;  %v3631_v54 = vpop.f32.mrf.mxu3  ;;  %v10327_v24 = vpop.f32.mrf.mxu1  ;;  %5874 = vmatpush.bf16.msra.mxu3 %v8374_v50 }
 0x1fb   : > { %5638 = vmatmul.bf16.gmra.mxu2 %v7549_v39  ;;  %v3632_v51 = vadd.f32 %v3631_v54, %v3583_v56  ;;  %v7593_v54 = vor.u32 %v8270_v21, %v7590_v63 }
 0x1fc   : > { %5687 = vmatmul.bf16.gmra.mxu3 %v7553_v7  ;;  %v10637_v7 = vld [vmem:[#allocation12_spill] sm:$0xff] }
 0x1fd   : > { %v3680_v26 = vpop.f32.mrf.mxu0 }
 0x1fe   : > { %v3681_v0 = vadd.f32 %v3680_v26, %v3632_v51  ;;  %v8284_v51 = vld [vmem:[#allocation2 + $0x108] sm:$0xf0] }
 0x200   : > { %v3745_v35 = vadd.f32 %v3744_v22, %v3681_v0  ;;  %v3584_v13 = vpop.f32.mrf.mxu2  ;;  %v3443_v22 = vadd.f32 %v10636_v19, %v3394_v2  ;;  %v10642_v19 = vld [vmem:[#allocation18_spill] sm:$0xff] }
 0x201   : > { %v3585_v23 = vadd.f32 %v3584_v13, %v3536_v5  ;;  %v3633_v11 = vpop.f32.mrf.mxu3  ;;  %v8283_v5 = vld [vmem:[#allocation2 + $0x100] sm:$0xf0] }
 0x202   : > { %v3492_v45 = vadd.f32 %v10637_v7, %v3443_v22  ;;  %v8293_v7 = vld [vmem:[#allocation2 + $0x150] sm:$0xf0] }
 0x203   : > { %v3634_v4 = vadd.f32 %v3633_v11, %v3585_v23  ;;  %v8390_v23 = vld [vmem:[%s10601_s1 + $0x458] sm:$0xff]  ;;  %v7621_v11 = vor.u32 %v8278_v62, %v7618_v9 }
 0x204   : > { %5972 = vmatpush.bf16.msra.mxu1 %v8390_v23 }
 0x205   : > { %v3682_v27 = vpop.f32.mrf.mxu0  ;;  %v10342_v36 = vpop.f32.mrf.mxu1 }
 0x206   : > { %5736 = vmatmul.bf16.gmra.mxu0 %v7557_v18  ;;  %v3683_v46 = vadd.f32 %v3682_v27, %v3634_v4  ;;  %v10638_v18 = vld [vmem:[#allocation13_spill] sm:$0xff]  ;;  %v8365_v27 = vld [vmem:[%s10601_s1 + $0x390] sm:$0xff] }
 0x207   : > { %5826 = vmatpush.bf16.msra.mxu2 %v8365_v27 }
 0x208   : > { %v8410_v37 = vpack.c.bf16 %v3683_v46, %v3681_v0  ;;  %v3746_v40 = vadd.f32 %v3745_v35, %v3683_v46  ;;  %v7624_v0 = vld [vmem:[#allocation2 + $0xe0] sm:$0xf]  ;;  %v3541_v35 = vadd.f32 %v10638_v18, %v3492_v45  ;;  %v8287_v45 = vld [vmem:[#allocation2 + $0x124] sm:$0xf] }
 0x209   : > { %5790 = vmatmul.bf16.gmra.mxu1 %v7597_v38  ;;  %v7625_v34 = vor.u32 %v8283_v5, %v7624_v0  ;;  %v8373_v0 = vld [vmem:[%s10601_s1 + $0x3d0] sm:$0xff] }
 0x20a   : > { %8478 = vst [vmem:[%s10294_s6 + $0x10] sm:$0xff] %v8410_v37   ;;  %5875 = vmatpush.bf16.msra.mxu3 %v8373_v0 }
 0x20b   : > { %5643 = vmatmul.bf16.gmra.mxu2 %v7585_v53 }
 0x20c   : > { %5692 = vmatmul.bf16.gmra.mxu3 %v7589_v61  ;;  %v10641_v61 = vld [vmem:[#allocation17_spill] sm:$0xff] }
 0x20d   : > { %v10352_v56 = vpop.f32.mrf.mxu1  ;;  %v3399_v46 = vadd.f32 %v10641_v61, %v3350_v25  ;;  %v7662_v25 = vld [vmem:[#allocation2 + $0x14c] sm:$0xf0]  ;;  %v8364_v61 = vld [vmem:[%s10601_s1 + $0x388] sm:$0xff] }
 0x20e   : > { %v3587_v29 = vpop.f32.mrf.mxu2  ;;  %5827 = vmatpush.bf16.msra.mxu2 %v8364_v61  ;;  %v8363_v61 = vld [vmem:[%s10601_s1 + $0x380] sm:$0xff] }
 0x20f   : > { %v3588_v39 = vadd.f32 %v3587_v29, %v9970_v14  ;;  %v3636_v49 = vpop.f32.mrf.mxu3  ;;  %v7633_v14 = vor.u32 %v8284_v51, %v7632_v15  ;;  %v3448_v22 = vadd.f32 %v10642_v19, %v3399_v46  ;;  %v7660_v15 = vld [vmem:[#allocation2 + $0x128] sm:$0xf]  ;;  %v8292_v51 = vld [vmem:[#allocation2 + $0x148] sm:$0xf0]  ;;  %v8302_v19 = vld [vmem:[#allocation2 + $0x198] sm:$0xf0] }
 0x211   : > { %v3637_v48 = vadd.f32 %v3636_v49, %v3588_v39  ;;  %v7668_v49 = vld [vmem:[#allocation2 + $0x130] sm:$0xf] }
 0x212   : > { %v3685_v57 = vpop.f32.mrf.mxu0  ;;  %5828 = vmatpush.bf16.msra.mxu2 %v8363_v61 }
 0x213   : > { %v3686_v26 = vadd.f32 %v3685_v57, %v3637_v48  ;;  %v7654_v48 = vld [vmem:[#allocation2 + $0x144] sm:$0xf0] }
 0x214   : > { %v7657_v18 = vor.u32 %v8287_v45, %v7654_v48  ;;  %v10647_v48 = vld [vmem:[#allocation21_spill] sm:$0xff] }
 0x215   : > { %v3747_v13 = vadd.f32 %v3746_v40, %v3686_v26  ;;  %v8279_v40 = vld [vmem:[#allocation2 + $0xe4] sm:$0xf] }
 0x216   : > { %5741 = vmatmul.bf16.gmra.mxu0 %v7593_v54  ;;  %v3589_v59 = vpop.f32.mrf.mxu2  ;;  %v7629_v29 = vor.u32 %v8279_v40, %v7626_v32  ;;  %v10643_v54 = vld [vmem:[#allocation15_spill] sm:$0xff] }
 0x217   : > { %v3590_v1 = vadd.f32 %v3589_v59, %v3541_v35  ;;  %v3638_v4 = vpop.f32.mrf.mxu3  ;;  %v3497_v57 = vadd.f32 %v10643_v54, %v3448_v22  ;;  %v7661_v35 = vor.u32 %v8292_v51, %v7660_v15  ;;  %v10644_v59 = vld [vmem:[#allocation16_spill] sm:$0xff]  ;;  %v7704_v32 = vld [vmem:[#allocation2 + $0x178] sm:$0xf]  ;;  %v8296_v22 = vld [vmem:[#allocation2 + $0x16c] sm:$0xf] }
 0x218   : > { %v8380_v15 = vld [vmem:[%s10601_s1 + $0x408] sm:$0xff] }
 0x219   : > { %v3639_v38 = vadd.f32 %v3638_v4, %v3590_v1  ;;  %5795 = vmatmul.bf16.gmra.mxu1 %v7633_v14  ;;  %v8389_v14 = vld [vmem:[%s10601_s1 + $0x450] sm:$0xff]  ;;  %v3546_v50 = vadd.f32 %v10644_v59, %v3497_v57  ;;  %v10646_v4 = vld [vmem:[#allocation7_spill] sm:$0xff] }
 0x21a   : > { %v3687_v31 = vpop.f32.mrf.mxu0  ;;  %v10367_v58 = vpop.f32.mrf.mxu1  ;;  %5973 = vmatpush.bf16.msra.mxu1 %v8389_v14 }
 0x21b   : > { %5648 = vmatmul.bf16.gmra.mxu2 %v7621_v11  ;;  %v3688_v53 = vadd.f32 %v3687_v31, %v3639_v38  ;;  %v3355_v38 = vadd.f32 %v10646_v4, %v3306_v42  ;;  %v10651_v4 = vld [vmem:[#allocation9_spill] sm:$0xff] }
 0x21c   : > { %5697 = vmatmul.bf16.gmra.mxu3 %v7625_v34 }
 0x21d   : > { %v8415_v2 = vpack.c.bf16 %v3688_v53, %v3686_v26  ;;  %v3748_v37 = vadd.f32 %v3747_v13, %v3688_v53  ;;  %v7669_v26 = vor.u32 %v8293_v7, %v7668_v49  ;;  %v3404_v46 = vadd.f32 %v10076_v47, %v3355_v38  ;;  %v8372_v47 = vld [vmem:[%s10601_s1 + $0x3c8] sm:$0xff] }
 0x21e   : > { %v7705_v7 = vor.u32 %v8302_v19, %v7704_v32  ;;  %5876 = vmatpush.bf16.msra.mxu3 %v8372_v47  ;;  %v7732_v32 = vld [vmem:[#allocation2 + $0x1b8] sm:$0xf]  ;;  %v8310_v19 = vld [vmem:[#allocation2 + $0x1d8] sm:$0xf0] }
 0x21f   : > { %8479 = vst [vmem:[%s10294_s6 + $0x18] sm:$0xff] %v8415_v2   ;;  %v7665_v2 = vor.u32 %v8288_v3, %v7662_v25 }
 0x222   : > { %v10377_v9 = vpop.f32.mrf.mxu1 }
 0x223   : > { %v3592_v21 = vpop.f32.mrf.mxu2 }
 0x224   : > { %v3593_v63 = vadd.f32 %v3592_v21, %v10040_v33  ;;  %v3641_v39 = vpop.f32.mrf.mxu3  ;;  %v8381_v33 = vld [vmem:[%s10601_s1 + $0x410] sm:$0xff]  ;;  %v3453_v21 = vadd.f32 %v10078_v16, %v3404_v46  ;;  %v10648_v16 = vld [vmem:[#allocation19_spill] sm:$0xff] }
 0x225   : > { %v3690_v5 = vpop.f32.mrf.mxu0  ;;  %5924 = vmatpush.bf16.msra.mxu0 %v8381_v33 }
 0x226   : > { %v3642_v62 = vadd.f32 %v3641_v39, %v3593_v63  ;;  %5746 = vmatmul.bf16.gmra.mxu0 %v7629_v29  ;;  %v7690_v29 = vld [vmem:[#allocation2 + $0x18c] sm:$0xf0]  ;;  %v8301_v39 = vld [vmem:[#allocation2 + $0x190] sm:$0xf0] }
 0x227   : > { %v7696_v63 = vld [vmem:[#allocation2 + $0x170] sm:$0xf]  ;;  %v7693_v45 = vor.u32 %v8296_v22, %v7690_v29 }
 0x228   : > { %v3691_v13 = vadd.f32 %v3690_v5, %v3642_v62  ;;  %v7697_v51 = vor.u32 %v8301_v39, %v7696_v63  ;;  %v3502_v62 = vadd.f32 %v10648_v16, %v3453_v21  ;;  %v8371_v63 = vld [vmem:[%s10601_s1 + $0x3c0] sm:$0xff] }
 0x229   : > { %5800 = vmatmul.bf16.gmra.mxu1 %v7669_v26  ;;  %5925 = vmatpush.bf16.msra.mxu0 %v8380_v15  ;;  %v10654_v15 = vld [vmem:[#allocation22_spill] sm:$0xff] }
 0x22a   : > { %v3749_v17 = vadd.f32 %v3748_v37, %v3691_v13  ;;  %5877 = vmatpush.bf16.msra.mxu3 %v8371_v63 }
 0x22b   : > { %v3594_v23 = vpop.f32.mrf.mxu2  ;;  %5653 = vmatmul.bf16.gmra.mxu2 %v7657_v18  ;;  %v8388_v18 = vld [vmem:[%s10601_s1 + $0x448] sm:$0xff] }
 0x22c   : > { %v3595_v11 = vadd.f32 %v3594_v23, %v3546_v50  ;;  %5702 = vmatmul.bf16.gmra.mxu3 %v7661_v35  ;;  %v3643_v1 = vpop.f32.mrf.mxu3  ;;  %v10649_v35 = vld [vmem:[#allocation20_spill] sm:$0xff]  ;;  %5974 = vmatpush.bf16.msra.mxu1 %v8388_v18  ;;  %v8297_v23 = vld [vmem:[#allocation2 + $0x174] sm:$0xf] }
 0x22d   : > { %v3692_v31 = vpop.f32.mrf.mxu0  ;;  %v10650_v50 = vld [vmem:[#allocation8_spill] sm:$0xff] }
 0x22e   : > { %v3644_v34 = vadd.f32 %v3643_v1, %v3595_v11  ;;  %v10392_v53 = vpop.f32.mrf.mxu1 }
 0x230   : > { %v3693_v27 = vadd.f32 %v3692_v31, %v3644_v34  ;;  %v7701_v34 = vor.u32 %v8297_v23, %v7698_v44  ;;  %v7740_v31 = vld [vmem:[#allocation2 + $0x1c0] sm:$0xf] }
 0x232   : > { %v8420_v37 = vpack.c.bf16 %v3693_v27, %v3691_v13  ;;  %v3750_v40 = vadd.f32 %v3749_v17, %v3693_v27  ;;  %v3551_v13 = vadd.f32 %v10649_v35, %v3502_v62  ;;  %v3311_v17 = vadd.f32 %v10197_v30, %v10650_v50  ;;  %v8311_v27 = vld [vmem:[#allocation2 + $0x1e0] sm:$0xf0]  ;;  %v10655_v35 = vld [vmem:[#allocation23_spill] sm:$0xff] }
 0x233   : > { %v7741_v21 = vor.u32 %v8311_v27, %v7740_v31  ;;  %v7768_v31 = vld [vmem:[#allocation2 + $0x200] sm:$0xf]  ;;  %v8319_v27 = vld [vmem:[#allocation2 + $0x220] sm:$0xf0] }
 0x234   : > { %8480 = vst [vmem:[%s10294_s6 + $0x20] sm:$0xff] %v8420_v37   ;;  %v3360_v38 = vadd.f32 %v10651_v4, %v3311_v17  ;;  %v7726_v37 = vld [vmem:[#allocation2 + $0x1d4] sm:$0xf0]  ;;  %v10656_v17 = vld [vmem:[#allocation10_spill] sm:$0xff]  ;;  %v8314_v4 = vld [vmem:[#allocation2 + $0x1fc] sm:$0xf] }
 0x235   : > { %v3597_v49 = vpop.f32.mrf.mxu2  ;;  %v3316_v23 = vadd.f32 %v10197_v30, %v10656_v17 }
 0x236   : > { %5751 = vmatmul.bf16.gmra.mxu0 %v7665_v2  ;;  %v3598_v54 = vadd.f32 %v3597_v49, %v10647_v48  ;;  %v3646_v57 = vpop.f32.mrf.mxu3  ;;  %v10408_v0 = vpop.f32.mrf.mxu1  ;;  %v8305_v2 = vld [vmem:[#allocation2 + $0x1b4] sm:$0xf]  ;;  %v7733_v49 = vor.u32 %v8310_v19, %v7732_v32  ;;  %v7769_v19 = vor.u32 %v8319_v27, %v7768_v31 }
 0x237   : > { %v7729_v39 = vor.u32 %v8305_v2, %v7726_v37 }
 0x238   : > { %v3647_v26 = vadd.f32 %v3646_v57, %v3598_v54  ;;  %v8379_v57 = vld [vmem:[%s10601_s1 + $0x400] sm:$0xff] }
 0x239   : > { %5805 = vmatmul.bf16.gmra.mxu1 %v7705_v7  ;;  %v10652_v7 = vld [vmem:[#allocation24_spill] sm:$0xff]  ;;  %5926 = vmatpush.bf16.msra.mxu0 %v8379_v57 }
 0x23a   : > { %v3695_v33 = vpop.f32.mrf.mxu0 }
 0x23b   : > { %5658 = vmatmul.bf16.gmra.mxu2 %v7693_v45  ;;  %v3696_v5 = vadd.f32 %v3695_v33, %v3647_v26  ;;  %v8306_v33 = vld [vmem:[#allocation2 + $0x1bc] sm:$0xf] }
 0x23c   : > { %5707 = vmatmul.bf16.gmra.mxu3 %v7697_v51 }
 0x23d   : > { %v3751_v14 = vadd.f32 %v3750_v40, %v3696_v5  ;;  %v3599_v59 = vpop.f32.mrf.mxu2  ;;  %v3409_v40 = vadd.f32 %v10146_v12, %v3360_v38  ;;  %v10653_v12 = vld [vmem:[#allocation25_spill] sm:$0xff]  ;;  %v7762_v38 = vld [vmem:[#allocation2 + $0x21c] sm:$0xf0] }
 0x23e   : > { %v3600_v42 = vadd.f32 %v3599_v59, %v3551_v13  ;;  %v3648_v11 = vpop.f32.mrf.mxu3  ;;  %v7765_v37 = vor.u32 %v8314_v4, %v7762_v38  ;;  %v8254_v38 = vld [vmem:[#allocation2 + $0x1c] sm:$0xf] }
 0x23f   : > { %v3458_v47 = vadd.f32 %v10652_v7, %v3409_v40  ;;  %v7770_v7 = vld [vmem:[#allocation2 + $0x224] sm:$0xf0] }
 0x240   : > { %v3649_v1 = vadd.f32 %v3648_v11, %v3600_v42  ;;  %v7776_v42 = vld [vmem:[#allocation2 + $0x208] sm:$0xf]  ;;  %v8320_v11 = vld [vmem:[#allocation2 + $0x228] sm:$0xf0] }
 0x241   : > { %v3507_v51 = vadd.f32 %v10654_v15, %v3458_v47  ;;  %v7777_v61 = vor.u32 %v8320_v11, %v7776_v42  ;;  %v7540_v15 = vld [vmem:[#allocation2 + $0x20] sm:$0xf] }
 0x242   : > { %v3697_v3 = vpop.f32.mrf.mxu0  ;;  %v10417_v25 = vpop.f32.mrf.mxu1 }
 0x243   : > { %v3698_v46 = vadd.f32 %v3697_v3, %v3649_v1  ;;  %v3556_v13 = vadd.f32 %v10655_v35, %v3507_v51  ;;  %v8387_v1 = vld [vmem:[%s10601_s1 + $0x440] sm:$0xff] }
 0x244   : > { %5975 = vmatpush.bf16.msra.mxu1 %v8387_v1  ;;  %v8259_v51 = vld [vmem:[#allocation2 + $0x40] sm:$0xf0] }
 0x245   : > { %v8425_v22 = vpack.c.bf16 %v3698_v46, %v3696_v5  ;;  %v3752_v29 = vadd.f32 %v3751_v14, %v3698_v46  ;;  %v7734_v5 = vld [vmem:[#allocation2 + $0x1dc] sm:$0xf0]  ;;  %v10657_v46 = vld [vmem:[#allocation11_spill] sm:$0xff] }
 0x246   : > { %5756 = vmatmul.bf16.gmra.mxu0 %v7701_v34  ;;  %v7737_v14 = vor.u32 %v8306_v33, %v7734_v5  ;;  %v3365_v2 = vadd.f32 %v10657_v46, %v3316_v23  ;;  %v7526_v33 = vld [vmem:[#allocation2 + $0x34] sm:$0xf0]  ;;  %v10455_v23 = vld [vmem:[%s10602_s2 + $0x1] ss:$0 sm:$0xff] }
 0x247   : > { %8481 = vst [vmem:[%s10294_s6 + $0x28] sm:$0xff] %v8425_v22   ;;  %v7532_v5 = vld [vmem:[#allocation2 + $0x18] sm:$0xf]  ;;  %v5586_v11 = vadd.f32 %v10455_v23, %v10240_v43  ;;  %v5588_v43 = vadd.f32 %v10455_v23, %v10260_v10  ;;  %v5591_v10 = vadd.f32 %v10455_v23, %v10281_v41  ;;  %v7604_v41 = vld [vmem:[#allocation2 + $0xa8] sm:$0xf] }
 0x248   : > { %v3414_v22 = vadd.f32 %v10223_v28, %v3365_v2 }
 0x249   : > { %5810 = vmatmul.bf16.gmra.mxu1 %v7741_v21 }
 0x24a   : > { %v10433_v62 = vpop.f32.mrf.mxu1  ;;  %v3463_v63 = vadd.f32 %v10225_v20, %v3414_v22  ;;  %v8262_v22 = vld [vmem:[#allocation2 + $0x5c] sm:$0xf] }
 0x24b   : > { %v3602_v45 = vpop.f32.mrf.mxu2  ;;  %5663 = vmatmul.bf16.gmra.mxu2 %v7729_v39 }
 0x24c   : > { %v3603_v48 = vadd.f32 %v3602_v45, %v10653_v12  ;;  %v3651_v54 = vpop.f32.mrf.mxu3  ;;  %5712 = vmatmul.bf16.gmra.mxu3 %v7733_v49  ;;  %v8315_v49 = vld [vmem:[#allocation2 + $0x204] sm:$0xf] }
 0x24d   : > { %v7773_v28 = vor.u32 %v8315_v49, %v7770_v7 }
 0x24e   : > { %v3652_v16 = vadd.f32 %v3651_v54, %v3603_v48  ;;  %v3512_v48 = vadd.f32 %v10217_v60, %v3463_v63  ;;  %v8267_v63 = vld [vmem:[#allocation2 + $0x80] sm:$0xf0] }
 0x24f   : > { %v3700_v26 = vpop.f32.mrf.mxu0 }
 0x250   : > { %v3701_v18 = vadd.f32 %v3700_v26, %v3652_v16  ;;  %v8253_v26 = vld [vmem:[#allocation2 + $0x14] sm:$0xf]  ;;  %v3561_v20 = vadd.f32 %v10202_v52, %v3512_v48 }
 0x252   : > { %v3753_v59 = vadd.f32 %v3752_v29, %v3701_v18 }
 0x253   : > { %v3604_v50 = vpop.f32.mrf.mxu2 }
 0x254   : > { %v3605_v44 = vadd.f32 %v3604_v50, %v3556_v13  ;;  %v3653_v34 = vpop.f32.mrf.mxu3  ;;  %v7541_v13 = vor.u32 %v8259_v51, %v7540_v15  ;;  %v7529_v50 = vor.u32 %v8253_v26, %v7526_v33  ;;  %v8263_v33 = vld [vmem:[#allocation2 + $0x64] sm:$0xf] }
 0x256   : > { %v3654_v3 = vadd.f32 %v3653_v34, %v3605_v44  ;;  %5761 = vmatmul.bf16.gmra.mxu0 %v7737_v14  ;;  %v10442_v40 = vpop.f32.mrf.mxu1 }
 0x257   : > { %v3702_v30 = vpop.f32.mrf.mxu0 }
 0x258   : > { %v3703_v32 = vadd.f32 %v3702_v30, %v3654_v3  ;;  %v7534_v3 = vld [vmem:[#allocation2 + $0x3c] sm:$0xf0] }
 0x259   : > { %5815 = vmatmul.bf16.gmra.mxu1 %v7777_v61  ;;  %v7537_v2 = vor.u32 %v8254_v38, %v7534_v3 }
 0x25a   : > { %v8430_v29 = vpack.c.bf16 %v3703_v32, %v3701_v18  ;;  %v3754_v21 = vadd.f32 %v3753_v59, %v3703_v32  ;;  %v8258_v18 = vld [vmem:[#allocation2 + $0x38] sm:$0xf0]  ;;  %v8268_v32 = vld [vmem:[#allocation2 + $0x88] sm:$0xf0] }
 0x25b   : > { %5668 = vmatmul.bf16.gmra.mxu2 %v7765_v37  ;;  %v7533_v17 = vor.u32 %v8258_v18, %v7532_v5  ;;  %v7576_v37 = vld [vmem:[#allocation2 + $0x68] sm:$0xf] }
 0x25c   : > { %8482 = vst [vmem:[%s10294_s6 + $0x30] sm:$0xff] %v8430_v29   ;;  %5717 = vmatmul.bf16.gmra.mxu3 %v7769_v19  ;;  %v7562_v29 = vld [vmem:[#allocation2 + $0x7c] sm:$0xf0]  ;;  %v7577_v49 = vor.u32 %v8268_v32, %v7576_v37 }
 0x25d   : > { %v7565_v48 = vor.u32 %v8262_v22, %v7562_v29  ;;  %v7606_v22 = vld [vmem:[#allocation2 + $0xcc] sm:$0xf0] }
 0x25e   : > { %v3607_v39 = vpop.f32.mrf.mxu2  ;;  %v10448_v12 = vpop.f32.mrf.mxu1 }
 0x25f   : > { %v3608_v47 = vadd.f32 %v3607_v39, %v10228_v6  ;;  %v3656_v45 = vpop.f32.mrf.mxu3 }
 0x261   : > { %v3657_v54 = vadd.f32 %v3656_v45, %v3608_v47 }
 0x263   : > { %v3705_v57 = vpop.f32.mrf.mxu0 }
 0x264   : > { %v3706_v16 = vadd.f32 %v3705_v57, %v3657_v54 }
 0x266   : > { %5766 = vmatmul.bf16.gmra.mxu0 %v7773_v28  ;;  %v3755_v35 = vadd.f32 %v3754_v21, %v3706_v16  ;;  %v3609_v6 = vpop.f32.mrf.mxu2  ;;  %v5781_v60 = vpop.f32.mrf.mxu1  ;;  %v7568_v21 = vld [vmem:[#allocation2 + $0x60] sm:$0xf] }
 0x267   : > { %v3610_v14 = vadd.f32 %v3609_v6, %v3561_v20  ;;  %v3658_v59 = vpop.f32.mrf.mxu3  ;;  %v7569_v28 = vor.u32 %v8267_v63, %v7568_v21  ;;  %v7570_v20 = vld [vmem:[#allocation2 + $0x84] sm:$0xf0] }
 0x269   : > { %v3659_v44 = vadd.f32 %v3658_v59, %v3610_v14  ;;  %5976 = vmatmul.bf16.vlgmr.msra.gmra.mxu1 %v7541_v13  ;;  %v7573_v13 = vor.u32 %v8263_v33, %v7570_v20  ;;  %v7612_v59 = vld [vmem:[#allocation2 + $0xb0] sm:$0xf] }
 0x26b   : > { %v3707_v52 = vpop.f32.mrf.mxu0  ;;  %5829 = vmatmul.bf16.vlgmr.msra.gmra.mxu2 %v7529_v50  ;;  %v8277_v50 = vld [vmem:[#allocation2 + $0xd0] sm:$0xf0] }
 0x26c   : > { %v3708_v42 = vadd.f32 %v3707_v52, %v3659_v44  ;;  %5878 = vmatmul.bf16.vlgmr.msra.gmra.mxu3 %v7533_v17  ;;  %v8271_v17 = vld [vmem:[#allocation2 + $0xa4] sm:$0xf]  ;;  %v7598_v44 = vld [vmem:[#allocation2 + $0xc4] sm:$0xf0]  ;;  %v5593_v52 = vadd.f32 %v10455_v23, %v10299_v55  ;;  %v5596_v55 = vadd.f32 %v10455_v23, %v10308_v8  ;;  %v7640_v8 = vld [vmem:[#allocation2 + $0xf0] sm:$0xf] }
 0x26e   : > { %v8435_v1 = vpack.c.bf16 %v3708_v42, %v3706_v16  ;;  %v10459_v34 = vadd.f32 %v3755_v35, %v3708_v42  ;;  %v5634_v4 = vpop.f32.mrf.mxu2  ;;  %v5783_v61 = vpop.f32.mrf.mxu1  ;;  %v8276_v42 = vld [vmem:[#allocation2 + $0xc8] sm:$0xf0] }
 0x26f   : > { %v5635_v31 = vadd.f32 %v5634_v4, %v5586_v11  ;;  %v5683_v27 = vpop.f32.mrf.mxu3 }
 0x270   : > { %8483 = vst [vmem:[%s10294_s6 + $0x38] sm:$0xff] %v8435_v1   ;;  %v7613_v1 = vor.u32 %v8277_v50, %v7612_v59 }
 0x271   : > { %v5684_v46 = vadd.f32 %v5683_v27, %v5635_v31  ;;  %v7601_v31 = vor.u32 %v8271_v17, %v7598_v44  ;;  %v7642_v17 = vld [vmem:[#allocation2 + $0x114] sm:$0xf0] }
 0x273   : > { %v5732_v30 = vpop.f32.mrf.mxu0 }
 0x274   : > { %v5733_v19 = vadd.f32 %v5732_v30, %v5684_v46 }
 0x276   : > { %5927 = vmatmul.bf16.vlgmr.msra.gmra.mxu0 %v7537_v2  ;;  %v5636_v39 = vpop.f32.mrf.mxu2  ;;  %v10464_v7 = vadd.f32 %v5781_v60, %v5733_v19  ;;  %v5786_v54 = vpop.f32.mrf.mxu1  ;;  %v8272_v19 = vld [vmem:[#allocation2 + $0xac] sm:$0xf] }
 0x277   : > { %v5637_v47 = vadd.f32 %v5636_v39, %v5588_v43  ;;  %v5685_v45 = vpop.f32.mrf.mxu3  ;;  %v7609_v39 = vor.u32 %v8272_v19, %v7606_v22 }
 0x279   : > { %v5686_v57 = vadd.f32 %v5685_v45, %v5637_v47  ;;  %5981 = vmatmul.bf16.gmra.mxu1 %v7577_v49  ;;  %v7648_v47 = vld [vmem:[#allocation2 + $0xf8] sm:$0xf]  ;;  %v8286_v45 = vld [vmem:[#allocation2 + $0x118] sm:$0xf0] }
 0x27b   : > { %v5734_v15 = vpop.f32.mrf.mxu0  ;;  %5834 = vmatmul.bf16.gmra.mxu2 %v7565_v48 }
 0x27c   : > { %v5735_v51 = vadd.f32 %v5734_v15, %v5686_v57  ;;  %5883 = vmatmul.bf16.gmra.mxu3 %v7569_v28  ;;  %v7634_v28 = vld [vmem:[#allocation2 + $0x10c] sm:$0xf0]  ;;  %v5598_v57 = vadd.f32 %v10455_v23, %v10327_v24  ;;  %v8285_v15 = vld [vmem:[#allocation2 + $0x110] sm:$0xf0]  ;;  %v5601_v24 = vadd.f32 %v10455_v23, %v10342_v36  ;;  %v7676_v36 = vld [vmem:[#allocation2 + $0x138] sm:$0xf] }
 0x27e   : > { %v5639_v16 = vpop.f32.mrf.mxu2  ;;  %v10468_v26 = vadd.f32 %v5783_v61, %v5735_v51  ;;  %v5788_v35 = vpop.f32.mrf.mxu1  ;;  %v7605_v61 = vor.u32 %v8276_v42, %v7604_v41 }
 0x27f   : > { %v5640_v5 = vadd.f32 %v5639_v16, %v5591_v10  ;;  %v5688_v18 = vpop.f32.mrf.mxu3  ;;  %v7649_v10 = vor.u32 %v8286_v45, %v7648_v47 }
 0x281   : > { %v5689_v6 = vadd.f32 %v5688_v18, %v5640_v5 }
 0x283   : > { %v5737_v14 = vpop.f32.mrf.mxu0 }
 0x284   : > { %v5738_v60 = vadd.f32 %v5737_v14, %v5689_v6 }
 0x286   : > { %5932 = vmatmul.bf16.gmra.mxu0 %v7573_v13  ;;  %v5641_v11 = vpop.f32.mrf.mxu2  ;;  %v10472_v4 = vadd.f32 %v5786_v54, %v5738_v60  ;;  %v5791_v27 = vpop.f32.mrf.mxu1  ;;  %v8280_v54 = vld [vmem:[#allocation2 + $0xec] sm:$0xf]  ;;  %v8281_v60 = vld [vmem:[#allocation2 + $0xf4] sm:$0xf] }
 0x287   : > { %v5642_v38 = vadd.f32 %v5641_v11, %v5593_v52  ;;  %v5690_v3 = vpop.f32.mrf.mxu3  ;;  %v7637_v5 = vor.u32 %v8280_v54, %v7634_v28  ;;  %v7645_v11 = vor.u32 %v8281_v60, %v7642_v17  ;;  %v7678_v54 = vld [vmem:[#allocation2 + $0x15c] sm:$0xf0] }
 0x289   : > { %v5691_v46 = vadd.f32 %v5690_v3, %v5642_v38  ;;  %5986 = vmatmul.bf16.gmra.mxu1 %v7613_v1  ;;  %v7684_v38 = vld [vmem:[#allocation2 + $0x140] sm:$0xf]  ;;  %v8295_v3 = vld [vmem:[#allocation2 + $0x160] sm:$0xf0] }
 0x28b   : > { %v5739_v2 = vpop.f32.mrf.mxu0  ;;  %5839 = vmatmul.bf16.gmra.mxu2 %v7601_v31 }
 0x28c   : > { %v5740_v30 = vadd.f32 %v5739_v2, %v5691_v46  ;;  %5888 = vmatmul.bf16.gmra.mxu3 %v7605_v61  ;;  %v7670_v61 = vld [vmem:[#allocation2 + $0x154] sm:$0xf0]  ;;  %v5603_v46 = vadd.f32 %v10455_v23, %v10352_v56  ;;  %v8294_v2 = vld [vmem:[#allocation2 + $0x158] sm:$0xf0]  ;;  %v5606_v56 = vadd.f32 %v10455_v23, %v10367_v58  ;;  %v7712_v58 = vld [vmem:[#allocation2 + $0x180] sm:$0xf] }
 0x28e   : > { %v5644_v37 = vpop.f32.mrf.mxu2  ;;  %v10476_v32 = vadd.f32 %v5788_v35, %v5740_v30  ;;  %v5793_v21 = vpop.f32.mrf.mxu1  ;;  %v7641_v35 = vor.u32 %v8285_v15, %v7640_v8 }
 0x28f   : > { %v5645_v29 = vadd.f32 %v5644_v37, %v5596_v55  ;;  %v5693_v43 = vpop.f32.mrf.mxu3  ;;  %v7685_v55 = vor.u32 %v8295_v3, %v7684_v38 }
 0x291   : > { %v5694_v63 = vadd.f32 %v5693_v43, %v5645_v29 }
 0x293   : > { %v5742_v49 = vpop.f32.mrf.mxu0 }
 0x294   : > { %v5743_v48 = vadd.f32 %v5742_v49, %v5694_v63 }
 0x296   : > { %5937 = vmatmul.bf16.gmra.mxu0 %v7609_v39  ;;  %v5646_v51 = vpop.f32.mrf.mxu2  ;;  %v10480_v16 = vadd.f32 %v5791_v27, %v5743_v48  ;;  %v5796_v18 = vpop.f32.mrf.mxu1  ;;  %v8289_v27 = vld [vmem:[#allocation2 + $0x134] sm:$0xf]  ;;  %v8290_v48 = vld [vmem:[#allocation2 + $0x13c] sm:$0xf] }
 0x297   : > { %v5647_v33 = vadd.f32 %v5646_v51, %v5598_v57  ;;  %v5695_v20 = vpop.f32.mrf.mxu3  ;;  %v7673_v29 = vor.u32 %v8289_v27, %v7670_v61  ;;  %v7681_v51 = vor.u32 %v8290_v48, %v7678_v54  ;;  %v7714_v27 = vld [vmem:[#allocation2 + $0x1a4] sm:$0xf0] }
 0x299   : > { %v5696_v6 = vadd.f32 %v5695_v20, %v5647_v33  ;;  %5991 = vmatmul.bf16.gmra.mxu1 %v7649_v10  ;;  %v7720_v33 = vld [vmem:[#allocation2 + $0x188] sm:$0xf]  ;;  %v8304_v20 = vld [vmem:[#allocation2 + $0x1a8] sm:$0xf0] }
 0x29b   : > { %v5744_v13 = vpop.f32.mrf.mxu0  ;;  %5844 = vmatmul.bf16.gmra.mxu2 %v7637_v5 }
 0x29c   : > { %v5745_v14 = vadd.f32 %v5744_v13, %v5696_v6  ;;  %5893 = vmatmul.bf16.gmra.mxu3 %v7641_v35  ;;  %v7706_v35 = vld [vmem:[#allocation2 + $0x19c] sm:$0xf0]  ;;  %v5608_v6 = vadd.f32 %v10455_v23, %v10377_v9  ;;  %v8303_v13 = vld [vmem:[#allocation2 + $0x1a0] sm:$0xf0]  ;;  %v5611_v9 = vadd.f32 %v10455_v23, %v10392_v53  ;;  %v7748_v53 = vld [vmem:[#allocation2 + $0x1c8] sm:$0xf] }
 0x29e   : > { %v5649_v59 = vpop.f32.mrf.mxu2  ;;  %v10484_v50 = vadd.f32 %v5793_v21, %v5745_v14  ;;  %v5798_v41 = vpop.f32.mrf.mxu1  ;;  %v7677_v21 = vor.u32 %v8294_v2, %v7676_v36 }
 0x29f   : > { %v5650_v44 = vadd.f32 %v5649_v59, %v5601_v24  ;;  %v5698_v52 = vpop.f32.mrf.mxu3  ;;  %v7721_v24 = vor.u32 %v8304_v20, %v7720_v33 }
 0x2a1   : > { %v5699_v42 = vadd.f32 %v5698_v52, %v5650_v44 }
 0x2a3   : > { %v5747_v1 = vpop.f32.mrf.mxu0 }
 0x2a4   : > { %v5748_v31 = vadd.f32 %v5747_v1, %v5699_v42 }
 0x2a6   : > { %5942 = vmatmul.bf16.gmra.mxu0 %v7645_v11  ;;  %v5651_v30 = vpop.f32.mrf.mxu2  ;;  %v10488_v37 = vadd.f32 %v5796_v18, %v5748_v31  ;;  %v5801_v43 = vpop.f32.mrf.mxu1  ;;  %v8298_v18 = vld [vmem:[#allocation2 + $0x17c] sm:$0xf]  ;;  %v8299_v31 = vld [vmem:[#allocation2 + $0x184] sm:$0xf] }
 0x2a7   : > { %v5652_v19 = vadd.f32 %v5651_v30, %v5603_v46  ;;  %v5700_v22 = vpop.f32.mrf.mxu3  ;;  %v7709_v44 = vor.u32 %v8298_v18, %v7706_v35  ;;  %v7717_v30 = vor.u32 %v8299_v31, %v7714_v27  ;;  %v7750_v18 = vld [vmem:[#allocation2 + $0x1ec] sm:$0xf0] }
 0x2a9   : > { %v5701_v63 = vadd.f32 %v5700_v22, %v5652_v19  ;;  %5996 = vmatmul.bf16.gmra.mxu1 %v7685_v55  ;;  %v7756_v19 = vld [vmem:[#allocation2 + $0x1d0] sm:$0xf]  ;;  %v8313_v22 = vld [vmem:[#allocation2 + $0x1f0] sm:$0xf0] }
 0x2ab   : > { %v5749_v39 = vpop.f32.mrf.mxu0  ;;  %5849 = vmatmul.bf16.gmra.mxu2 %v7673_v29 }
 0x2ac   : > { %v5750_v49 = vadd.f32 %v5749_v39, %v5701_v63  ;;  %5898 = vmatmul.bf16.gmra.mxu3 %v7677_v21  ;;  %v7742_v21 = vld [vmem:[#allocation2 + $0x1e4] sm:$0xf0]  ;;  %v5613_v63 = vadd.f32 %v10455_v23, %v10408_v0  ;;  %v8312_v39 = vld [vmem:[#allocation2 + $0x1e8] sm:$0xf0]  ;;  %v5616_v0 = vadd.f32 %v10455_v23, %v10417_v25  ;;  %v7784_v25 = vld [vmem:[#allocation2 + $0x210] sm:$0xf] }
 0x2ae   : > { %v5654_v47 = vpop.f32.mrf.mxu2  ;;  %v10492_v45 = vadd.f32 %v5798_v41, %v5750_v49  ;;  %v5803_v8 = vpop.f32.mrf.mxu1  ;;  %v7713_v41 = vor.u32 %v8303_v13, %v7712_v58 }
 0x2af   : > { %v5655_v28 = vadd.f32 %v5654_v47, %v5606_v56  ;;  %v5703_v57 = vpop.f32.mrf.mxu3  ;;  %v7757_v56 = vor.u32 %v8313_v22, %v7756_v19 }
 0x2b1   : > { %v5704_v15 = vadd.f32 %v5703_v57, %v5655_v28 }
 0x2b3   : > { %v5752_v10 = vpop.f32.mrf.mxu0 }
 0x2b4   : > { %v5753_v5 = vadd.f32 %v5752_v10, %v5704_v15 }
 0x2b6   : > { %5947 = vmatmul.bf16.gmra.mxu0 %v7681_v51  ;;  %v5656_v14 = vpop.f32.mrf.mxu2  ;;  %v10496_v59 = vadd.f32 %v5801_v43, %v5753_v5  ;;  %v5806_v52 = vpop.f32.mrf.mxu1  ;;  %v8307_v43 = vld [vmem:[#allocation2 + $0x1c4] sm:$0xf]  ;;  %v8308_v5 = vld [vmem:[#allocation2 + $0x1cc] sm:$0xf] }
 0x2b7   : > { %v5657_v60 = vadd.f32 %v5656_v14, %v5608_v6  ;;  %v5705_v17 = vpop.f32.mrf.mxu3  ;;  %v7745_v28 = vor.u32 %v8307_v43, %v7742_v21  ;;  %v7753_v14 = vor.u32 %v8308_v5, %v7750_v18  ;;  %v7786_v43 = vld [vmem:[#allocation2 + $0x234] sm:$0xf0] }
 0x2b9   : > { %v5706_v42 = vadd.f32 %v5705_v17, %v5657_v60  ;;  %6001 = vmatmul.bf16.gmra.mxu1 %v7721_v24  ;;  %v7792_v60 = vld [vmem:[#allocation2 + $0x218] sm:$0xf]  ;;  %v8322_v17 = vld [vmem:[#allocation2 + $0x238] sm:$0xf0] }
 0x2bb   : > { %v5754_v11 = vpop.f32.mrf.mxu0  ;;  %5854 = vmatmul.bf16.gmra.mxu2 %v7709_v44 }
 0x2bc   : > { %v5755_v1 = vadd.f32 %v5754_v11, %v5706_v42  ;;  %5903 = vmatmul.bf16.gmra.mxu3 %v7713_v41  ;;  %v7778_v41 = vld [vmem:[#allocation2 + $0x22c] sm:$0xf0]  ;;  %v5618_v42 = vadd.f32 %v10455_v23, %v10433_v62  ;;  %v8321_v11 = vld [vmem:[#allocation2 + $0x230] sm:$0xf0]  ;;  %v5621_v62 = vadd.f32 %v10455_v23, %v10442_v40 }
 0x2be   : > { %v5659_v38 = vpop.f32.mrf.mxu2  ;;  %v10500_v3 = vadd.f32 %v5803_v8, %v5755_v1  ;;  %v5808_v36 = vpop.f32.mrf.mxu1  ;;  %v7749_v8 = vor.u32 %v8312_v39, %v7748_v53 }
 0x2bf   : > { %v5660_v61 = vadd.f32 %v5659_v38, %v5611_v9  ;;  %v5708_v46 = vpop.f32.mrf.mxu3  ;;  %v7793_v9 = vor.u32 %v8322_v17, %v7792_v60 }
 0x2c1   : > { %v5709_v2 = vadd.f32 %v5708_v46, %v5660_v61 }
 0x2c3   : > { %v5757_v55 = vpop.f32.mrf.mxu0 }
 0x2c4   : > { %v5758_v29 = vadd.f32 %v5757_v55, %v5709_v2 }
 0x2c6   : > { %5952 = vmatmul.bf16.gmra.mxu0 %v7717_v30  ;;  %v5661_v49 = vpop.f32.mrf.mxu2  ;;  %v10504_v47 = vadd.f32 %v5806_v52, %v5758_v29  ;;  %v5811_v57 = vpop.f32.mrf.mxu1  ;;  %v8316_v52 = vld [vmem:[#allocation2 + $0x20c] sm:$0xf]  ;;  %v8317_v29 = vld [vmem:[#allocation2 + $0x214] sm:$0xf] }
 0x2c7   : > { %v5662_v48 = vadd.f32 %v5661_v49, %v5613_v63  ;;  %v5710_v54 = vpop.f32.mrf.mxu3  ;;  %v7781_v61 = vor.u32 %v8316_v52, %v7778_v41  ;;  %v7789_v49 = vor.u32 %v8317_v29, %v7786_v43 }
 0x2c9   : > { %v5711_v15 = vadd.f32 %v5710_v54, %v5662_v48  ;;  %6006 = vmatmul.bf16.gmra.mxu1 %v7757_v56  ;;  %v5623_v54 = vadd.f32 %v10455_v23, %v10448_v12 }
 0x2cb   : > { %v5759_v51 = vpop.f32.mrf.mxu0  ;;  %5859 = vmatmul.bf16.gmra.mxu2 %v7745_v28 }
 0x2cc   : > { %v5760_v10 = vadd.f32 %v5759_v51, %v5711_v15  ;;  %5908 = vmatmul.bf16.gmra.mxu3 %v7749_v8 }
 0x2ce   : > { %v5664_v33 = vpop.f32.mrf.mxu2  ;;  %v10508_v20 = vadd.f32 %v5808_v36, %v5760_v10  ;;  %v5813_v58 = vpop.f32.mrf.mxu1  ;;  %v7785_v36 = vor.u32 %v8321_v11, %v7784_v25 }
 0x2cf   : > { %v5665_v35 = vadd.f32 %v5664_v33, %v5616_v0  ;;  %v5713_v6 = vpop.f32.mrf.mxu3 }
 0x2d1   : > { %v5714_v13 = vadd.f32 %v5713_v6, %v5665_v35 }
 0x2d3   : > { %v5762_v24 = vpop.f32.mrf.mxu0 }
 0x2d4   : > { %v5763_v44 = vadd.f32 %v5762_v24, %v5714_v13 }
 0x2d6   : > { %5957 = vmatmul.bf16.gmra.mxu0 %v7753_v14  ;;  %v5666_v1 = vpop.f32.mrf.mxu2  ;;  %v10512_v38 = vadd.f32 %v5811_v57, %v5763_v44  ;;  %v5816_v46 = vpop.f32.mrf.mxu1 }
 0x2d7   : > { %v5667_v31 = vadd.f32 %v5666_v1, %v5618_v42  ;;  %v5715_v27 = vpop.f32.mrf.mxu3 }
 0x2d9   : > { %v5716_v2 = vadd.f32 %v5715_v27, %v5667_v31  ;;  %6011 = vmatmul.bf16.gmra.mxu1 %v7793_v9 }
 0x2db   : > { %v5764_v30 = vpop.f32.mrf.mxu0  ;;  %5864 = vmatmul.bf16.gmra.mxu2 %v7781_v61 }
 0x2dc   : > { %v5765_v55 = vadd.f32 %v5764_v30, %v5716_v2  ;;  %5913 = vmatmul.bf16.gmra.mxu3 %v7785_v36 }
 0x2de   : > { %v5669_v19 = vpop.f32.mrf.mxu2  ;;  %v10516_v22 = vadd.f32 %v5813_v58, %v5765_v55  ;;  %v5818_v53 = vpop.f32.mrf.mxu1 }
 0x2df   : > { %v5670_v21 = vadd.f32 %v5669_v19, %v5621_v62  ;;  %v5718_v63 = vpop.f32.mrf.mxu3 }
 0x2e1   : > { %v5719_v39 = vadd.f32 %v5718_v63, %v5670_v21 }
 0x2e3   : > { %v5767_v56 = vpop.f32.mrf.mxu0 }
 0x2e4   : > { %v5768_v48 = vadd.f32 %v5767_v56, %v5719_v39 }
 0x2e6   : > { %5962 = vmatmul.bf16.gmra.mxu0 %v7789_v49  ;;  %v5671_v28 = vpop.f32.mrf.mxu2  ;;  %v10520_v57 = vadd.f32 %v5816_v46, %v5768_v48  ;;  %v5977_v15 = vpop.f32.mrf.mxu1 }
 0x2e7   : > { %v5672_v40 = vadd.f32 %v5671_v28, %v5623_v54  ;;  %v5720_v8 = vpop.f32.mrf.mxu3 }
 0x2e9   : > { %v5721_v51 = vadd.f32 %v5720_v8, %v5672_v40 }
 0x2eb   : > { %v5769_v10 = vpop.f32.mrf.mxu0 }
 0x2ec   : > { %v5770_v0 = vadd.f32 %v5769_v10, %v5721_v51 }
 0x2ee   : > { %v5830_v33 = vpop.f32.mrf.mxu2  ;;  %v10522_v5 = vadd.f32 %v5818_v53, %v5770_v0  ;;  %v5979_v35 = vpop.f32.mrf.mxu1 }
 0x2ef   : > { %v5879_v18 = vpop.f32.mrf.mxu3  ;;  %v5831_v6 = vadd.f32 %v5830_v33, %v10464_v7 }
 0x2f1   : > { %v5880_v13 = vadd.f32 %v5879_v18, %v5831_v6 }
 0x2f3   : > { %v5928_v58 = vpop.f32.mrf.mxu0 }
 0x2f4   : > { %v5929_v17 = vadd.f32 %v5928_v58, %v5880_v13 }
 0x2f6   : > { %v5832_v12 = vpop.f32.mrf.mxu2  ;;  %v5982_v24 = vpop.f32.mrf.mxu1  ;;  %v5978_v41 = vadd.f32 %v5977_v15, %v5929_v17 }
 0x2f7   : > { %v5833_v23 = vadd.f32 %v5832_v12, %v10468_v26  ;;  %v5881_v14 = vpop.f32.mrf.mxu3 }
 0x2f9   : > { %v5882_v60 = vadd.f32 %v5881_v14, %v5833_v23 }
 0x2fb   : > { %v5930_v44 = vpop.f32.mrf.mxu0 }
 0x2fc   : > { %v5931_v52 = vadd.f32 %v5930_v44, %v5882_v60 }
 0x2fe   : > { %v5980_v42 = vadd.f32 %v5979_v35, %v5931_v52  ;;  %v5835_v25 = vpop.f32.mrf.mxu2  ;;  %v5984_v9 = vpop.f32.mrf.mxu1 }
 0x2ff   : > { %v5836_v11 = vadd.f32 %v5835_v25, %v10472_v4  ;;  %v5884_v1 = vpop.f32.mrf.mxu3 }
 0x300   : > { %v8440_v7 = vpack.c.bf16 %v5980_v42, %v5978_v41  ;;  %v6050_v31 = vadd.f32 %v5980_v42, %v5978_v41 }
 0x301   : > { %v5885_v27 = vadd.f32 %v5884_v1, %v5836_v11 }
 0x302   : > { %8484 = vst [vmem:[%s10294_s6 + $0x40] sm:$0xff] %v8440_v7  }
 0x303   : > { %v5933_v61 = vpop.f32.mrf.mxu0 }
 0x304   : > { %v5934_v26 = vadd.f32 %v5933_v61, %v5885_v27 }
 0x306   : > { %v5983_v46 = vadd.f32 %v5982_v24, %v5934_v26  ;;  %v5837_v36 = vpop.f32.mrf.mxu2  ;;  %v5987_v55 = vpop.f32.mrf.mxu1 }
 0x307   : > { %v5838_v2 = vadd.f32 %v5837_v36, %v10476_v32  ;;  %v5886_v30 = vpop.f32.mrf.mxu3 }
 0x308   : > { %v6051_v62 = vadd.f32 %v6050_v31, %v5983_v46 }
 0x309   : > { %v5887_v19 = vadd.f32 %v5886_v30, %v5838_v2 }
 0x30b   : > { %v5935_v29 = vpop.f32.mrf.mxu0 }
 0x30c   : > { %v5936_v43 = vadd.f32 %v5935_v29, %v5887_v19 }
 0x30e   : > { %v5985_v4 = vadd.f32 %v5984_v9, %v5936_v43  ;;  %v5840_v21 = vpop.f32.mrf.mxu2  ;;  %v5989_v39 = vpop.f32.mrf.mxu1 }
 0x30f   : > { %v5841_v63 = vadd.f32 %v5840_v21, %v10480_v16  ;;  %v5889_v53 = vpop.f32.mrf.mxu3 }
 0x310   : > { %v8445_v49 = vpack.c.bf16 %v5985_v4, %v5983_v46  ;;  %v6052_v56 = vadd.f32 %v6051_v62, %v5985_v4 }
 0x311   : > { %v5890_v48 = vadd.f32 %v5889_v53, %v5841_v63 }
 0x312   : > { %8485 = vst [vmem:[%s10294_s6 + $0x48] sm:$0xff] %v8445_v49  }
 0x313   : > { %v5938_v54 = vpop.f32.mrf.mxu0 }
 0x314   : > { %v5939_v28 = vadd.f32 %v5938_v54, %v5890_v48 }
 0x316   : > { %v5988_v40 = vadd.f32 %v5987_v55, %v5939_v28  ;;  %v5842_v32 = vpop.f32.mrf.mxu2  ;;  %v5992_v51 = vpop.f32.mrf.mxu1 }
 0x317   : > { %v5843_v8 = vadd.f32 %v5842_v32, %v10484_v50  ;;  %v5891_v15 = vpop.f32.mrf.mxu3 }
 0x318   : > { %v6053_v10 = vadd.f32 %v6052_v56, %v5988_v40 }
 0x319   : > { %v5892_v0 = vadd.f32 %v5891_v15, %v5843_v8 }
 0x31b   : > { %v5940_v33 = vpop.f32.mrf.mxu0 }
 0x31c   : > { %v5941_v18 = vadd.f32 %v5940_v33, %v5892_v0 }
 0x31e   : > { %v5990_v16 = vadd.f32 %v5989_v39, %v5941_v18  ;;  %v5845_v35 = vpop.f32.mrf.mxu2  ;;  %v5994_v13 = vpop.f32.mrf.mxu1 }
 0x31f   : > { %v5846_v6 = vadd.f32 %v5845_v35, %v10488_v37  ;;  %v5894_v58 = vpop.f32.mrf.mxu3 }
 0x320   : > { %v8450_v12 = vpack.c.bf16 %v5990_v16, %v5988_v40  ;;  %v6054_v23 = vadd.f32 %v6053_v10, %v5990_v16 }
 0x321   : > { %v5895_v14 = vadd.f32 %v5894_v58, %v5846_v6 }
 0x322   : > { %8486 = vst [vmem:[%s10294_s6 + $0x50] sm:$0xff] %v8450_v12  }
 0x323   : > { %v5943_v24 = vpop.f32.mrf.mxu0 }
 0x324   : > { %v5944_v60 = vadd.f32 %v5943_v24, %v5895_v14 }
 0x326   : > { %v5993_v17 = vadd.f32 %v5992_v51, %v5944_v60  ;;  %v5847_v50 = vpop.f32.mrf.mxu2  ;;  %v5997_v41 = vpop.f32.mrf.mxu1 }
 0x327   : > { %v5848_v44 = vadd.f32 %v5847_v50, %v10492_v45  ;;  %v5896_v52 = vpop.f32.mrf.mxu3 }
 0x328   : > { %v6055_v42 = vadd.f32 %v6054_v23, %v5993_v17 }
 0x329   : > { %v5897_v25 = vadd.f32 %v5896_v52, %v5848_v44 }
 0x32b   : > { %v5945_v11 = vpop.f32.mrf.mxu0 }
 0x32c   : > { %v5946_v1 = vadd.f32 %v5945_v11, %v5897_v25 }
 0x32e   : > { %v5995_v37 = vadd.f32 %v5994_v13, %v5946_v1  ;;  %v5850_v9 = vpop.f32.mrf.mxu2  ;;  %v5999_v46 = vpop.f32.mrf.mxu1 }
 0x32f   : > { %v5851_v7 = vadd.f32 %v5850_v9, %v10496_v59  ;;  %v5899_v31 = vpop.f32.mrf.mxu3 }
 0x330   : > { %v8455_v27 = vpack.c.bf16 %v5995_v37, %v5993_v17  ;;  %v6056_v61 = vadd.f32 %v6055_v42, %v5995_v37 }
 0x331   : > { %v5900_v26 = vadd.f32 %v5899_v31, %v5851_v7 }
 0x332   : > { %8487 = vst [vmem:[%s10294_s6 + $0x58] sm:$0xff] %v8455_v27  }
 0x333   : > { %v5948_v36 = vpop.f32.mrf.mxu0 }
 0x334   : > { %v5949_v2 = vadd.f32 %v5948_v36, %v5900_v26  ;;  %v3757_v36 = vrot.slane %v10459_v34, 4 }
 0x336   : > { %v5998_v30 = vadd.f32 %v5997_v41, %v5949_v2  ;;  %v5852_v45 = vpop.f32.mrf.mxu2  ;;  %v6002_v4 = vpop.f32.mrf.mxu1 }
 0x337   : > { %v5853_v55 = vadd.f32 %v5852_v45, %v10500_v3  ;;  %v5901_v62 = vpop.f32.mrf.mxu3 }
 0x338   : > { %v6057_v19 = vadd.f32 %v6056_v61, %v5998_v30 }
 0x339   : > { %v5902_v29 = vadd.f32 %v5901_v62, %v5853_v55  ;;  %v3758_v55 = vadd.f32 %v3757_v36, %v10459_v34 }
 0x33b   : > { %v5950_v43 = vpop.f32.mrf.mxu0 }
 0x33c   : > { %v5951_v21 = vadd.f32 %v5950_v43, %v5902_v29  ;;  %v3759_v43 = vrot.slane %v3758_v55, 2 }
 0x33e   : > { %v6000_v59 = vadd.f32 %v5999_v46, %v5951_v21  ;;  %v5855_v63 = vpop.f32.mrf.mxu2  ;;  %v6004_v40 = vpop.f32.mrf.mxu1 }
 0x33f   : > { %v5856_v53 = vadd.f32 %v5855_v63, %v10504_v47  ;;  %v5904_v39 = vpop.f32.mrf.mxu3 }
 0x340   : > { %v8460_v49 = vpack.c.bf16 %v6000_v59, %v5998_v30  ;;  %v6058_v56 = vadd.f32 %v6057_v19, %v6000_v59 }
 0x341   : > { %v5905_v48 = vadd.f32 %v5904_v39, %v5856_v53 }
 0x342   : > { %8488 = vst [vmem:[%s10294_s6 + $0x60] sm:$0xff] %v8460_v49  }
 0x343   : > { %v5953_v54 = vpop.f32.mrf.mxu0 }
 0x344   : > { %v5954_v28 = vadd.f32 %v5953_v54, %v5905_v48 }
 0x346   : > { %v6003_v32 = vadd.f32 %v6002_v4, %v5954_v28  ;;  %v5857_v3 = vpop.f32.mrf.mxu2  ;;  %v6007_v16 = vpop.f32.mrf.mxu1  ;;  %v6111_v28 = vld [vmem:[%s10294_s6] sm:$0xff] (%p8695_p5)  }
 0x347   : > { %v5858_v8 = vadd.f32 %v5857_v3, %v10508_v20  ;;  %v5906_v15 = vpop.f32.mrf.mxu3  ;;  %6112 = vst [vmem:[%s6094_s12] sm:$0xff] (%p8695_p5), %v6111_v28   ;;  %v6123_v3 = vld [vmem:[%s10294_s6 + $0x18] sm:$0xff] (%p8695_p5)  }
 0x348   : > { %v6059_v51 = vadd.f32 %v6058_v56, %v6003_v32  ;;  %6124 = vst [vmem:[%s6094_s12 + $0x18] sm:$0xff] (%p8695_p5), %v6123_v3  }
 0x349   : > { %v5907_v10 = vadd.f32 %v5906_v15, %v5858_v8  ;;  %v6127_v8 = vld [vmem:[%s10294_s6 + $0x20] sm:$0xff] (%p8695_p5)   ;;  %v6131_v15 = vld [vmem:[%s10294_s6 + $0x28] sm:$0xff] (%p8695_p5)  }
 0x34a   : > { %6128 = vst [vmem:[%s6094_s12 + $0x20] sm:$0xff] (%p8695_p5), %v6127_v8  }
 0x34b   : > { %v5955_v0 = vpop.f32.mrf.mxu0  ;;  %6132 = vst [vmem:[%s6094_s12 + $0x28] sm:$0xff] (%p8695_p5), %v6131_v15  }
 0x34c   : > { %v5956_v33 = vadd.f32 %v5955_v0, %v5907_v10  ;;  %v6139_v10 = vld [vmem:[%s10294_s6 + $0x38] sm:$0xff] (%p8695_p5)   ;;  %v6143_v0 = vld [vmem:[%s10294_s6 + $0x40] sm:$0xff] (%p8695_p5)  }
 0x34d   : > { %6140 = vst [vmem:[%s6094_s12 + $0x38] sm:$0xff] (%p8695_p5), %v6139_v10  }
 0x34e   : > { %v6005_v18 = vadd.f32 %v6004_v40, %v5956_v33  ;;  %v5860_v47 = vpop.f32.mrf.mxu2  ;;  %v6009_v44 = vpop.f32.mrf.mxu1  ;;  %v6115_v40 = vld [vmem:[%s10294_s6 + $0x8] sm:$0xff] (%p8695_p5)   ;;  %6144 = vst [vmem:[%s6094_s12 + $0x80] sm:$0xff] (%p8695_p5), %v6143_v0  }
 0x34f   : > { %v5861_v35 = vadd.f32 %v5860_v47, %v10512_v38  ;;  %v5909_v6 = vpop.f32.mrf.mxu3  ;;  %6116 = vst [vmem:[%s6094_s12 + $0x8] sm:$0xff] (%p8695_p5), %v6115_v40   ;;  %v6147_v33 = vld [vmem:[%s10294_s6 + $0x48] sm:$0xff] (%p8695_p5)   ;;  %v6155_v47 = vld [vmem:[%s10294_s6 + $0x58] sm:$0xff] (%p8695_p5)  }
 0x350   : > { %v8465_v58 = vpack.c.bf16 %v6005_v18, %v6003_v32  ;;  %v6060_v13 = vadd.f32 %v6059_v51, %v6005_v18  ;;  %v6119_v32 = vld [vmem:[%s10294_s6 + $0x10] sm:$0xff] (%p8695_p5)   ;;  %6148 = vst [vmem:[%s6094_s12 + $0x88] sm:$0xff] (%p8695_p5), %v6147_v33  }
 0x351   : > { %v5910_v12 = vadd.f32 %v5909_v6, %v5861_v35  ;;  %6120 = vst [vmem:[%s6094_s12 + $0x10] sm:$0xff] (%p8695_p5), %v6119_v32   ;;  %v6135_v51 = vld [vmem:[%s10294_s6 + $0x30] sm:$0xff] (%p8695_p5)  }
 0x352   : > { %8489 = vst [vmem:[%s10294_s6 + $0x68] sm:$0xff] %v8465_v58   ;;  %v6151_v18 = vld [vmem:[%s10294_s6 + $0x50] sm:$0xff] (%p8695_p5)  }
 0x353   : > { %v5958_v23 = vpop.f32.mrf.mxu0  ;;  %6136 = vst [vmem:[%s6094_s12 + $0x30] sm:$0xff] (%p8695_p5), %v6135_v51  }
 0x354   : > { %v5959_v14 = vadd.f32 %v5958_v23, %v5910_v12  ;;  %6152 = vst [vmem:[%s6094_s12 + $0x90] sm:$0xff] (%p8695_p5), %v6151_v18  }
 0x355   : > { %6156 = vst [vmem:[%s6094_s12 + $0x98] sm:$0xff] (%p8695_p5), %v6155_v47  }
 0x356   : > { %v6008_v24 = vadd.f32 %v6007_v16, %v5959_v14  ;;  %v5862_v20 = vpop.f32.mrf.mxu2  ;;  %v6012_v27 = vpop.f32.mrf.mxu1  ;;  %v6159_v16 = vld [vmem:[%s10294_s6 + $0x60] sm:$0xff] (%p8695_p5)  }
 0x357   : > { %v5863_v60 = vadd.f32 %v5862_v20, %v10516_v22  ;;  %v5911_v17 = vpop.f32.mrf.mxu3  ;;  %6160 = vst [vmem:[%s6094_s12 + $0xa0] sm:$0xff] (%p8695_p5), %v6159_v16  }
 0x358   : > { %v6061_v50 = vadd.f32 %v6060_v13, %v6008_v24 }
 0x359   : > { %v5912_v52 = vadd.f32 %v5911_v17, %v5863_v60  ;;  %v6163_v35 = vld [vmem:[%s10294_s6 + $0x68] sm:$0xff] (%p8695_p5)  }
 0x35a   : > { %6164 = vst [vmem:[%s6094_s12 + $0xa8] sm:$0xff] (%p8695_p5), %v6163_v35  }
 0x35b   : > { %v5960_v41 = vpop.f32.mrf.mxu0 }
 0x35c   : > { %v5961_v42 = vadd.f32 %v5960_v41, %v5912_v52 }
 0x35e   : > { %v6010_v25 = vadd.f32 %v6009_v44, %v5961_v42  ;;  %v5865_v38 = vpop.f32.mrf.mxu2  ;;  %v6014_v19 = vpop.f32.mrf.mxu1 }
 0x35f   : > { %v5866_v11 = vadd.f32 %v5865_v38, %v10520_v57  ;;  %v5914_v1 = vpop.f32.mrf.mxu3 }
 0x360   : > { %v8470_v37 = vpack.c.bf16 %v6010_v25, %v6008_v24  ;;  %v6062_v9 = vadd.f32 %v6061_v50, %v6010_v25 }
 0x361   : > { %v5915_v7 = vadd.f32 %v5914_v1, %v5866_v11 }
 0x362   : > { %8490 = vst [vmem:[%s10294_s6 + $0x70] sm:$0xff] %v8470_v37  }
 0x363   : > { %v5963_v31 = vpop.f32.mrf.mxu0 }
 0x364   : > { %v5964_v61 = vadd.f32 %v5963_v31, %v5915_v7 }
 0x366   : > { %v6013_v22 = vadd.f32 %v6012_v27, %v5964_v61  ;;  %v5867_v26 = vpop.f32.mrf.mxu2 }
 0x367   : > { %v5868_v46 = vadd.f32 %v5867_v26, %v10522_v5  ;;  %v5916_v57 = vpop.f32.mrf.mxu3  ;;  %v3760_v5 = vadd.f32 %v3759_v43, %v3758_v55 }
 0x368   : > { %v6063_v2 = vadd.f32 %v6062_v9, %v6013_v22 }
 0x369   : > { %v5917_v30 = vadd.f32 %v5916_v57, %v5868_v46  ;;  %v3761_v39 = vrot.slane %v3760_v5, 1  ;;  %v6167_v6 = vld [vmem:[%s10294_s6 + $0x70] sm:$0xff] (%p8695_p5)  }
 0x36a   : > { %6168 = vst [vmem:[%s6094_s12 + $0xb0] sm:$0xff] (%p8695_p5), %v6167_v6  }
 0x36b   : > { %v5965_v45 = vpop.f32.mrf.mxu0  ;;  %v3762_v34 = vadd.f32 %v3761_v39, %v3760_v5 }
 0x36c   : > { %v5966_v62 = vadd.f32 %v5965_v45, %v5917_v30 }
 0x36e   : > { %v6015_v29 = vadd.f32 %v6014_v19, %v5966_v62 }
 0x370   : > { %v8475_v4 = vpack.c.bf16 %v6015_v29, %v6013_v22  ;;  %v6064_v21 = vadd.f32 %v6063_v2, %v6015_v29 }
 0x372   : > { %8491 = vst [vmem:[%s10294_s6 + $0x78] sm:$0xff] %v8475_v4   ;;  %v6065_v59 = vrot.slane %v6064_v21, 4 }
 0x374   : > { %v6066_v63 = vadd.f32 %v6065_v59, %v6064_v21 }
 0x376   : > { %v6067_v53 = vrot.slane %v6066_v63, 2 }
 0x378   : > { %v6068_v49 = vadd.f32 %v6067_v53, %v6066_v63 }
 0x379   : > { %v6171_v58 = vld [vmem:[%s10294_s6 + $0x78] sm:$0xff] (%p8695_p5)  }
 0x37a   : > { %v6069_v56 = vrot.slane %v6068_v49, 1  ;;  %6172 = vst [vmem:[%s6094_s12 + $0xb8] sm:$0xff] (%p8695_p5), %v6171_v58  }
 0x37c   : > { %v6070_v48 = vadd.f32 %v6069_v56, %v6068_v49  ;;  %6087 = sbr.rel (!%p8695_p5) target bundleno = 897 (0x381), region = 36 }
 0x37e   : > { %v6071_v54 = vadd.f32 %v6070_v48, %v3762_v34 }
 0x380   : > { %6072 = vst [vmem:[%s228_s7] sm:$0xff] %v6071_v54 }
 0x381 PF: > { %s15_s21 = sadd.s32 1, %s8622_s21   ;;  %s10658_s15 = smov %s8602_s16 }
 0x382   : > { %p12_p11 = scmp.ge.s32.totalorder %s15_s21, 6   ;;  %s10659_s16 = smov %s8706_s30 }
 0x383   : > { %s10660_s17 = smov %s8614_s19  ;;  %s10661_s18 = smov %s8618_s20 }
 0x384   : > { %s10662_s19 = smov %s10665_s22  ;;  %s10663_s20 = smov %s10669_s23 }
 0x385   :  { %14 = sbr.rel (!%p12_p11) target bundleno = 4 (0x4), region = 122 }

</bundles_post_ra>
